<compile_context>
chip_gen: v5e
topology: v5e:2x2
jax: 0.10.0
libtpu: 0.0.40
codegen_flags: <defaults>
</compile_context>

<pallas_src>
import jax
import jax.numpy as jnp
from jax import lax
from jax.experimental import pallas as pl
from jax.experimental.pallas import tpu as pltpu

C_IN, C_OUT, K = 37, 41, 3
STRIDE, PAD, DIL = 2, 2, 2

KC = K * K * C_IN            # 333 fused (kh, kw, c_in) contraction depth
KC_PAD = 384                 # padded to a multiple of 128 (3 MXU passes)
C_OUT_PAD = 128              # lane-dense output width
TM = 896                     # output-row tile (multiple of 8 and of 128)


def convt_sigmoid_kernel(xcol_ref, w_ref, b_ref, o_ref):
    # xcol_ref: (TM, KC_PAD) bf16   w_ref: (KC_PAD, C_OUT_PAD) bf16
    # b_ref:    (1, C_OUT_PAD) f32  o_ref: (TM, C_OUT_PAD) bf16
    acc = jnp.dot(xcol_ref[...], w_ref[...], preferred_element_type=jnp.float32)
    sig = jax.nn.sigmoid(acc + b_ref[...])                # f32 epilogue
    # Store the delta vs. sigmoid(bias); wrapper adds sigmoid(bias) back after
    # the interior zero-pad scatter (odd rows/cols end up exactly sigmoid(bias)).
    o_ref[...] = (sig - jax.nn.sigmoid(b_ref[...])).astype(o_ref.dtype)


def prepare_params(weight, bias):
    """Hoisted weight prep: transposed conv == conv with spatially flipped kernel."""
    w_taps = jnp.flip(weight, axis=(2, 3)).transpose(2, 3, 0, 1)   # (K, K, C_in, C_out)
    w_taps = w_taps.reshape(KC, C_OUT).astype(jnp.bfloat16)
    w_slab = jnp.zeros((KC_PAD, C_OUT_PAD), jnp.bfloat16)
    w_slab = w_slab.at[:KC, :C_OUT].set(w_taps)
    b_slab = jnp.zeros((1, C_OUT_PAD), jnp.float32)
    b_slab = b_slab.at[0, :C_OUT].set(bias.astype(jnp.float32))
    return w_slab, b_slab


@jax.jit
def model_forward(x, w_slab, b_slab):
    """x: (1, C_IN, H_in, W_in) NCHW.  Returns (1, C_OUT, H_out, W_out) float32."""
    _, _, h_in, w_in = x.shape
    h_out = (h_in - 1) * STRIDE - 2 * PAD + DIL * (K - 1) + 1
    w_out = (w_in - 1) * STRIDE - 2 * PAD + DIL * (K - 1) + 1
    # For stride=2, pad=2, dil=2, k=3 the even-even output subgrid is exactly a
    # 3x3 / pad=1 conv on the original input and all other pixels are sigmoid(b).
    assert h_out == 2 * h_in - 1 and w_out == 2 * w_in - 1

    hw = h_in * w_in
    hw_pad = pl.cdiv(hw, TM) * TM

    # bf16 im2col of the even-even subgrid, columns ordered (kh, kw, c_in).
    x_hwc = jnp.transpose(x[0], (1, 2, 0)).astype(jnp.bfloat16)     # (H, W, C) bf16
    x_zp = jnp.pad(x_hwc, ((1, 1), (1, 1), (0, 0)))                 # (H+2, W+2, C)
    patches = jnp.stack(
        [x_zp[kh:kh + h_in, kw:kw + w_in, :] for kh in range(K) for kw in range(K)],
        axis=2)                                                      # (H, W, 9, C)
    x_col = patches.reshape(hw, KC)
    x_col = jnp.pad(x_col, ((0, hw_pad - hw), (0, KC_PAD - KC)))     # (hw_pad, 384)

    cost = pl.CostEstimate(
        flops=2 * hw_pad * KC_PAD * C_OUT_PAD,
        transcendentals=hw_pad * C_OUT_PAD,
        bytes_accessed=(hw_pad * KC_PAD * 2 + KC_PAD * C_OUT_PAD * 2
                        + C_OUT_PAD * 4 + hw_pad * C_OUT_PAD * 2),
    )

    out2d = pl.pallas_call(
        convt_sigmoid_kernel,
        out_shape=jax.ShapeDtypeStruct((hw_pad, C_OUT_PAD), jnp.bfloat16),
        grid=(hw_pad // TM,),
        in_specs=[
            pl.BlockSpec((TM, KC_PAD), lambda i: (i, 0)),
            pl.BlockSpec((KC_PAD, C_OUT_PAD), lambda i: (0, 0)),
            pl.BlockSpec((1, C_OUT_PAD), lambda i: (0, 0)),
        ],
        out_specs=pl.BlockSpec((TM, C_OUT_PAD), lambda i: (i, 0)),
        compiler_params=pltpu.CompilerParams(
            dimension_semantics=("parallel",)),
        cost_estimate=cost,
    )(x_col, w_slab, b_slab)

    # Expand even-even deltas to the full output with interior zero padding,
    # then add sigmoid(bias) everywhere (odd rows/cols become exactly sigmoid(b)).
    delta = out2d[:hw, :C_OUT].reshape(h_in, w_in, C_OUT)            # bf16
    delta_full = lax.pad(delta, jnp.array(0, delta.dtype),
                         ((0, 0, 1), (0, 0, 1), (0, 0, 0)))          # (h_out, w_out, C_OUT)
    sig_bias = jax.nn.sigmoid(b_slab[0, :C_OUT])                     # (C_OUT,) f32
    out_hwc = delta_full.astype(jnp.float32) + sig_bias
    return out_hwc.transpose(2, 0, 1)[None]


def reference(x, weight, bias):
    """Pure-JAX reference for the PyTorch forward (conv_transpose + sigmoid)."""
    pad_eff = DIL * (K - 1) - PAD
    w_oihw = jnp.flip(weight, axis=(2, 3)).transpose(1, 0, 2, 3)     # (C_out, C_in, K, K)
    y = lax.conv_general_dilated(
        x, w_oihw, window_strides=(1, 1),
        padding=[(pad_eff, pad_eff), (pad_eff, pad_eff)],
        lhs_dilation=(STRIDE, STRIDE), rhs_dilation=(DIL, DIL),
        dimension_numbers=("NCHW", "OIHW", "NCHW"))
    return jax.nn.sigmoid(y + bias[None, :, None, None])


if __name__ == "__main__":
    key = jax.random.PRNGKey(0)
    kx, kw, kb = jax.random.split(key, 3)

    # Spec input shape: (1, 37, 57, 59); channels fixed by the module (37 -> 41).
    H_IN, W_IN = 57, 59
    x = jax.random.normal(kx, (1, C_IN, H_IN, W_IN), jnp.float32)

    bound = 1.0 / jnp.sqrt(jnp.float32(C_IN * K * K))
    weight = jax.random.uniform(kw, (C_IN, C_OUT, K, K), jnp.float32, -bound, bound)
    bias = jax.random.uniform(kb, (C_OUT,), jnp.float32, -bound, bound)

    w_slab, b_slab = prepare_params(weight, bias)     # hoisted, reused across calls
    y = model_forward(x, w_slab, b_slab)
    y = jax.block_until_ready(y)

    h_out = (H_IN - 1) * STRIDE - 2 * PAD + DIL * (K - 1) + 1
    w_out = (W_IN - 1) * STRIDE - 2 * PAD + DIL * (K - 1) + 1
    assert y.shape == (1, C_OUT, h_out, w_out), y.shape

    y_ref = reference(x, weight, bias)
    # bf16 operands / bf16 store, f32 accumulate -> relaxed tolerance vs f32 reference.
    assert jnp.allclose(y, y_ref, atol=1e-2, rtol=1e-2), float(jnp.abs(y - y_ref).max())

    print("KERNEL_OK")
</pallas_src>

<mosaic_0001>
module attributes {stable_mosaic.version = 11 : i64} {
  func.func @convt_sigmoid_kernel(%arg0: i32, %arg1: memref<896x384xbf16, #tpu.memory_space<vmem>>, %arg2: memref<384x128xbf16, #tpu.memory_space<vmem>>, %arg3: memref<1x128xf32, #tpu.memory_space<vmem>>, %arg4: memref<896x128xbf16, #tpu.memory_space<vmem>>) attributes {dimension_semantics = [#tpu.dimension_semantics<parallel>], iteration_bounds = array<i64: 4>, scalar_prefetch = 0 : i64, scratch_operands = 0 : i64, tpu.core_type = #tpu.core_type<tc>, window_params = [{transform_indices = @transform_0, window_bounds = array<i64: 896, 384>}, {pipeline_mode = #tpu.pipeline_mode<synchronous>, transform_indices = @transform_1, window_bounds = array<i64: 384, 128>}, {pipeline_mode = #tpu.pipeline_mode<synchronous>, transform_indices = @transform_2, window_bounds = array<i64: 1, 128>}, {transform_indices = @transform_3, window_bounds = array<i64: 896, 128>}]} {
    %c0 = arith.constant 0 : index
    %c0_0 = arith.constant 0 : index
    %0 = vector.load %arg1[%c0, %c0_0] : memref<896x384xbf16, #tpu.memory_space<vmem>>, vector<896x384xbf16>
    %c0_1 = arith.constant 0 : index
    %c0_2 = arith.constant 0 : index
    %1 = vector.load %arg2[%c0_1, %c0_2] : memref<384x128xbf16, #tpu.memory_space<vmem>>, vector<384x128xbf16>
    %cst = arith.constant dense<0.000000e+00> : vector<896x128xf32>
    %2 = tpu.matmul %0, %1, %cst {dimension_numbers = #tpu.dot_dimension_numbers<[1], [0], [0], [1], [0, 0, 1, 1], [], []>} : vector<896x384xbf16>, vector<384x128xbf16>, vector<896x128xf32> -> vector<896x128xf32>
    %c0_3 = arith.constant 0 : index
    %c0_4 = arith.constant 0 : index
    %3 = vector.load %arg3[%c0_3, %c0_4] : memref<1x128xf32, #tpu.memory_space<vmem>>, vector<1x128xf32>
    %4 = vector.broadcast %3 : vector<1x128xf32> to vector<896x128xf32>
    %5 = arith.addf %2, %4 : vector<896x128xf32>
    %6 = arith.negf %5 : vector<896x128xf32>
    %7 = math.exp %6 : vector<896x128xf32>
    %cst_5 = arith.constant 1.000000e+00 : f32
    %8 = vector.broadcast %cst_5 : f32 to vector<896x128xf32>
    %9 = arith.addf %8, %7 : vector<896x128xf32>
    %10 = arith.divf %8, %9 : vector<896x128xf32>
    %c0_6 = arith.constant 0 : index
    %c0_7 = arith.constant 0 : index
    %11 = vector.load %arg3[%c0_6, %c0_7] : memref<1x128xf32, #tpu.memory_space<vmem>>, vector<1x128xf32>
    %12 = arith.negf %11 : vector<1x128xf32>
    %13 = math.exp %12 : vector<1x128xf32>
    %cst_8 = arith.constant 1.000000e+00 : f32
    %14 = vector.broadcast %cst_8 : f32 to vector<1x128xf32>
    %15 = arith.addf %14, %13 : vector<1x128xf32>
    %16 = arith.divf %14, %15 : vector<1x128xf32>
    %17 = vector.broadcast %16 : vector<1x128xf32> to vector<896x128xf32>
    %18 = arith.subf %10, %17 : vector<896x128xf32>
    %19 = arith.truncf %18 : vector<896x128xf32> to vector<896x128xbf16>
    %c0_9 = arith.constant 0 : index
    %c0_10 = arith.constant 0 : index
    %20 = vector.load %arg4[%c0_9, %c0_10] : memref<896x128xbf16, #tpu.memory_space<vmem>>, vector<896x128xbf16>
    tpu.vector_store %arg4[%c0_9, %c0_10], %19 {strides = array<i32>} : memref<896x128xbf16, #tpu.memory_space<vmem>>, vector<896x128xbf16>,
    return
  }
  func.func @transform_0(%arg0: i32) -> (i32, i32) {
    %c0_i32 = arith.constant 0 : i32
    %c0_i32_0 = arith.constant 0 : i32
    return %arg0, %c0_i32 : i32, i32
  }
  func.func @transform_1(%arg0: i32) -> (i32, i32) {
    %c0_i32 = arith.constant 0 : i32
    %c0_i32_0 = arith.constant 0 : i32
    %c0_i32_1 = arith.constant 0 : i32
    return %c0_i32, %c0_i32_0 : i32, i32
  }
  func.func @transform_2(%arg0: i32) -> (i32, i32) {
    %c0_i32 = arith.constant 0 : i32
    %c0_i32_0 = arith.constant 0 : i32
    %c0_i32_1 = arith.constant 0 : i32
    return %c0_i32, %c0_i32_0 : i32, i32
  }
  func.func @transform_3(%arg0: i32) -> (i32, i32) {
    %c0_i32 = arith.constant 0 : i32
    %c0_i32_0 = arith.constant 0 : i32
    return %arg0, %c0_i32 : i32, i32
  }
}

</mosaic_0001>

<bundles_post_ra>
// kernel: model_forward.1
= control target key start
LH: loop header
LB: loop body
LE: loop exit
PB: predicated region body
PF: predicated region fallthrough
CT: control target
= control target key end

     0   :  { %s6839_s12 = smov 0   ;;  %s9950_s0 = inlined_call_operand.vmem [shape: bf16[3584,384], index: 0, kind: input, shape index: {}]   ;;  %s9951_s1 = inlined_call_operand.vmem [shape: bf16[384,128], index: 1, kind: input, shape index: {}]   ;;  %s9952_s2 = inlined_call_operand.vmem [shape: f32[1,128], index: 2, kind: input, shape index: {}]   ;;  %s9953_s3 = inlined_call_operand.vmem [shape: bf16[3584,128], index: 3, kind: output, shape index: {}]  }
   0x1 LB: > { %s4902_s13 = sadd.s32 4294967295, %s6817_s12   ;;  %p4906_p0 = scmp.ge.s32.totalorder %s6817_s12, 1  ;;  %s6817_s12 = sphi %s6839_s12, %s13_s12  }
   0x2   : > { %p139_p1 = scmp.lt.s32.totalorder %s6817_s12, 5 }
   0x4   : > { %p140_p2 = pnand %p4906_p0, %p139_p1 }
   0x5   : > { %s164_s28 = smul.u32 (!%p140_p2), 112, %s4902_s13 }
   0x6   : > { %143 = sbr.rel (%p140_p2) target bundleno = 921 (0x399), region = 32 }
   0x7   : > { %p165_p3 = scmp.lt.s32.totalorder (!%p140_p2), %s164_s28, 447 }
   0xb   : > { %v5967_v0 = vld [vmem:[%s9951_s1 + $0x38] sm:$0xff]  ;;  %v5966_v3 = vld [vmem:[%s9951_s1 + $0x30] sm:$0xff]  ;;  %v5965_v6 = vld [vmem:[%s9951_s1 + $0x28] sm:$0xff]  ;;  %s10156_s28 = smov (!%p165_p3, %s164_s28), 447 }
   0xc   : > { %v6853_v1 = vld [vmem:[%s9951_s1 + $0x78] sm:$0xff]  ;;  %1493 = vmatpush.bf16.msra.mxu0 %v5967_v0  ;;  %6319 = vmatpush.bf16.msra.mxu3 %v5967_v0  ;;  %v6868_v4 = vld [vmem:[%s9951_s1 + $0x70] sm:$0xff]  ;;  %v5973_v7 = vld [vmem:[%s9951_s1 + $0x68] sm:$0xff]  ;;  %s6343_s21 = smul.u32 12, %s10156_s28  ;;  %s4908_s20 = sshll.u32 %s10156_s28, 2 }
   0xd   : > { %v6858_v2 = vld [vmem:[%s9951_s1 + $0xb8] sm:$0xff]  ;;  %1782 = vmatpush.bf16.msra.mxu1 %v6853_v1  ;;  %v6873_v5 = vld [vmem:[%s9951_s1 + $0xb0] sm:$0xff]  ;;  %v6886_v8 = vld [vmem:[%s9951_s1 + $0xa8] sm:$0xff]  ;;  %s7165_s22 = scalar_lea.vmem %s9953_s3, %s4908_s20 }
   0xe   : > { %2071 = vmatpush.bf16.msra.mxu2 %v6858_v2  ;;  %v5964_v9 = vld [vmem:[%s9951_s1 + $0x20] sm:$0xff]  ;;  %v5963_v12 = vld [vmem:[%s9951_s1 + $0x18] sm:$0xff]  ;;  %v5962_v15 = vld [vmem:[%s9951_s1 + $0x10] sm:$0xff]  ;;  %s6936_s4 = scalar_lea.vmem %s9950_s0, %s6343_s21 }
   0xf   : > { %v6895_v10 = vld [vmem:[%s9951_s1 + $0x60] sm:$0xff]  ;;  %v5971_v13 = vld [vmem:[%s9951_s1 + $0x58] sm:$0xff]  ;;  %v5970_v16 = vld [vmem:[%s9951_s1 + $0x50] sm:$0xff] }
  0x10   : > { %1494 = vmatpush.bf16.msra.mxu0 %v5966_v3  ;;  %6320 = vmatpush.bf16.msra.mxu3 %v5966_v3  ;;  %v6900_v11 = vld [vmem:[%s9951_s1 + $0xa0] sm:$0xff]  ;;  %v6915_v14 = vld [vmem:[%s9951_s1 + $0x98] sm:$0xff]  ;;  %v6928_v17 = vld [vmem:[%s9951_s1 + $0x90] sm:$0xff] }
  0x11   : > { %1783 = vmatpush.bf16.msra.mxu1 %v6868_v4  ;;  %v5961_v18 = vld [vmem:[%s9951_s1 + $0x8] sm:$0xff]  ;;  %v5960_v21 = vld [vmem:[%s9951_s1] sm:$0xff]  ;;  %v5415_v26 = vld [vmem:[%s6936_s4 + $0x3f0] sm:$0xf] }
  0x12   : > { %2072 = vmatpush.bf16.msra.mxu2 %v6873_v5  ;;  %v5969_v19 = vld [vmem:[%s9951_s1 + $0x48] sm:$0xff]  ;;  %v5968_v22 = vld [vmem:[%s9951_s1 + $0x40] sm:$0xff]  ;;  %v5919_v27 = vld [vmem:[%s6936_s4 + $0x3f8] sm:$0xf0] }
  0x13   : > { %v6945_v20 = vld [vmem:[%s9951_s1 + $0x88] sm:$0xff]  ;;  %v6956_v23 = vld [vmem:[%s9951_s1 + $0x80] sm:$0xff]  ;;  %v4913_v29 = vld [vmem:[%s6936_s4 + $0xc] sm:$0xf0]  ;;  %v5416_v33 = vor.u32 %v5919_v27, %v5415_v26 }
  0x14   : > { %1495 = vmatpush.bf16.msra.mxu0 %v5965_v6  ;;  %6321 = vmatpush.bf16.msra.mxu3 %v5965_v6  ;;  %v4911_v24 = vld [vmem:[%s6936_s4] sm:$0xf]  ;;  %v5793_v25 = vld [vmem:[%s6936_s4 + $0x8] sm:$0xf0]  ;;  %v5792_v28 = vld [vmem:[%s6936_s4 + $0x4] sm:$0xf] }
  0x15   : > { %1784 = vmatpush.bf16.msra.mxu1 %v5973_v7  ;;  %v4919_v30 = vld [vmem:[%s6936_s4 + $0x8] sm:$0xf]  ;;  %v5794_v31 = vld [vmem:[%s6936_s4 + $0x10] sm:$0xf0]  ;;  %v4912_v32 = vor.u32 %v5793_v25, %v4911_v24  ;;  %v4916_v34 = vor.u32 %v5792_v28, %v4913_v29  ;;  %v4923_v36 = vld [vmem:[%s6936_s4 + $0x18] sm:$0xf] }
  0x16   : > { %2073 = vmatpush.bf16.msra.mxu2 %v6886_v8  ;;  %v4920_v35 = vor.u32 %v5794_v31, %v4919_v30  ;;  %v5796_v37 = vld [vmem:[%s6936_s4 + $0x20] sm:$0xf0]  ;;  %v5427_v38 = vld [vmem:[%s6936_s4 + $0x408] sm:$0xf]  ;;  %v5922_v39 = vld [vmem:[%s6936_s4 + $0x410] sm:$0xf0] }
  0x17   : > { %v5795_v40 = vld [vmem:[%s6936_s4 + $0x1c] sm:$0xf]  ;;  %v4925_v41 = vld [vmem:[%s6936_s4 + $0x24] sm:$0xf0]  ;;  %v4931_v42 = vld [vmem:[%s6936_s4 + $0x20] sm:$0xf]  ;;  %v4924_v44 = vor.u32 %v5796_v37, %v4923_v36  ;;  %v5428_v45 = vor.u32 %v5922_v39, %v5427_v38 }
  0x18   : > { %1496 = vmatpush.bf16.msra.mxu0 %v5964_v9  ;;  %6322 = vmatpush.bf16.msra.mxu3 %v5964_v9  ;;  %v5797_v43 = vld [vmem:[%s6936_s4 + $0x28] sm:$0xf0]  ;;  %v4928_v46 = vor.u32 %v5795_v40, %v4925_v41  ;;  %v4935_v48 = vld [vmem:[%s6936_s4 + $0x30] sm:$0xf]  ;;  %v5799_v49 = vld [vmem:[%s6936_s4 + $0x38] sm:$0xf0] }
  0x19   : > { %1785 = vmatpush.bf16.msra.mxu1 %v6895_v10  ;;  %v4932_v47 = vor.u32 %v5797_v43, %v4931_v42  ;;  %v5439_v50 = vld [vmem:[%s6936_s4 + $0x420] sm:$0xf]  ;;  %v5925_v51 = vld [vmem:[%s6936_s4 + $0x428] sm:$0xf0]  ;;  %v5798_v52 = vld [vmem:[%s6936_s4 + $0x34] sm:$0xf]  ;;  %v4936_v56 = vor.u32 %v5799_v49, %v4935_v48 }
  0x1a   : > { %2074 = vmatpush.bf16.msra.mxu2 %v6900_v11  ;;  %v4937_v53 = vld [vmem:[%s6936_s4 + $0x3c] sm:$0xf0]  ;;  %v4943_v54 = vld [vmem:[%s6936_s4 + $0x38] sm:$0xf]  ;;  %v5800_v55 = vld [vmem:[%s6936_s4 + $0x40] sm:$0xf0]  ;;  %v5440_v57 = vor.u32 %v5925_v51, %v5439_v50 }
  0x1b   : > { %v4940_v58 = vor.u32 %v5798_v52, %v4937_v53  ;;  %v4944_v59 = vor.u32 %v5800_v55, %v4943_v54  ;;  %v4947_v60 = vld [vmem:[%s6936_s4 + $0x48] sm:$0xf]  ;;  %v5802_v61 = vld [vmem:[%s6936_s4 + $0x50] sm:$0xf0]  ;;  %v5451_v62 = vld [vmem:[%s6936_s4 + $0x438] sm:$0xf] }
  0x1c   : > { %1497 = vmatpush.bf16.msra.mxu0 %v5963_v12  ;;  %6323 = vmatpush.bf16.msra.mxu3 %v5963_v12  ;;  %v5928_v63 = vld [vmem:[%s6936_s4 + $0x440] sm:$0xf0]  ;;  %v5801_v0 = vld [vmem:[%s6936_s4 + $0x4c] sm:$0xf]  ;;  %v5803_v3 = vld [vmem:[%s6936_s4 + $0x58] sm:$0xf0] }
  0x1d   : > { %1786 = vmatpush.bf16.msra.mxu1 %v5971_v13  ;;  %v5805_v9 = vld [vmem:[%s6936_s4 + $0x68] sm:$0xf0]  ;;  %v5804_v12 = vld [vmem:[%s6936_s4 + $0x64] sm:$0xf]  ;;  %v5934_v24 = vld [vmem:[%s6936_s4 + $0x470] sm:$0xf0] }
  0x1e   : > { %2075 = vmatpush.bf16.msra.mxu2 %v6915_v14  ;;  %v5807_v25 = vld [vmem:[%s6936_s4 + $0x7c] sm:$0xf]  ;;  %v4979_v26 = vld [vmem:[%s6936_s4 + $0x80] sm:$0xf]  ;;  %v5809_v27 = vld [vmem:[%s6936_s4 + $0x88] sm:$0xf0] }
  0x1f   : > { %v4980_v31 = vor.u32 %v5809_v27, %v4979_v26  ;;  %v5810_v36 = vld [vmem:[%s6936_s4 + $0x94] sm:$0xf]  ;;  %v4985_v37 = vld [vmem:[%s6936_s4 + $0x9c] sm:$0xf0]  ;;  %v4991_v38 = vld [vmem:[%s6936_s4 + $0x98] sm:$0xf] }
  0x20   : > { %1498 = vmatpush.bf16.msra.mxu0 %v5962_v15  ;;  %6324 = vmatpush.bf16.msra.mxu3 %v5962_v15  ;;  %v5806_v15 = vld [vmem:[%s6936_s4 + $0x70] sm:$0xf0]  ;;  %v5812_v39 = vld [vmem:[%s6936_s4 + $0xa0] sm:$0xf0]  ;;  %v4988_v42 = vor.u32 %v5810_v36, %v4985_v37  ;;  %v5813_v48 = vld [vmem:[%s6936_s4 + $0xac] sm:$0xf] }
  0x21   : > { %1787 = vmatpush.bf16.msra.mxu1 %v5970_v16  ;;  %v4992_v43 = vor.u32 %v5812_v39, %v4991_v38  ;;  %v4997_v49 = vld [vmem:[%s6936_s4 + $0xb4] sm:$0xf0]  ;;  %v5003_v50 = vld [vmem:[%s6936_s4 + $0xb0] sm:$0xf]  ;;  %v5815_v51 = vld [vmem:[%s6936_s4 + $0xb8] sm:$0xf0] }
  0x22   : > { %2076 = vmatpush.bf16.msra.mxu2 %v6928_v17  ;;  %v5000_v54 = vor.u32 %v5813_v48, %v4997_v49  ;;  %v5004_v55 = vor.u32 %v5815_v51, %v5003_v50  ;;  %v5027_v26 = vld [vmem:[%s6936_s4 + $0xe0] sm:$0xf]  ;;  %v5821_v27 = vld [vmem:[%s6936_s4 + $0xe8] sm:$0xf0] }
  0x23   : > { %v5028_v37 = vor.u32 %v5821_v27, %v5027_v26 }
  0x24   : > { %1499 = vmatpush.bf16.msra.mxu0 %v5961_v18  ;;  %6325 = vmatpush.bf16.msra.mxu3 %v5961_v18 }
  0x25   : > { %1788 = vmatpush.bf16.msra.mxu1 %v5969_v19 }
  0x26   : > { %2077 = vmatpush.bf16.msra.mxu2 %v6945_v20 }
  0x28   : > { %1500 = vmatpush.bf16.msra.mxu0 %v5960_v21  ;;  %6326 = vmatpush.bf16.msra.mxu3 %v5960_v21  ;;  %v5808_v21 = vld [vmem:[%s6936_s4 + $0x80] sm:$0xf0] }
  0x29   : > { %1789 = vmatpush.bf16.msra.mxu1 %v5968_v22 }
  0x2a   : > { %2078 = vmatpush.bf16.msra.mxu2 %v6956_v23 }
  0x2b   : > { %1501 = vmatmul.bf16.vlgmr.msra.gmra.mxu0 %v4912_v32  ;;  %1711 = vmatmul.bf16.vlgmr.msra.gmra.mxu3 %v5416_v33  ;;  %v4983_v32 = vld [vmem:[%s6936_s4 + $0x90] sm:$0xf]  ;;  %v5811_v33 = vld [vmem:[%s6936_s4 + $0x98] sm:$0xf0] }
  0x2c   : > { %6327 = vmatpush.bf16.msrb.mxu3 %v6853_v1  ;;  %1790 = vmatmul.bf16.vlgmr.msra.gmra.mxu1 %v4916_v34  ;;  %v4949_v1 = vld [vmem:[%s6936_s4 + $0x54] sm:$0xf0]  ;;  %v5487_v34 = vld [vmem:[%s6936_s4 + $0x480] sm:$0xf]  ;;  %v4984_v40 = vor.u32 %v5811_v33, %v4983_v32 }
  0x2d   : > { %2079 = vmatmul.bf16.vlgmr.msra.gmra.mxu2 %v4920_v35  ;;  %v4952_v6 = vor.u32 %v5801_v0, %v4949_v1  ;;  %v5937_v35 = vld [vmem:[%s6936_s4 + $0x488] sm:$0xf0]  ;;  %v5009_v0 = vld [vmem:[%s6936_s4 + $0xcc] sm:$0xf0]  ;;  %v5015_v1 = vld [vmem:[%s6936_s4 + $0xc8] sm:$0xf] }
  0x2e   : > { %v5488_v41 = vor.u32 %v5937_v35, %v5487_v34 }
  0x30   : > { %6328 = vmatpush.bf16.msrb.mxu3 %v6868_v4  ;;  %v4948_v4 = vor.u32 %v5802_v61, %v4947_v60  ;;  %v5817_v60 = vld [vmem:[%s6936_s4 + $0xc8] sm:$0xf0]  ;;  %v5511_v61 = vld [vmem:[%s6936_s4 + $0x4b0] sm:$0xf] }
  0x34   : > { %6329 = vmatpush.bf16.msrb.mxu3 %v5973_v7 }
  0x38   : > { %6330 = vmatpush.bf16.msrb.mxu3 %v6895_v10  ;;  %v5463_v10 = vld [vmem:[%s6936_s4 + $0x450] sm:$0xf] }
  0x3b   : > { %1506 = vmatmul.bf16.gmra.mxu0 %v4924_v44  ;;  %1716 = vmatmul.bf16.gmra.mxu3 %v5428_v45  ;;  %v4995_v44 = vld [vmem:[%s6936_s4 + $0xa8] sm:$0xf]  ;;  %v5814_v45 = vld [vmem:[%s6936_s4 + $0xb0] sm:$0xf0] }
  0x3c   : > { %6331 = vmatpush.bf16.msrb.mxu3 %v5971_v13  ;;  %1795 = vmatmul.bf16.gmra.mxu1 %v4928_v46  ;;  %v4961_v13 = vld [vmem:[%s6936_s4 + $0x6c] sm:$0xf0]  ;;  %v5499_v46 = vld [vmem:[%s6936_s4 + $0x498] sm:$0xf]  ;;  %v4996_v52 = vor.u32 %v5814_v45, %v4995_v44 }
  0x3d   : > { %2084 = vmatmul.bf16.gmra.mxu2 %v4932_v47  ;;  %v4964_v18 = vor.u32 %v5804_v12, %v4961_v13  ;;  %v5940_v47 = vld [vmem:[%s6936_s4 + $0x4a0] sm:$0xf0] }
  0x3e   : > { %v5500_v53 = vor.u32 %v5940_v47, %v5499_v46 }
  0x40   : > { %6332 = vmatpush.bf16.msrb.mxu3 %v5970_v16 }
  0x44   : > { %6333 = vmatpush.bf16.msrb.mxu3 %v5969_v19 }
  0x48   : > { %6334 = vmatpush.bf16.msrb.mxu3 %v5968_v22  ;;  %v5475_v22 = vld [vmem:[%s6936_s4 + $0x468] sm:$0xf] }
  0x49   : > { %v5476_v29 = vor.u32 %v5934_v24, %v5475_v22  ;;  %v5523_v22 = vld [vmem:[%s6936_s4 + $0x4c8] sm:$0xf]  ;;  %v5946_v24 = vld [vmem:[%s6936_s4 + $0x4d0] sm:$0xf0] }
  0x4a   : > { %v5524_v32 = vor.u32 %v5946_v24, %v5523_v22 }
  0x4b   : > { %1511 = vmatmul.bf16.gmra.mxu0 %v4936_v56  ;;  %1721 = vmatmul.bf16.gmra.mxu3 %v5440_v57  ;;  %v449_v56 = vld [vmem:[%s9952_s2] sm:$0x1] }
  0x4c   : > { %6335 = vmatpush.bf16.msra.mxu3 %v6858_v2  ;;  %1800 = vmatmul.bf16.gmra.mxu1 %v4940_v58  ;;  %v4955_v2 = vld [vmem:[%s6936_s4 + $0x50] sm:$0xf]  ;;  %v5789_v57 = vmul.f32 -1.442695, %v449_v56  ;;  %v7041_v58 = vld [vmem:[%s9952_s2] ss:$0 sm:$0xff] }
  0x4d   : > { %2089 = vmatmul.bf16.gmra.mxu2 %v4944_v59  ;;  %v4956_v7 = vor.u32 %v5803_v3, %v4955_v2  ;;  %v5007_v59 = vld [vmem:[%s6936_s4 + $0xc0] sm:$0xf]  ;;  %v5818_v2 = vld [vmem:[%s6936_s4 + $0xd0] sm:$0xf0] }
  0x4e   : > { %6353 = vpow2.f32 %v5789_v57  ;;  %v5008_v3 = vor.u32 %v5817_v60, %v5007_v59  ;;  %v5031_v57 = vld [vmem:[%s6936_s4 + $0xf0] sm:$0xf]  ;;  %v5823_v59 = vld [vmem:[%s6936_s4 + $0xf8] sm:$0xf0] }
  0x50   : > { %6336 = vmatpush.bf16.msra.mxu3 %v6873_v5  ;;  %v5452_v5 = vor.u32 %v5928_v63, %v5451_v62  ;;  %v5943_v62 = vld [vmem:[%s6936_s4 + $0x4b8] sm:$0xf0]  ;;  %v5816_v63 = vld [vmem:[%s6936_s4 + $0xc4] sm:$0xf] }
  0x54   : > { %6337 = vmatpush.bf16.msra.mxu3 %v6886_v8  ;;  %v4959_v8 = vld [vmem:[%s6936_s4 + $0x60] sm:$0xf] }
  0x55   : > { %v4960_v16 = vor.u32 %v5805_v9, %v4959_v8 }
  0x58   : > { %6338 = vmatpush.bf16.msra.mxu3 %v6900_v11  ;;  %v5931_v11 = vld [vmem:[%s6936_s4 + $0x458] sm:$0xf0] }
  0x5b   : > { %1516 = vmatmul.bf16.gmra.mxu0 %v4948_v4  ;;  %1726 = vmatmul.bf16.gmra.mxu3 %v5452_v5  ;;  %v5512_v4 = vor.u32 %v5943_v62, %v5511_v61  ;;  %v5535_v61 = vld [vmem:[%s6936_s4 + $0x4e0] sm:$0xf]  ;;  %v5949_v62 = vld [vmem:[%s6936_s4 + $0x4e8] sm:$0xf0] }
  0x5c   : > { %6339 = vmatpush.bf16.msra.mxu3 %v6915_v14  ;;  %1805 = vmatmul.bf16.gmra.mxu1 %v4952_v6  ;;  %v4967_v14 = vld [vmem:[%s6936_s4 + $0x68] sm:$0xf]  ;;  %v5012_v6 = vor.u32 %v5816_v63, %v5009_v0  ;;  %v5822_v63 = vld [vmem:[%s6936_s4 + $0xf4] sm:$0xf]  ;;  %v5033_v0 = vld [vmem:[%s6936_s4 + $0xfc] sm:$0xf0] }
  0x5d   : > { %2094 = vmatmul.bf16.gmra.mxu2 %v4956_v7  ;;  %v4968_v19 = vor.u32 %v5806_v15, %v4967_v14  ;;  %v5016_v7 = vor.u32 %v5818_v2, %v5015_v1  ;;  %v5039_v1 = vld [vmem:[%s6936_s4 + $0xf8] sm:$0xf]  ;;  %v5824_v2 = vld [vmem:[%s6936_s4 + $0x100] sm:$0xf0] }
  0x60   : > { %6340 = vmatpush.bf16.msra.mxu3 %v6928_v17  ;;  %v5464_v17 = vor.u32 %v5931_v11, %v5463_v10  ;;  %v6354_v10 = vpop.eup %6353 }
  0x61   : > { %v7054_v13 = vadd.f32 1.0, %v6354_v10  ;;  %v5032_v10 = vor.u32 %v5823_v59, %v5031_v57 }
  0x63   : > { %6355 = vrcp.f32 %v7054_v13  ;;  %vm4497_vm0 = vweird.f32 %v7054_v13 }
  0x64   : > { %6341 = vmatpush.bf16.msra.mxu3 %v6945_v20  ;;  %v4971_v20 = vld [vmem:[%s6936_s4 + $0x78] sm:$0xf] }
  0x65   : > { %v4972_v28 = vor.u32 %v5808_v21, %v4971_v20  ;;  %v5019_v20 = vld [vmem:[%s6936_s4 + $0xd8] sm:$0xf]  ;;  %v5820_v21 = vld [vmem:[%s6936_s4 + $0xe0] sm:$0xf0] }
  0x68   : > { %6342 = vmatpush.bf16.msra.mxu3 %v6956_v23  ;;  %v4973_v23 = vld [vmem:[%s6936_s4 + $0x84] sm:$0xf0] }
  0x69   : > { %v4976_v30 = vor.u32 %v5807_v25, %v4973_v23  ;;  %v5819_v25 = vld [vmem:[%s6936_s4 + $0xdc] sm:$0xf]  ;;  %v5021_v23 = vld [vmem:[%s6936_s4 + $0xe4] sm:$0xf0]  ;;  %v7068_v33 = vpop.eup %6355 }
  0x6a   : > { %v5024_v36 = vor.u32 %v5819_v25, %v5021_v23  ;;  %vm4498_vm1 = vweird.f32 %v7068_v33 }
  0x6b   : > { %1521 = vmatmul.bf16.gmra.mxu0 %v4960_v16  ;;  %1731 = vmatmul.bf16.gmra.mxu3 %v5464_v17  ;;  %vm7107_vm2 = vmor %vm4497_vm0, %vm4498_vm1 }
  0x6c   : > { %1810 = vmatmul.bf16.gmra.mxu1 %v4964_v18 }
  0x6d   : > { %2099 = vmatmul.bf16.gmra.mxu2 %v4968_v19 }
  0x7b   : > { %1526 = vmatmul.bf16.gmra.mxu0 %v4972_v28  ;;  %1736 = vmatmul.bf16.gmra.mxu3 %v5476_v29 }
  0x7c   : > { %1815 = vmatmul.bf16.gmra.mxu1 %v4976_v30 }
  0x7d   : > { %2104 = vmatmul.bf16.gmra.mxu2 %v4980_v31  ;;  %v5020_v31 = vor.u32 %v5820_v21, %v5019_v20 }
  0x8b   : > { %1531 = vmatmul.bf16.gmra.mxu0 %v4984_v40  ;;  %1741 = vmatmul.bf16.gmra.mxu3 %v5488_v41 }
  0x8c   : > { %1820 = vmatmul.bf16.gmra.mxu1 %v4988_v42 }
  0x8d   : > { %2109 = vmatmul.bf16.gmra.mxu2 %v4992_v43  ;;  %v4493_v43 = vmul.f32 %v7068_v33, %v7054_v13 }
  0x8f   : > { %v4494_v46 = vsub.f32 1.0, %v4493_v43 }
  0x9b   : > { %1536 = vmatmul.bf16.gmra.mxu0 %v4996_v52  ;;  %1746 = vmatmul.bf16.gmra.mxu3 %v5500_v53 }
  0x9c   : > { %1825 = vmatmul.bf16.gmra.mxu1 %v5000_v54 }
  0x9d   : > { %2114 = vmatmul.bf16.gmra.mxu2 %v5004_v55  ;;  %v4495_v55 = vmul.f32 %v7068_v33, %v4494_v46 }
  0xa8   : > { %v1502_v5 = vpop.f32.mrf.mxu0 }
  0xa9   : > { %v1503_v8 = vadd.f32 %v7041_v58, %v1502_v5  ;;  %v1791_v9 = vpop.f32.mrf.mxu1 }
  0xab   : > { %1541 = vmatmul.bf16.gmra.mxu0 %v5008_v3  ;;  %1751 = vmatmul.bf16.gmra.mxu3 %v5512_v4  ;;  %v1792_v11 = vadd.f32 %v1791_v9, %v1503_v8  ;;  %v4503_v4 = vand.u32 2147483648, %v7054_v13  ;;  %v4501_v8 = vand.u32 2147483647, %v7054_v13 }
  0xac   : > { %1830 = vmatmul.bf16.gmra.mxu1 %v5012_v6 }
  0xad   : > { %2119 = vmatmul.bf16.gmra.mxu2 %v5016_v7  ;;  %v4496_v7 = vadd.f32 %v7068_v33, %v4495_v55  ;;  %v4504_v24 = vor.u32 1.1754944e-38, %v4503_v4  ;;  %vm4502_vm4 = vcmp.eq.f32.partialorder %v4501_v8, 8.507059e+37 }
  0xae   : > { %v7052_v12 = vpop.f32.mrf.mxu3 }
  0xaf   : > { %v4500_v13 = vsel %vm7107_vm2, %v7068_v33, %v4496_v7 }
  0xb0   : > { %v2080_v14 = vpop.f32.mrf.mxu2  ;;  %v1504_v16 = vpop.f32.mrf.mxu0  ;;  %v4505_v33 = vsel %vm4502_vm4, %v4504_v24, %v4500_v13 }
  0xb1   : > { %v2081_v15 = vadd.f32 %v2080_v14, %v1792_v11  ;;  %v1793_v17 = vpop.f32.mrf.mxu1  ;;  %v1505_v19 = vadd.f32 %v7041_v58, %v1504_v16  ;;  %v5536_v11 = vor.u32 %v5949_v62, %v5535_v61  ;;  %v7137_v46 = vperm.slane %v4505_v33, 0  ;;  %v5952_v61 = vld [vmem:[%s6936_s4 + $0x500] sm:$0xf0] }
  0xb3   : > { %v5677_v18 = vmul.f32 -1.442695, %v2081_v15  ;;  %v1794_v28 = vadd.f32 %v1793_v17, %v1505_v19  ;;  %v5040_v19 = vor.u32 %v5824_v2, %v5039_v1  ;;  %v5051_v2 = vld [vmem:[%s6936_s4 + $0x110] sm:$0xf] }
  0xb5   : > { %6357 = vpow2.f32 %v5677_v18  ;;  %v5036_v18 = vor.u32 %v5822_v63, %v5033_v0  ;;  %v5825_v63 = vld [vmem:[%s6936_s4 + $0x10c] sm:$0xf]  ;;  %v5045_v0 = vld [vmem:[%s6936_s4 + $0x114] sm:$0xf0] }
  0xb6   : > { %v7066_v29 = vpop.f32.mrf.mxu3  ;;  %v5048_v15 = vor.u32 %v5825_v63, %v5045_v0  ;;  %v5057_v63 = vld [vmem:[%s6936_s4 + $0x12c] sm:$0xf0] }
  0xb8   : > { %v2082_v30 = vpop.f32.mrf.mxu2  ;;  %v1507_v35 = vpop.f32.mrf.mxu0 }
  0xb9   : > { %v2083_v34 = vadd.f32 %v2082_v30, %v1794_v28  ;;  %v1508_v38 = vadd.f32 %v7041_v58, %v1507_v35  ;;  %v1796_v39 = vpop.f32.mrf.mxu1 }
  0xbb   : > { %v6358_v40 = vpop.eup %6357  ;;  %v5678_v41 = vmul.f32 -1.442695, %v2083_v34  ;;  %1546 = vmatmul.bf16.gmra.mxu0 %v5020_v31  ;;  %1756 = vmatmul.bf16.gmra.mxu3 %v5524_v32  ;;  %v1797_v44 = vadd.f32 %v1796_v39, %v1508_v38 }
  0xbc   : > { %v7071_v42 = vadd.f32 1.0, %v6358_v40  ;;  %1835 = vmatmul.bf16.gmra.mxu1 %v5024_v36 }
  0xbd   : > { %6359 = vpow2.f32 %v5678_v41  ;;  %2124 = vmatmul.bf16.gmra.mxu2 %v5028_v37 }
  0xbe   : > { %6361 = vrcp.f32 %v7071_v42  ;;  %v7076_v45 = vpop.f32.mrf.mxu3  ;;  %v2817_v31 = vand.u32 2147483647, %v7071_v42  ;;  %v2819_v32 = vand.u32 2147483648, %v7071_v42  ;;  %vm2813_vm5 = vweird.f32 %v7071_v42 }
  0xc0   : > { %v2085_v47 = vpop.f32.mrf.mxu2  ;;  %v1509_v49 = vpop.f32.mrf.mxu0  ;;  %vm2818_vm8 = vcmp.eq.f32.partialorder %v2817_v31, 8.507059e+37 }
  0xc1   : > { %v2086_v48 = vadd.f32 %v2085_v47, %v1797_v44  ;;  %v1798_v50 = vpop.f32.mrf.mxu1  ;;  %v1510_v53 = vadd.f32 %v7041_v58, %v1509_v49  ;;  %v2820_v44 = vor.u32 1.1754944e-38, %v2819_v32 }
  0xc3   : > { %v6360_v51 = vpop.eup %6359  ;;  %v5679_v52 = vmul.f32 -1.442695, %v2086_v48  ;;  %v1799_v5 = vadd.f32 %v1798_v50, %v1510_v53  ;;  %v5826_v53 = vld [vmem:[%s6936_s4 + $0x110] sm:$0xf0] }
  0xc4   : > { %v7079_v54 = vpop.eup %6361  ;;  %v7082_v56 = vadd.f32 1.0, %v6360_v51 }
  0xc5   : > { %v2809_v60 = vmul.f32 %v7079_v54, %v7071_v42  ;;  %6363 = vpow2.f32 %v5679_v52  ;;  %vm2814_vm3 = vweird.f32 %v7079_v54  ;;  %v5043_v52 = vld [vmem:[%s6936_s4 + $0x108] sm:$0xf] }
  0xc6   : > { %6365 = vrcp.f32 %v7082_v56  ;;  %v7098_v6 = vpop.f32.mrf.mxu3  ;;  %vm7128_vm6 = vmor %vm2813_vm5, %vm2814_vm3  ;;  %v2832_v37 = vand.u32 2147483647, %v7082_v56  ;;  %v2834_v38 = vand.u32 2147483648, %v7082_v56  ;;  %vm2828_vm9 = vweird.f32 %v7082_v56 }
  0xc7   : > { %v2810_v3 = vsub.f32 1.0, %v2809_v60  ;;  %v5547_v60 = vld [vmem:[%s6936_s4 + $0x4f8] sm:$0xf] }
  0xc8   : > { %v2087_v9 = vpop.f32.mrf.mxu2  ;;  %v1512_v17 = vpop.f32.mrf.mxu0  ;;  %v2835_v57 = vor.u32 1.1754944e-38, %v2834_v38  ;;  %vm2833_vm11 = vcmp.eq.f32.partialorder %v2832_v37, 8.507059e+37 }
  0xc9   : > { %v2811_v14 = vmul.f32 %v7079_v54, %v2810_v3  ;;  %v2088_v16 = vadd.f32 %v2087_v9, %v1799_v5  ;;  %v1513_v20 = vadd.f32 %v7041_v58, %v1512_v17  ;;  %v1801_v21 = vpop.f32.mrf.mxu1  ;;  %v5827_v3 = vld [vmem:[%s6936_s4 + $0x118] sm:$0xf0] }
  0xcb   : > { %v6364_v22 = vpop.eup %6363  ;;  %v5680_v25 = vmul.f32 -1.442695, %v2088_v16  ;;  %1551 = vmatmul.bf16.gmra.mxu0 %v5032_v10  ;;  %1761 = vmatmul.bf16.gmra.mxu3 %v5536_v11  ;;  %v2812_v27 = vadd.f32 %v7079_v54, %v2811_v14  ;;  %v1802_v30 = vadd.f32 %v1801_v21, %v1513_v20  ;;  %v5044_v11 = vor.u32 %v5826_v53, %v5043_v52  ;;  %v5829_v52 = vld [vmem:[%s6936_s4 + $0x128] sm:$0xf0] }
  0xcc   : > { %v6366_v23 = vpop.eup %6365  ;;  %v7116_v26 = vadd.f32 1.0, %v6364_v22  ;;  %1840 = vmatmul.bf16.gmra.mxu1 %v5036_v18  ;;  %v5548_v14 = vor.u32 %v5952_v61, %v5547_v60  ;;  %v5052_v20 = vor.u32 %v5827_v3, %v5051_v2  ;;  %v5559_v60 = vld [vmem:[%s6936_s4 + $0x510] sm:$0xf]  ;;  %v5955_v61 = vld [vmem:[%s6936_s4 + $0x518] sm:$0xf0] }
  0xcd   : > { %v2824_v28 = vmul.f32 %v6366_v23, %v7082_v56  ;;  %6367 = vpow2.f32 %v5680_v25  ;;  %2129 = vmatmul.bf16.gmra.mxu2 %v5040_v19  ;;  %v2816_v40 = vsel %vm7128_vm6, %v7079_v54, %v2812_v27  ;;  %vm2829_vm7 = vweird.f32 %v6366_v23  ;;  %v5830_v2 = vld [vmem:[%s6936_s4 + $0x130] sm:$0xf0] }
  0xce   : > { %6369 = vrcp.f32 %v7116_v26  ;;  %v7124_v35 = vpop.f32.mrf.mxu3  ;;  %v2821_v55 = vsel %vm2818_vm8, %v2820_v44, %v2816_v40  ;;  %vm2830_vm10 = vmor %vm2828_vm9, %vm2829_vm7  ;;  %v2847_v31 = vand.u32 2147483647, %v7116_v26  ;;  %v2849_v32 = vand.u32 2147483648, %v7116_v26 }
  0xcf   : > { %v2825_v34 = vsub.f32 1.0, %v2824_v28  ;;  %v4510_v4 = vsub.f32 %v2821_v55, %v7137_v46  ;;  %vm2843_vm13 = vweird.f32 %v7116_v26 }
  0xd0   : > { %v2090_v39 = vpop.f32.mrf.mxu2  ;;  %v1514_v43 = vpop.f32.mrf.mxu0  ;;  %vm2848_vm0 = vcmp.eq.f32.partialorder %v2847_v31, 8.507059e+37 }
  0xd1   : > { %v2826_v41 = vmul.f32 %v6366_v23, %v2825_v34  ;;  %v2091_v42 = vadd.f32 %v2090_v39, %v1802_v30  ;;  %v1803_v47 = vpop.f32.mrf.mxu1  ;;  %v1515_v51 = vadd.f32 %v7041_v58, %v1514_v43  ;;  %v2850_v43 = vor.u32 1.1754944e-38, %v2849_v32 }
  0xd3   : > { %v6368_v48 = vpop.eup %6367  ;;  %v2827_v49 = vadd.f32 %v6366_v23, %v2826_v41  ;;  %v5681_v50 = vmul.f32 -1.442695, %v2091_v42  ;;  %v1804_v8 = vadd.f32 %v1803_v47, %v1515_v51  ;;  %v5055_v51 = vld [vmem:[%s6936_s4 + $0x120] sm:$0xf] }
  0xd4   : > { %v7143_v54 = vpop.eup %6369  ;;  %v7146_v59 = vadd.f32 1.0, %v6368_v48 }
  0xd5   : > { %v2831_v56 = vsel %vm2830_vm10, %v6366_v23, %v2827_v49  ;;  %v2839_v62 = vmul.f32 %v7143_v54, %v7116_v26  ;;  %6371 = vpow2.f32 %v5681_v50  ;;  %vm2844_vm12 = vweird.f32 %v7143_v54 }
  0xd6   : > { %v2836_v1 = vsel %vm2833_vm11, %v2835_v57, %v2831_v56  ;;  %6373 = vrcp.f32 %v7146_v59  ;;  %v7160_v9 = vpop.f32.mrf.mxu3  ;;  %vm7183_vm14 = vmor %vm2843_vm13, %vm2844_vm12  ;;  %v2862_v37 = vand.u32 2147483647, %v7146_v59  ;;  %v2864_v38 = vand.u32 2147483648, %v7146_v59 }
  0xd7   : > { %v4511_v5 = vsub.f32 %v2836_v1, %v7137_v46  ;;  %v2840_v7 = vsub.f32 1.0, %v2839_v62  ;;  %vm2858_vm1 = vweird.f32 %v7146_v59  ;;  %v5828_v62 = vld [vmem:[%s6936_s4 + $0x124] sm:$0xf]  ;;  %v5063_v1 = vld [vmem:[%s6936_s4 + $0x128] sm:$0xf] }
  0xd8   : > { %v2092_v10 = vpop.f32.mrf.mxu2  ;;  %v1517_v19 = vpop.f32.mrf.mxu0  ;;  %v2865_v55 = vor.u32 1.1754944e-38, %v2864_v38  ;;  %vm2863_vm3 = vcmp.eq.f32.partialorder %v2862_v37, 8.507059e+37 }
  0xd9   : > { %v5987_v16 = vpack.c.bf16 %v4511_v5, %v4510_v4  ;;  %v2841_v17 = vmul.f32 %v7143_v54, %v2840_v7  ;;  %v2093_v18 = vadd.f32 %v2092_v10, %v1804_v8  ;;  %v1518_v21 = vadd.f32 %v7041_v58, %v1517_v19  ;;  %v1806_v22 = vpop.f32.mrf.mxu1 }
  0xdb   : > { %v6372_v24 = vpop.eup %6371  ;;  %5988 = vst [vmem:[%s7165_s22] sm:$0xff] %v5987_v16   ;;  %v5682_v25 = vmul.f32 -1.442695, %v2093_v18  ;;  %1556 = vmatmul.bf16.gmra.mxu0 %v5044_v11  ;;  %1766 = vmatmul.bf16.gmra.mxu3 %v5548_v14  ;;  %v2842_v27 = vadd.f32 %v7143_v54, %v2841_v17  ;;  %v1807_v30 = vadd.f32 %v1806_v22, %v1518_v21 }
  0xdc   : > { %v6374_v23 = vpop.eup %6373  ;;  %v7171_v13 = vadd.f32 1.0, %v6372_v24  ;;  %1845 = vmatmul.bf16.gmra.mxu1 %v5048_v15  ;;  %v5056_v11 = vor.u32 %v5829_v52, %v5055_v51  ;;  %v5560_v14 = vor.u32 %v5955_v61, %v5559_v60  ;;  %v5060_v15 = vor.u32 %v5828_v62, %v5057_v63  ;;  %v5067_v52 = vld [vmem:[%s6936_s4 + $0x138] sm:$0xf]  ;;  %v5831_v63 = vld [vmem:[%s6936_s4 + $0x13c] sm:$0xf] }
  0xdd   : > { %v2854_v28 = vmul.f32 %v6374_v23, %v7146_v59  ;;  %6375 = vpow2.f32 %v5682_v25  ;;  %2134 = vmatmul.bf16.gmra.mxu2 %v5052_v20  ;;  %v2846_v26 = vsel %vm7183_vm14, %v7143_v54, %v2842_v27  ;;  %vm2859_vm15 = vweird.f32 %v6374_v23 }
  0xde   : > { %6377 = vrcp.f32 %v7171_v13  ;;  %v7179_v34 = vpop.f32.mrf.mxu3  ;;  %v2851_v54 = vsel %vm2848_vm0, %v2850_v43, %v2846_v26  ;;  %vm2860_vm2 = vmor %vm2858_vm1, %vm2859_vm15  ;;  %v5064_v20 = vor.u32 %v5830_v2, %v5063_v1  ;;  %v2877_v32 = vand.u32 2147483647, %v7171_v13  ;;  %v5075_v2 = vld [vmem:[%s6936_s4 + $0x140] sm:$0xf] }
  0xdf   : > { %v2855_v33 = vsub.f32 1.0, %v2854_v28  ;;  %v4512_v3 = vsub.f32 %v2851_v54, %v7137_v46  ;;  %vm2873_vm5 = vweird.f32 %v7171_v13 }
  0xe0   : > { %v2095_v39 = vpop.f32.mrf.mxu2  ;;  %v1519_v42 = vpop.f32.mrf.mxu0  ;;  %vm2878_vm8 = vcmp.eq.f32.partialorder %v2877_v32, 8.507059e+37 }
  0xe1   : > { %v2856_v40 = vmul.f32 %v6374_v23, %v2855_v33  ;;  %v2096_v41 = vadd.f32 %v2095_v39, %v1807_v30  ;;  %v1808_v44 = vpop.f32.mrf.mxu1  ;;  %v1520_v50 = vadd.f32 %v7041_v58, %v1519_v42  ;;  %v2879_v33 = vand.u32 2147483648, %v7171_v13 }
  0xe3   : > { %v6376_v47 = vpop.eup %6375  ;;  %v2857_v48 = vadd.f32 %v6374_v23, %v2856_v40  ;;  %v5683_v49 = vmul.f32 -1.442695, %v2096_v41  ;;  %v1809_v7 = vadd.f32 %v1808_v44, %v1520_v50  ;;  %v2880_v44 = vor.u32 1.1754944e-38, %v2879_v33 }
  0xe4   : > { %v7196_v53 = vpop.eup %6377  ;;  %v7199_v57 = vadd.f32 1.0, %v6376_v47 }
  0xe5   : > { %v2861_v59 = vsel %vm2860_vm2, %v6374_v23, %v2857_v48  ;;  %v2869_v56 = vmul.f32 %v7196_v53, %v7171_v13  ;;  %6379 = vpow2.f32 %v5683_v49  ;;  %vm2874_vm4 = vweird.f32 %v7196_v53 }
  0xe6   : > { %v2866_v0 = vsel %vm2863_vm3, %v2865_v55, %v2861_v59  ;;  %6381 = vrcp.f32 %v7199_v57  ;;  %v7212_v8 = vpop.f32.mrf.mxu3  ;;  %vm7230_vm6 = vmor %vm2873_vm5, %vm2874_vm4  ;;  %v2892_v39 = vand.u32 2147483647, %v7199_v57  ;;  %v2894_v26 = vand.u32 2147483648, %v7199_v57  ;;  %v5571_v59 = vld [vmem:[%s6936_s4 + $0x528] sm:$0xf] }
  0xe7   : > { %v4513_v4 = vsub.f32 %v2866_v0, %v7137_v46  ;;  %v2870_v5 = vsub.f32 1.0, %v2869_v56  ;;  %vm2888_vm9 = vweird.f32 %v7199_v57  ;;  %v5958_v56 = vld [vmem:[%s6936_s4 + $0x530] sm:$0xf0]  ;;  %v5069_v0 = vld [vmem:[%s6936_s4 + $0x144] sm:$0xf0] }
  0xe8   : > { %v2097_v10 = vpop.f32.mrf.mxu2  ;;  %v1522_v19 = vpop.f32.mrf.mxu0  ;;  %v2895_v60 = vor.u32 1.1754944e-38, %v2894_v26  ;;  %vm2893_vm11 = vcmp.eq.f32.partialorder %v2892_v39, 8.507059e+37 }
  0xe9   : > { %v5992_v16 = vpack.c.bf16 %v4513_v4, %v4512_v3  ;;  %v2871_v17 = vmul.f32 %v7196_v53, %v2870_v5  ;;  %v2098_v18 = vadd.f32 %v2097_v10, %v1809_v7  ;;  %v1523_v21 = vadd.f32 %v7041_v58, %v1522_v19  ;;  %v1811_v22 = vpop.f32.mrf.mxu1  ;;  %v5833_v3 = vld [vmem:[%s6936_s4 + $0x148] sm:$0xf0] }
  0xeb   : > { %v6380_v24 = vpop.eup %6379  ;;  %6264 = vst [vmem:[%s7165_s22 + $0x8] sm:$0xff] %v5992_v16   ;;  %v5684_v25 = vmul.f32 -1.442695, %v2098_v18  ;;  %1561 = vmatmul.bf16.gmra.mxu0 %v5056_v11  ;;  %1771 = vmatmul.bf16.gmra.mxu3 %v5560_v14  ;;  %v2872_v28 = vadd.f32 %v7196_v53, %v2871_v17  ;;  %v1812_v31 = vadd.f32 %v1811_v22, %v1523_v21 }
  0xec   : > { %v6382_v23 = vpop.eup %6381  ;;  %v7218_v27 = vadd.f32 1.0, %v6380_v24  ;;  %1850 = vmatmul.bf16.gmra.mxu1 %v5060_v15  ;;  %v5572_v16 = vor.u32 %v5958_v56, %v5571_v59  ;;  %v5072_v17 = vor.u32 %v5831_v63, %v5069_v0  ;;  %v5076_v22 = vor.u32 %v5833_v3, %v5075_v2  ;;  %v5834_v63 = vld [vmem:[%s6936_s4 + $0x154] sm:$0xf]  ;;  %v5081_v0 = vld [vmem:[%s6936_s4 + $0x15c] sm:$0xf0] }
  0xed   : > { %v2884_v30 = vmul.f32 %v6382_v23, %v7199_v57  ;;  %6383 = vpow2.f32 %v5684_v25  ;;  %2139 = vmatmul.bf16.gmra.mxu2 %v5064_v20  ;;  %v2876_v13 = vsel %vm7230_vm6, %v7196_v53, %v2872_v28  ;;  %vm2889_vm7 = vweird.f32 %v6382_v23  ;;  %v5832_v53 = vld [vmem:[%s6936_s4 + $0x140] sm:$0xf0]  ;;  %v5918_v2 = vld [vmem:[%s6936_s4 + $0x3f4] sm:$0xf]  ;;  %v5417_v3 = vld [vmem:[%s6936_s4 + $0x3fc] sm:$0xf0] }
  0xee   : > { %6385 = vrcp.f32 %v7218_v27  ;;  %v7226_v37 = vpop.f32.mrf.mxu3  ;;  %v2881_v55 = vsel %vm2878_vm8, %v2880_v44, %v2876_v13  ;;  %vm2890_vm10 = vmor %vm2888_vm9, %vm2889_vm7  ;;  %v5068_v15 = vor.u32 %v5832_v53, %v5067_v52  ;;  %v2907_v38 = vand.u32 2147483647, %v7218_v27 }
  0xef   : > { %v2885_v36 = vsub.f32 1.0, %v2884_v30  ;;  %v4514_v4 = vsub.f32 %v2881_v55, %v7137_v46  ;;  %v2909_v39 = vand.u32 2147483648, %v7218_v27  ;;  %vm2903_vm13 = vweird.f32 %v7218_v27 }
  0xf0   : > { %v2100_v40 = vpop.f32.mrf.mxu2  ;;  %v1524_v43 = vpop.f32.mrf.mxu0  ;;  %vm2908_vm0 = vcmp.eq.f32.partialorder %v2907_v38, 8.507059e+37 }
  0xf1   : > { %v2886_v41 = vmul.f32 %v6382_v23, %v2885_v36  ;;  %v2101_v42 = vadd.f32 %v2100_v40, %v1812_v31  ;;  %v1813_v47 = vpop.f32.mrf.mxu1  ;;  %v1525_v51 = vadd.f32 %v7041_v58, %v1524_v43 }
  0xf3   : > { %v6384_v48 = vpop.eup %6383  ;;  %v2887_v49 = vadd.f32 %v6382_v23, %v2886_v41  ;;  %v5685_v50 = vmul.f32 -1.442695, %v2101_v42  ;;  %v1814_v10 = vadd.f32 %v1813_v47, %v1525_v51 }
  0xf4   : > { %v7243_v54 = vpop.eup %6385  ;;  %v7246_v61 = vadd.f32 1.0, %v6384_v48 }
  0xf5   : > { %v2891_v57 = vsel %vm2890_vm10, %v6382_v23, %v2887_v49  ;;  %v2899_v62 = vmul.f32 %v7243_v54, %v7218_v27  ;;  %6387 = vpow2.f32 %v5685_v50  ;;  %vm2904_vm12 = vweird.f32 %v7243_v54 }
  0xf6   : > { %v2896_v1 = vsel %vm2893_vm11, %v2895_v60, %v2891_v57  ;;  %6389 = vrcp.f32 %v7246_v61  ;;  %v7259_v11 = vpop.f32.mrf.mxu3  ;;  %vm7277_vm14 = vmor %vm2903_vm13, %vm2904_vm12  ;;  %v2922_v41 = vand.u32 2147483647, %v7246_v61  ;;  %v2924_v42 = vand.u32 2147483648, %v7246_v61  ;;  %v5079_v60 = vld [vmem:[%s6936_s4 + $0x150] sm:$0xf] }
  0xf7   : > { %v4515_v5 = vsub.f32 %v2896_v1, %v7137_v46  ;;  %v2900_v7 = vsub.f32 1.0, %v2899_v62  ;;  %v2910_v49 = vor.u32 1.1754944e-38, %v2909_v39  ;;  %vm2918_vm1 = vweird.f32 %v7246_v61 }
  0xf8   : > { %v2102_v14 = vpop.f32.mrf.mxu2  ;;  %v1527_v21 = vpop.f32.mrf.mxu0  ;;  %v2925_v57 = vor.u32 1.1754944e-38, %v2924_v42  ;;  %vm2923_vm3 = vcmp.eq.f32.partialorder %v2922_v41, 8.507059e+37 }
  0xf9   : > { %v5997_v18 = vpack.c.bf16 %v4515_v5, %v4514_v4  ;;  %v2901_v19 = vmul.f32 %v7243_v54, %v2900_v7  ;;  %v2103_v20 = vadd.f32 %v2102_v14, %v1814_v10  ;;  %v1528_v24 = vadd.f32 %v7041_v58, %v1527_v21  ;;  %v1816_v25 = vpop.f32.mrf.mxu1  ;;  %v5087_v5 = vld [vmem:[%s6936_s4 + $0x158] sm:$0xf]  ;;  %v5836_v7 = vld [vmem:[%s6936_s4 + $0x160] sm:$0xf0] }
  0xfa   : > { %v5420_v21 = vor.u32 %v5918_v2, %v5417_v3 }
  0xfb   : > { %v6388_v23 = vpop.eup %6387  ;;  %6265 = vst [vmem:[%s7165_s22 + $0x10] sm:$0xff] %v5997_v18   ;;  %v5686_v28 = vmul.f32 -1.442695, %v2103_v20  ;;  %1566 = vmatmul.bf16.gmra.mxu0 %v5068_v15  ;;  %1776 = vmatmul.bf16.gmra.mxu3 %v5572_v16  ;;  %v2902_v32 = vadd.f32 %v7243_v54, %v2901_v19  ;;  %v1817_v36 = vadd.f32 %v1816_v25, %v1528_v24 }
  0xfc   : > { %v6390_v30 = vpop.eup %6389  ;;  %v7265_v31 = vadd.f32 1.0, %v6388_v23  ;;  %1855 = vmatmul.bf16.gmra.mxu1 %v5072_v17  ;;  %v5084_v20 = vor.u32 %v5834_v63, %v5081_v0  ;;  %v5091_v0 = vld [vmem:[%s6936_s4 + $0x168] sm:$0xf] }
  0xfd   : > { %v2914_v33 = vmul.f32 %v6390_v30, %v7246_v61  ;;  %6391 = vpow2.f32 %v5686_v28  ;;  %2144 = vmatmul.bf16.gmra.mxu2 %v5076_v22  ;;  %v2906_v27 = vsel %vm7277_vm14, %v7243_v54, %v2902_v32  ;;  %vm2919_vm15 = vweird.f32 %v6390_v30  ;;  %v5835_v54 = vld [vmem:[%s6936_s4 + $0x158] sm:$0xf0] }
  0xfe   : > { %6393 = vrcp.f32 %v7265_v31  ;;  %v7273_v40 = vpop.f32.mrf.mxu3  ;;  %v2911_v56 = vsel %vm2908_vm0, %v2910_v49, %v2906_v27  ;;  %vm2920_vm2 = vmor %vm2918_vm1, %vm2919_vm15  ;;  %v5080_v19 = vor.u32 %v5835_v54, %v5079_v60  ;;  %v5088_v28 = vor.u32 %v5836_v7, %v5087_v5  ;;  %v5093_v5 = vld [vmem:[%s6936_s4 + $0x174] sm:$0xf0] }
  0xff   : > { %v2915_v26 = vsub.f32 1.0, %v2914_v33  ;;  %v4516_v10 = vsub.f32 %v2911_v56, %v7137_v46  ;;  %v2937_v42 = vand.u32 2147483647, %v7265_v31  ;;  %vm2933_vm5 = vweird.f32 %v7265_v31 }
 0x100   : > { %v2105_v43 = vpop.f32.mrf.mxu2  ;;  %v1529_v48 = vpop.f32.mrf.mxu0 }
 0x101   : > { %v2916_v44 = vmul.f32 %v6390_v30, %v2915_v26  ;;  %v2106_v47 = vadd.f32 %v2105_v43, %v1817_v36  ;;  %v1818_v50 = vpop.f32.mrf.mxu1  ;;  %v1530_v55 = vadd.f32 %v7041_v58, %v1529_v48  ;;  %v2939_v43 = vand.u32 2147483648, %v7265_v31 }
 0x102   : > { %vm2938_vm8 = vcmp.eq.f32.partialorder %v2937_v42, 8.507059e+37 }
 0x103   : > { %v6392_v51 = vpop.eup %6391  ;;  %v2917_v52 = vadd.f32 %v6390_v30, %v2916_v44  ;;  %v5687_v53 = vmul.f32 -1.442695, %v2106_v47  ;;  %v1819_v16 = vadd.f32 %v1818_v50, %v1530_v55  ;;  %v2940_v55 = vor.u32 1.1754944e-38, %v2939_v43 }
 0x104   : > { %v7290_v59 = vpop.eup %6393  ;;  %v7293_v62 = vadd.f32 1.0, %v6392_v51 }
 0x105   : > { %v2921_v61 = vsel %vm2920_vm2, %v6390_v30, %v2917_v52  ;;  %v2929_v1 = vmul.f32 %v7290_v59, %v7265_v31  ;;  %6395 = vpow2.f32 %v5687_v53  ;;  %vm2934_vm4 = vweird.f32 %v7290_v59 }
 0x106   : > { %v2926_v4 = vsel %vm2923_vm3, %v2925_v57, %v2921_v61  ;;  %6397 = vrcp.f32 %v7293_v62  ;;  %v7306_v17 = vpop.f32.mrf.mxu3  ;;  %vm7324_vm6 = vmor %vm2933_vm5, %vm2934_vm4  ;;  %v2952_v48 = vand.u32 2147483647, %v7293_v62  ;;  %v2954_v49 = vand.u32 2147483648, %v7293_v62 }
 0x107   : > { %v4517_v14 = vsub.f32 %v2926_v4, %v7137_v46  ;;  %v2930_v15 = vsub.f32 1.0, %v2929_v1  ;;  %vm2948_vm9 = vweird.f32 %v7293_v62  ;;  %v5837_v4 = vld [vmem:[%s6936_s4 + $0x16c] sm:$0xf] }
 0x108   : > { %v2107_v18 = vpop.f32.mrf.mxu2  ;;  %v1532_v23 = vpop.f32.mrf.mxu0  ;;  %v2955_v2 = vor.u32 1.1754944e-38, %v2954_v49  ;;  %vm2953_vm11 = vcmp.eq.f32.partialorder %v2952_v48, 8.507059e+37 }
 0x109   : > { %v6002_v22 = vpack.c.bf16 %v4517_v14, %v4516_v10  ;;  %v2931_v24 = vmul.f32 %v7290_v59, %v2930_v15  ;;  %v2108_v25 = vadd.f32 %v2107_v18, %v1819_v16  ;;  %v1533_v30 = vadd.f32 %v7041_v58, %v1532_v23  ;;  %v1821_v32 = vpop.f32.mrf.mxu1  ;;  %v5921_v10 = vld [vmem:[%s6936_s4 + $0x40c] sm:$0xf]  ;;  %v5429_v14 = vld [vmem:[%s6936_s4 + $0x414] sm:$0xf0]  ;;  %v5099_v16 = vld [vmem:[%s6936_s4 + $0x170] sm:$0xf] }
 0x10a   : > { %v5839_v18 = vld [vmem:[%s6936_s4 + $0x178] sm:$0xf0] }
 0x10b   : > { %v6396_v33 = vpop.eup %6395  ;;  %6266 = vst [vmem:[%s7165_s22 + $0x18] sm:$0xff] %v6002_v22   ;;  %v5688_v36 = vmul.f32 -1.442695, %v2108_v25  ;;  %1571 = vmatmul.bf16.gmra.mxu0 %v5080_v19  ;;  %2000 = vmatmul.bf16.vlgmr.msrb.gmra.mxu3 %v5420_v21  ;;  %v2932_v26 = vadd.f32 %v7290_v59, %v2931_v24  ;;  %v1822_v41 = vadd.f32 %v1821_v32, %v1533_v30 }
 0x10c   : > { %v6398_v38 = vpop.eup %6397  ;;  %v7312_v39 = vadd.f32 1.0, %v6396_v33  ;;  %1860 = vmatmul.bf16.gmra.mxu1 %v5084_v20  ;;  %v5432_v30 = vor.u32 %v5921_v10, %v5429_v14 }
 0x10d   : > { %v2944_v13 = vmul.f32 %v6398_v38, %v7293_v62  ;;  %6399 = vpow2.f32 %v5688_v36  ;;  %2149 = vmatmul.bf16.gmra.mxu2 %v5088_v28  ;;  %v2936_v31 = vsel %vm7324_vm6, %v7290_v59, %v2932_v26  ;;  %vm2949_vm7 = vweird.f32 %v6398_v38  ;;  %v5838_v59 = vld [vmem:[%s6936_s4 + $0x170] sm:$0xf0] }
 0x10e   : > { %6401 = vrcp.f32 %v7312_v39  ;;  %v7320_v44 = vpop.f32.mrf.mxu3  ;;  %v2941_v1 = vsel %vm2938_vm8, %v2940_v55, %v2936_v31  ;;  %vm2950_vm10 = vmor %vm2948_vm9, %vm2949_vm7  ;;  %v5092_v23 = vor.u32 %v5838_v59, %v5091_v0  ;;  %v5096_v28 = vor.u32 %v5837_v4, %v5093_v5 }
 0x10f   : > { %v2945_v27 = vsub.f32 1.0, %v2944_v13  ;;  %v4518_v19 = vsub.f32 %v2941_v1, %v7137_v46  ;;  %v5100_v26 = vor.u32 %v5839_v18, %v5099_v16  ;;  %v2967_v31 = vand.u32 2147483647, %v7312_v39  ;;  %v5840_v18 = vld [vmem:[%s6936_s4 + $0x184] sm:$0xf] }
 0x110   : > { %v2110_v50 = vpop.f32.mrf.mxu2  ;;  %v1534_v53 = vpop.f32.mrf.mxu0  ;;  %vm2963_vm13 = vweird.f32 %v7312_v39 }
 0x111   : > { %v2946_v51 = vmul.f32 %v6398_v38, %v2945_v27  ;;  %v2111_v52 = vadd.f32 %v2110_v50, %v1822_v41  ;;  %v1823_v60 = vpop.f32.mrf.mxu1  ;;  %v1535_v63 = vadd.f32 %v7041_v58, %v1534_v53  ;;  %vm2968_vm0 = vcmp.eq.f32.partialorder %v2967_v31, 8.507059e+37 }
 0x113   : > { %v6400_v54 = vpop.eup %6399  ;;  %v2947_v56 = vadd.f32 %v6398_v38, %v2946_v51  ;;  %v5689_v57 = vmul.f32 -1.442695, %v2111_v52  ;;  %v1824_v22 = vadd.f32 %v1823_v60, %v1535_v63  ;;  %v2969_v51 = vand.u32 2147483648, %v7312_v39 }
 0x114   : > { %v7337_v61 = vpop.eup %6401  ;;  %v7340_v3 = vadd.f32 1.0, %v6400_v54 }
 0x115   : > { %v2951_v62 = vsel %vm2950_vm10, %v6398_v38, %v2947_v56  ;;  %v2959_v7 = vmul.f32 %v7337_v61, %v7312_v39  ;;  %6403 = vpow2.f32 %v5689_v57  ;;  %vm2964_vm12 = vweird.f32 %v7337_v61 }
 0x116   : > { %v2956_v15 = vsel %vm2953_vm11, %v2955_v2, %v2951_v62  ;;  %6405 = vrcp.f32 %v7340_v3  ;;  %v7353_v24 = vpop.f32.mrf.mxu3  ;;  %vm7371_vm14 = vmor %vm2963_vm13, %vm2964_vm12  ;;  %v2982_v60 = vand.u32 2147483647, %v7340_v3  ;;  %v2984_v54 = vand.u32 2147483648, %v7340_v3 }
 0x117   : > { %v4519_v20 = vsub.f32 %v2956_v15, %v7137_v46  ;;  %v2960_v21 = vsub.f32 1.0, %v2959_v7  ;;  %v2970_v59 = vor.u32 1.1754944e-38, %v2969_v51  ;;  %vm2978_vm1 = vweird.f32 %v7340_v3  ;;  %v5103_v7 = vld [vmem:[%s6936_s4 + $0x180] sm:$0xf] }
 0x118   : > { %v2112_v25 = vpop.f32.mrf.mxu2  ;;  %v1537_v38 = vpop.f32.mrf.mxu0  ;;  %v2985_v15 = vor.u32 1.1754944e-38, %v2984_v54  ;;  %vm2983_vm3 = vcmp.eq.f32.partialorder %v2982_v60, 8.507059e+37 }
 0x119   : > { %v6007_v32 = vpack.c.bf16 %v4519_v20, %v4518_v19  ;;  %v2961_v33 = vmul.f32 %v7337_v61, %v2960_v21  ;;  %v2113_v36 = vadd.f32 %v2112_v25, %v1824_v22  ;;  %v1538_v13 = vadd.f32 %v7041_v58, %v1537_v38  ;;  %v1826_v41 = vpop.f32.mrf.mxu1  ;;  %v5105_v19 = vld [vmem:[%s6936_s4 + $0x18c] sm:$0xf0]  ;;  %v5111_v25 = vld [vmem:[%s6936_s4 + $0x188] sm:$0xf] }
 0x11a   : > { %v5441_v21 = vld [vmem:[%s6936_s4 + $0x42c] sm:$0xf0] }
 0x11b   : > { %v6404_v42 = vpop.eup %6403  ;;  %6267 = vst [vmem:[%s7165_s22 + $0x20] sm:$0xff] %v6007_v32   ;;  %v5690_v43 = vmul.f32 -1.442695, %v2113_v36  ;;  %1576 = vmatmul.bf16.gmra.mxu0 %v5092_v23  ;;  %2005 = vmatmul.bf16.gmra.mxu3 %v5432_v30  ;;  %v2962_v48 = vadd.f32 %v7337_v61, %v2961_v33  ;;  %v1827_v50 = vadd.f32 %v1826_v41, %v1538_v13  ;;  %v5842_v23 = vld [vmem:[%s6936_s4 + $0x190] sm:$0xf0] }
 0x11c   : > { %v6406_v27 = vpop.eup %6405  ;;  %v7359_v47 = vadd.f32 1.0, %v6404_v42  ;;  %1865 = vmatmul.bf16.gmra.mxu1 %v5096_v28  ;;  %v5108_v13 = vor.u32 %v5840_v18, %v5105_v19 }
 0x11d   : > { %v2974_v49 = vmul.f32 %v6406_v27, %v7340_v3  ;;  %6407 = vpow2.f32 %v5690_v43  ;;  %2154 = vmatmul.bf16.gmra.mxu2 %v5100_v26  ;;  %v2966_v39 = vsel %vm7371_vm14, %v7337_v61, %v2962_v48  ;;  %vm2979_vm15 = vweird.f32 %v6406_v27  ;;  %v5841_v61 = vld [vmem:[%s6936_s4 + $0x188] sm:$0xf0] }
 0x11e   : > { %6409 = vrcp.f32 %v7359_v47  ;;  %v7367_v53 = vpop.f32.mrf.mxu3  ;;  %v2971_v14 = vsel %vm2968_vm0, %v2970_v59, %v2966_v39  ;;  %vm2980_vm2 = vmor %vm2978_vm1, %vm2979_vm15  ;;  %v5104_v26 = vor.u32 %v5841_v61, %v5103_v7  ;;  %vm2993_vm5 = vweird.f32 %v7359_v47 }
 0x11f   : > { %v2975_v52 = vsub.f32 1.0, %v2974_v49  ;;  %v4520_v28 = vsub.f32 %v2971_v14, %v7137_v46  ;;  %v5112_v49 = vor.u32 %v5842_v23, %v5111_v25 }
 0x120   : > { %v2115_v56 = vpop.f32.mrf.mxu2  ;;  %v1539_v0 = vpop.f32.mrf.mxu0 }
 0x121   : > { %v2976_v57 = vmul.f32 %v6406_v27, %v2975_v52  ;;  %v2116_v63 = vadd.f32 %v2115_v56, %v1827_v50  ;;  %v1828_v1 = vpop.f32.mrf.mxu1  ;;  %v1540_v62 = vadd.f32 %v7041_v58, %v1539_v0  ;;  %v5924_v58 = vld [vmem:[%s6936_s4 + $0x424] sm:$0xf]  ;;  %v7406_v50 = vld [vmem:[%s9952_s2] ss:$0 sm:$0xff]  ;;  %v2999_v0 = vand.u32 2147483648, %v7359_v47 }
 0x122   : > { %v5444_v41 = vor.u32 %v5924_v58, %v5441_v21  ;;  %v5115_v21 = vld [vmem:[%s6936_s4 + $0x198] sm:$0xf] }
 0x123   : > { %v6408_v2 = vpop.eup %6407  ;;  %v2977_v4 = vadd.f32 %v6406_v27, %v2976_v57  ;;  %v5691_v5 = vmul.f32 -1.442695, %v2116_v63  ;;  %v1829_v33 = vadd.f32 %v1828_v1, %v1540_v62  ;;  %v2997_v63 = vand.u32 2147483647, %v7359_v47 }
 0x124   : > { %v7384_v10 = vpop.eup %6409  ;;  %v7387_v16 = vadd.f32 1.0, %v6408_v2 }
 0x125   : > { %v2981_v3 = vsel %vm2980_vm2, %v6406_v27, %v2977_v4  ;;  %v2989_v20 = vmul.f32 %v7384_v10, %v7359_v47  ;;  %6411 = vpow2.f32 %v5691_v5  ;;  %vm2994_vm4 = vweird.f32 %v7384_v10 }
 0x126   : > { %v2986_v22 = vsel %vm2983_vm3, %v2985_v15, %v2981_v3  ;;  %6413 = vrcp.f32 %v7387_v16  ;;  %v7400_v36 = vpop.f32.mrf.mxu3  ;;  %vm7423_vm6 = vmor %vm2993_vm5, %vm2994_vm4  ;;  %v3012_v4 = vand.u32 2147483647, %v7387_v16  ;;  %v3014_v5 = vand.u32 2147483648, %v7387_v16 }
 0x127   : > { %v4521_v30 = vsub.f32 %v2986_v22, %v7137_v46  ;;  %v2990_v32 = vsub.f32 1.0, %v2989_v20  ;;  %vm2998_vm8 = vcmp.eq.f32.partialorder %v2997_v63, 8.507059e+37  ;;  %v3000_v15 = vor.u32 1.1754944e-38, %v2999_v0 }
 0x128   : > { %v2117_v38 = vpop.f32.mrf.mxu2  ;;  %v1542_v48 = vpop.f32.mrf.mxu0  ;;  %vm3008_vm9 = vweird.f32 %v7387_v16  ;;  %v3015_v23 = vor.u32 1.1754944e-38, %v3014_v5  ;;  %vm3013_vm11 = vcmp.eq.f32.partialorder %v3012_v4, 8.507059e+37 }
 0x129   : > { %v6012_v42 = vpack.c.bf16 %v4521_v30, %v4520_v28  ;;  %v2991_v43 = vmul.f32 %v7384_v10, %v2990_v32  ;;  %v2118_v27 = vadd.f32 %v2117_v38, %v1829_v33  ;;  %v1543_v31 = vadd.f32 %v7406_v50, %v1542_v48  ;;  %v1831_v51 = vpop.f32.mrf.mxu1  ;;  %v5843_v30 = vld [vmem:[%s6936_s4 + $0x19c] sm:$0xf]  ;;  %v5117_v32 = vld [vmem:[%s6936_s4 + $0x1a4] sm:$0xf0] }
 0x12a   : > { %v5927_v38 = vld [vmem:[%s6936_s4 + $0x43c] sm:$0xf] }
 0x12b   : > { %v6412_v52 = vpop.eup %6411  ;;  %6268 = vst [vmem:[%s7165_s22 + $0x28] sm:$0xff] %v6012_v42   ;;  %v5692_v55 = vmul.f32 -1.442695, %v2118_v27  ;;  %1581 = vmatmul.bf16.gmra.mxu0 %v5104_v26  ;;  %2010 = vmatmul.bf16.gmra.mxu3 %v5444_v41  ;;  %v2992_v56 = vadd.f32 %v7384_v10, %v2991_v43  ;;  %v1832_v57 = vadd.f32 %v1831_v51, %v1543_v31  ;;  %v5453_v26 = vld [vmem:[%s6936_s4 + $0x444] sm:$0xf0] }
 0x12c   : > { %v6414_v60 = vpop.eup %6413  ;;  %v7411_v54 = vadd.f32 1.0, %v6412_v52  ;;  %1870 = vmatmul.bf16.gmra.mxu1 %v5108_v13  ;;  %v5123_v41 = vld [vmem:[%s6936_s4 + $0x1a0] sm:$0xf]  ;;  %v5845_v42 = vld [vmem:[%s6936_s4 + $0x1a8] sm:$0xf0] }
 0x12d   : > { %v3004_v39 = vmul.f32 %v6414_v60, %v7387_v16  ;;  %6415 = vpow2.f32 %v5692_v55  ;;  %2159 = vmatmul.bf16.gmra.mxu2 %v5112_v49  ;;  %v2996_v47 = vsel %vm7423_vm6, %v7384_v10, %v2992_v56  ;;  %vm3009_vm7 = vweird.f32 %v6414_v60  ;;  %v5844_v10 = vld [vmem:[%s6936_s4 + $0x1a0] sm:$0xf0] }
 0x12e   : > { %6417 = vrcp.f32 %v7411_v54  ;;  %v7419_v1 = vpop.f32.mrf.mxu3  ;;  %v3001_v25 = vsel %vm2998_vm8, %v3000_v15, %v2996_v47  ;;  %vm3010_vm10 = vmor %vm3008_vm9, %vm3009_vm7  ;;  %v5116_v52 = vor.u32 %v5844_v10, %v5115_v21  ;;  %v5120_v55 = vor.u32 %v5843_v30, %v5117_v32 }
 0x12f   : > { %v3005_v59 = vsub.f32 1.0, %v3004_v39  ;;  %v4522_v43 = vsub.f32 %v3001_v25, %v7137_v46  ;;  %v5124_v0 = vor.u32 %v5845_v42, %v5123_v41  ;;  %v3027_v15 = vand.u32 2147483647, %v7411_v54  ;;  %v5127_v41 = vld [vmem:[%s6936_s4 + $0x1b0] sm:$0xf] }
 0x130   : > { %v2120_v62 = vpop.f32.mrf.mxu2  ;;  %v1544_v14 = vpop.f32.mrf.mxu0  ;;  %vm3023_vm13 = vweird.f32 %v7411_v54 }
 0x131   : > { %v3006_v7 = vmul.f32 %v6414_v60, %v3005_v59  ;;  %v2121_v61 = vadd.f32 %v2120_v62, %v1832_v57  ;;  %v1833_v18 = vpop.f32.mrf.mxu1  ;;  %v1545_v58 = vadd.f32 %v7406_v50, %v1544_v14  ;;  %vm3028_vm0 = vcmp.eq.f32.partialorder %v3027_v15, 8.507059e+37 }
 0x133   : > { %v6416_v19 = vpop.eup %6415  ;;  %v3007_v3 = vadd.f32 %v6414_v60, %v3006_v7  ;;  %v5693_v20 = vmul.f32 -1.442695, %v2121_v61  ;;  %v1834_v49 = vadd.f32 %v1833_v18, %v1545_v58  ;;  %v3029_v18 = vand.u32 2147483648, %v7411_v54 }
 0x134   : > { %v7436_v22 = vpop.eup %6417  ;;  %v7439_v28 = vadd.f32 1.0, %v6416_v19 }
 0x135   : > { %v3011_v16 = vsel %vm3010_vm10, %v6414_v60, %v3007_v3  ;;  %v3019_v33 = vmul.f32 %v7436_v22, %v7411_v54  ;;  %6419 = vpow2.f32 %v5693_v20  ;;  %v5456_v60 = vor.u32 %v5927_v38, %v5453_v26 }
 0x136   : > { %v3016_v13 = vsel %vm3013_vm11, %v3015_v23, %v3011_v16  ;;  %6421 = vrcp.f32 %v7439_v28  ;;  %v7452_v31 = vpop.f32.mrf.mxu3  ;;  %vm3024_vm12 = vweird.f32 %v7436_v22  ;;  %v3042_v58 = vand.u32 2147483647, %v7439_v28 }
 0x137   : > { %v4523_v27 = vsub.f32 %v3016_v13, %v7137_v46  ;;  %v3020_v48 = vsub.f32 1.0, %v3019_v33  ;;  %vm7470_vm14 = vmor %vm3023_vm13, %vm3024_vm12  ;;  %v3044_v21 = vand.u32 2147483648, %v7439_v28  ;;  %v3030_v32 = vor.u32 1.1754944e-38, %v3029_v18 }
 0x138   : > { %v2122_v51 = vpop.f32.mrf.mxu2  ;;  %v1547_v63 = vpop.f32.mrf.mxu0  ;;  %vm3038_vm1 = vweird.f32 %v7439_v28  ;;  %vm3043_vm3 = vcmp.eq.f32.partialorder %v3042_v58, 8.507059e+37 }
 0x139   : > { %v6017_v56 = vpack.c.bf16 %v4523_v27, %v4522_v43  ;;  %v3021_v39 = vmul.f32 %v7436_v22, %v3020_v48  ;;  %v2123_v57 = vadd.f32 %v2122_v51, %v1834_v49  ;;  %v1548_v59 = vadd.f32 %v7406_v50, %v1547_v63  ;;  %v1836_v2 = vpop.f32.mrf.mxu1  ;;  %v5846_v49 = vld [vmem:[%s6936_s4 + $0x1b4] sm:$0xf]  ;;  %v5129_v51 = vld [vmem:[%s6936_s4 + $0x1bc] sm:$0xf0] }
 0x13a   : > { %v3045_v27 = vor.u32 1.1754944e-38, %v3044_v21 }
 0x13b   : > { %v6420_v4 = vpop.eup %6419  ;;  %6269 = vst [vmem:[%s7165_s22 + $0x30] sm:$0xff] %v6017_v56   ;;  %v5694_v5 = vmul.f32 -1.442695, %v2123_v57  ;;  %1586 = vmatmul.bf16.gmra.mxu0 %v5116_v52  ;;  %2015 = vmatmul.bf16.gmra.mxu3 %v5456_v60  ;;  %v3022_v7 = vadd.f32 %v7436_v22, %v3021_v39  ;;  %v1837_v14 = vadd.f32 %v1836_v2, %v1548_v59  ;;  %v5465_v60 = vld [vmem:[%s6936_s4 + $0x45c] sm:$0xf0] }
 0x13c   : > { %v6422_v62 = vpop.eup %6421  ;;  %v7458_v47 = vadd.f32 1.0, %v6420_v4  ;;  %1875 = vmatmul.bf16.gmra.mxu1 %v5120_v55  ;;  %v5930_v55 = vld [vmem:[%s6936_s4 + $0x454] sm:$0xf]  ;;  %v5135_v39 = vld [vmem:[%s6936_s4 + $0x1b8] sm:$0xf] }
 0x13d   : > { %v3034_v61 = vmul.f32 %v6422_v62, %v7439_v28  ;;  %6423 = vpow2.f32 %v5694_v5  ;;  %2164 = vmatmul.bf16.gmra.mxu2 %v5124_v0  ;;  %v3026_v54 = vsel %vm7470_vm14, %v7436_v22, %v3022_v7  ;;  %vm3039_vm15 = vweird.f32 %v6422_v62  ;;  %v5847_v22 = vld [vmem:[%s6936_s4 + $0x1b8] sm:$0xf0]  ;;  %v5848_v57 = vld [vmem:[%s6936_s4 + $0x1c0] sm:$0xf0] }
 0x13e   : > { %6425 = vrcp.f32 %v7458_v47  ;;  %v7466_v3 = vpop.f32.mrf.mxu3  ;;  %v3031_v43 = vsel %vm3028_vm0, %v3030_v32, %v3026_v54  ;;  %vm3040_vm2 = vmor %vm3038_vm1, %vm3039_vm15  ;;  %v5132_v7 = vor.u32 %v5846_v49, %v5129_v51  ;;  %v5136_v20 = vor.u32 %v5848_v57, %v5135_v39 }
 0x13f   : > { %v3035_v19 = vsub.f32 1.0, %v3034_v61  ;;  %v4524_v63 = vsub.f32 %v3031_v43, %v7137_v46  ;;  %v5468_v61 = vor.u32 %v5930_v55, %v5465_v60  ;;  %vm3053_vm5 = vweird.f32 %v7458_v47 }
 0x140   : > { %v2125_v10 = vpop.f32.mrf.mxu2  ;;  %v1549_v30 = vpop.f32.mrf.mxu0 }
 0x141   : > { %v3036_v25 = vmul.f32 %v6422_v62, %v3035_v19  ;;  %v2126_v23 = vadd.f32 %v2125_v10, %v1837_v14  ;;  %v1838_v16 = vpop.f32.mrf.mxu1  ;;  %v1550_v13 = vadd.f32 %v7406_v50, %v1549_v30 }
 0x143   : > { %v6424_v33 = vpop.eup %6423  ;;  %v3037_v38 = vadd.f32 %v6422_v62, %v3036_v25  ;;  %v5695_v26 = vmul.f32 -1.442695, %v2126_v23  ;;  %v1839_v2 = vadd.f32 %v1838_v16, %v1550_v13 }
 0x144   : > { %v7483_v42 = vpop.eup %6425  ;;  %v7486_v48 = vadd.f32 1.0, %v6424_v33  ;;  %v3057_v33 = vand.u32 2147483647, %v7458_v47 }
 0x145   : > { %v3041_v28 = vsel %vm3040_vm2, %v6422_v62, %v3037_v38  ;;  %v3049_v52 = vmul.f32 %v7483_v42, %v7458_v47  ;;  %6427 = vpow2.f32 %v5695_v26  ;;  %v5128_v62 = vor.u32 %v5847_v22, %v5127_v41 }
 0x146   : > { %v3046_v56 = vsel %vm3043_vm3, %v3045_v27, %v3041_v28  ;;  %6429 = vrcp.f32 %v7486_v48  ;;  %v7499_v4 = vpop.f32.mrf.mxu3  ;;  %vm3054_vm4 = vweird.f32 %v7483_v42  ;;  %v3059_v38 = vand.u32 2147483648, %v7458_v47 }
 0x147   : > { %v4525_v0 = vsub.f32 %v3046_v56, %v7137_v46  ;;  %v3050_v59 = vsub.f32 1.0, %v3049_v52  ;;  %vm7517_vm6 = vmor %vm3053_vm5, %vm3054_vm4  ;;  %v3072_v22 = vand.u32 2147483647, %v7486_v48  ;;  %v3074_v43 = vand.u32 2147483648, %v7486_v48 }
 0x148   : > { %v2127_v5 = vpop.f32.mrf.mxu2  ;;  %v1552_v19 = vpop.f32.mrf.mxu0  ;;  %vm3058_vm8 = vcmp.eq.f32.partialorder %v3057_v33, 8.507059e+37  ;;  %v3060_v52 = vor.u32 1.1754944e-38, %v3059_v38  ;;  %vm3068_vm9 = vweird.f32 %v7486_v48 }
 0x149   : > { %v6022_v14 = vpack.c.bf16 %v4525_v0, %v4524_v63  ;;  %v3051_v15 = vmul.f32 %v7483_v42, %v3050_v59  ;;  %v2128_v18 = vadd.f32 %v2127_v5, %v1839_v2  ;;  %v1553_v58 = vadd.f32 %v7406_v50, %v1552_v19  ;;  %v1841_v21 = vpop.f32.mrf.mxu1  ;;  %v5139_v63 = vld [vmem:[%s6936_s4 + $0x1c8] sm:$0xf]  ;;  %v5147_v19 = vld [vmem:[%s6936_s4 + $0x1d0] sm:$0xf] }
 0x14a   : > { %v3075_v2 = vor.u32 1.1754944e-38, %v3074_v43  ;;  %vm3073_vm11 = vcmp.eq.f32.partialorder %v3072_v22, 8.507059e+37 }
 0x14b   : > { %v6428_v10 = vpop.eup %6427  ;;  %6270 = vst [vmem:[%s7165_s22 + $0x38] sm:$0xff] %v6022_v14   ;;  %v5696_v54 = vmul.f32 -1.442695, %v2128_v18  ;;  %1591 = vmatmul.bf16.gmra.mxu0 %v5128_v62  ;;  %2020 = vmatmul.bf16.gmra.mxu3 %v5468_v61  ;;  %v3052_v30 = vadd.f32 %v7483_v42, %v3051_v15  ;;  %v1842_v16 = vadd.f32 %v1841_v21, %v1553_v58  ;;  %v5849_v62 = vld [vmem:[%s6936_s4 + $0x1cc] sm:$0xf] }
 0x14c   : > { %v6430_v25 = vpop.eup %6429  ;;  %v7505_v23 = vadd.f32 1.0, %v6428_v10  ;;  %1880 = vmatmul.bf16.gmra.mxu1 %v5132_v7  ;;  %v5141_v7 = vld [vmem:[%s6936_s4 + $0x1d4] sm:$0xf0]  ;;  %v5933_v14 = vld [vmem:[%s6936_s4 + $0x46c] sm:$0xf] }
 0x14d   : > { %v3064_v32 = vmul.f32 %v6430_v25, %v7486_v48  ;;  %6431 = vpow2.f32 %v5696_v54  ;;  %2169 = vmatmul.bf16.gmra.mxu2 %v5136_v20  ;;  %v3056_v47 = vsel %vm7517_vm6, %v7483_v42, %v3052_v30  ;;  %vm3069_vm7 = vweird.f32 %v6430_v25  ;;  %v5850_v42 = vld [vmem:[%s6936_s4 + $0x1d0] sm:$0xf0]  ;;  %v5477_v15 = vld [vmem:[%s6936_s4 + $0x474] sm:$0xf0]  ;;  %v5851_v20 = vld [vmem:[%s6936_s4 + $0x1d8] sm:$0xf0] }
 0x14e   : > { %6433 = vrcp.f32 %v7505_v23  ;;  %v7513_v13 = vpop.f32.mrf.mxu3  ;;  %v3061_v59 = vsel %vm3058_vm8, %v3060_v52, %v3056_v47  ;;  %vm3070_vm10 = vmor %vm3068_vm9, %vm3069_vm7  ;;  %v5480_v33 = vor.u32 %v5933_v14, %v5477_v15  ;;  %v5148_v43 = vor.u32 %v5851_v20, %v5147_v19 }
 0x14f   : > { %v3065_v26 = vsub.f32 1.0, %v3064_v32  ;;  %v4526_v58 = vsub.f32 %v3061_v59, %v7137_v46  ;;  %v5140_v32 = vor.u32 %v5850_v42, %v5139_v63  ;;  %vm3083_vm13 = vweird.f32 %v7505_v23 }
 0x150   : > { %v2130_v27 = vpop.f32.mrf.mxu2  ;;  %v1554_v28 = vpop.f32.mrf.mxu0 }
 0x151   : > { %v3066_v49 = vmul.f32 %v6430_v25, %v3065_v26  ;;  %v2131_v51 = vadd.f32 %v2130_v27, %v1842_v16  ;;  %v1843_v55 = vpop.f32.mrf.mxu1  ;;  %v1555_v57 = vadd.f32 %v7406_v50, %v1554_v28  ;;  %v5144_v16 = vor.u32 %v5849_v62, %v5141_v7 }
 0x153   : > { %v6432_v60 = vpop.eup %6431  ;;  %v3067_v56 = vadd.f32 %v6430_v25, %v3066_v49  ;;  %v5697_v39 = vmul.f32 -1.442695, %v2131_v51  ;;  %v1844_v54 = vadd.f32 %v1843_v55, %v1555_v57  ;;  %v3089_v57 = vand.u32 2147483648, %v7505_v23 }
 0x154   : > { %v7530_v0 = vpop.eup %6433  ;;  %v7533_v5 = vadd.f32 1.0, %v6432_v60 }
 0x155   : > { %v3071_v48 = vsel %vm3070_vm10, %v6430_v25, %v3067_v56  ;;  %v3079_v61 = vmul.f32 %v7530_v0, %v7505_v23  ;;  %6435 = vpow2.f32 %v5697_v39  ;;  %vm3084_vm12 = vweird.f32 %v7530_v0 }
 0x156   : > { %v3076_v18 = vsel %vm3073_vm11, %v3075_v2, %v3071_v48  ;;  %6437 = vrcp.f32 %v7533_v5  ;;  %v7546_v25 = vpop.f32.mrf.mxu3  ;;  %v3087_v39 = vand.u32 2147483647, %v7505_v23  ;;  %vm7564_vm14 = vmor %vm3083_vm13, %vm3084_vm12  ;;  %v3102_v2 = vand.u32 2147483647, %v7533_v5 }
 0x157   : > { %v4527_v21 = vsub.f32 %v3076_v18, %v7137_v46  ;;  %v3080_v10 = vsub.f32 1.0, %v3079_v61  ;;  %v3104_v62 = vand.u32 2147483648, %v7533_v5  ;;  %v3090_v15 = vor.u32 1.1754944e-38, %v3089_v57 }
 0x158   : > { %v2132_v30 = vpop.f32.mrf.mxu2  ;;  %v1557_v22 = vpop.f32.mrf.mxu0  ;;  %vm3088_vm0 = vcmp.eq.f32.partialorder %v3087_v39, 8.507059e+37  ;;  %vm3098_vm1 = vweird.f32 %v7533_v5  ;;  %vm3103_vm3 = vcmp.eq.f32.partialorder %v3102_v2, 8.507059e+37 }
 0x159   : > { %v6027_v38 = vpack.c.bf16 %v4527_v21, %v4526_v58  ;;  %v3081_v26 = vmul.f32 %v7530_v0, %v3080_v10  ;;  %v2133_v41 = vadd.f32 %v2132_v30, %v1844_v54  ;;  %v1558_v27 = vadd.f32 %v7406_v50, %v1557_v22  ;;  %v1846_v47 = vpop.f32.mrf.mxu1  ;;  %v5151_v10 = vld [vmem:[%s6936_s4 + $0x1e0] sm:$0xf]  ;;  %v5489_v22 = vld [vmem:[%s6936_s4 + $0x48c] sm:$0xf0] }
 0x15b   : > { %v6436_v49 = vpop.eup %6435  ;;  %6271 = vst [vmem:[%s7165_s22 + $0x40] sm:$0xff] %v6027_v38   ;;  %v5698_v51 = vmul.f32 -1.442695, %v2133_v41  ;;  %1596 = vmatmul.bf16.gmra.mxu0 %v5140_v32  ;;  %2025 = vmatmul.bf16.gmra.mxu3 %v5480_v33  ;;  %v3082_v55 = vadd.f32 %v7530_v0, %v3081_v26  ;;  %v1847_v56 = vadd.f32 %v1846_v47, %v1558_v27  ;;  %v3105_v32 = vor.u32 1.1754944e-38, %v3104_v62  ;;  %v5852_v33 = vld [vmem:[%s6936_s4 + $0x1e4] sm:$0xf] }
 0x15c   : > { %v6438_v28 = vpop.eup %6437  ;;  %v7552_v52 = vadd.f32 1.0, %v6436_v49  ;;  %1885 = vmatmul.bf16.gmra.mxu1 %v5144_v16  ;;  %v5153_v38 = vld [vmem:[%s6936_s4 + $0x1ec] sm:$0xf0]  ;;  %v5936_v41 = vld [vmem:[%s6936_s4 + $0x484] sm:$0xf] }
 0x15d   : > { %v3094_v60 = vmul.f32 %v6438_v28, %v7533_v5  ;;  %6439 = vpow2.f32 %v5698_v51  ;;  %2174 = vmatmul.bf16.gmra.mxu2 %v5148_v43  ;;  %v3086_v23 = vsel %vm7564_vm14, %v7530_v0, %v3082_v55  ;;  %vm3099_vm15 = vweird.f32 %v6438_v28  ;;  %v5853_v0 = vld [vmem:[%s6936_s4 + $0x1e8] sm:$0xf0]  ;;  %v5159_v27 = vld [vmem:[%s6936_s4 + $0x1e8] sm:$0xf]  ;;  %v5854_v47 = vld [vmem:[%s6936_s4 + $0x1f0] sm:$0xf0] }
 0x15e   : > { %6441 = vrcp.f32 %v7552_v52  ;;  %v7560_v42 = vpop.f32.mrf.mxu3  ;;  %v3091_v30 = vsel %vm3088_vm0, %v3090_v15, %v3086_v23  ;;  %vm3100_vm2 = vmor %vm3098_vm1, %vm3099_vm15  ;;  %v5152_v39 = vor.u32 %v5853_v0, %v5151_v10  ;;  %v5156_v57 = vor.u32 %v5852_v33, %v5153_v38 }
 0x15f   : > { %v3095_v63 = vsub.f32 1.0, %v3094_v60  ;;  %v4528_v49 = vsub.f32 %v3091_v30, %v7137_v46  ;;  %v5160_v23 = vor.u32 %v5854_v47, %v5159_v27  ;;  %v3117_v10 = vand.u32 2147483647, %v7552_v52 }
 0x160   : > { %v2135_v7 = vpop.f32.mrf.mxu2  ;;  %v1559_v14 = vpop.f32.mrf.mxu0  ;;  %v3119_v0 = vand.u32 2147483648, %v7552_v52  ;;  %vm3113_vm5 = vweird.f32 %v7552_v52 }
 0x161   : > { %v3096_v48 = vmul.f32 %v6438_v28, %v3095_v63  ;;  %v2136_v61 = vadd.f32 %v2135_v7, %v1847_v56  ;;  %v1848_v18 = vpop.f32.mrf.mxu1  ;;  %v1560_v21 = vadd.f32 %v7406_v50, %v1559_v14  ;;  %v5492_v63 = vor.u32 %v5936_v41, %v5489_v22 }
 0x162   : > { %vm3118_vm8 = vcmp.eq.f32.partialorder %v3117_v10, 8.507059e+37  ;;  %v3120_v27 = vor.u32 1.1754944e-38, %v3119_v0 }
 0x163   : > { %v6440_v19 = vpop.eup %6439  ;;  %v3097_v20 = vadd.f32 %v6438_v28, %v3096_v48  ;;  %v5699_v58 = vmul.f32 -1.442695, %v2136_v61  ;;  %v1849_v60 = vadd.f32 %v1848_v18, %v1560_v21 }
 0x164   : > { %v7577_v54 = vpop.eup %6441  ;;  %v7580_v16 = vadd.f32 1.0, %v6440_v19 }
 0x165   : > { %v3101_v5 = vsel %vm3100_vm2, %v6438_v28, %v3097_v20  ;;  %v3109_v26 = vmul.f32 %v7577_v54, %v7552_v52  ;;  %6443 = vpow2.f32 %v5699_v58  ;;  %vm3114_vm4 = vweird.f32 %v7577_v54 }
 0x166   : > { %v3106_v43 = vsel %vm3103_vm3, %v3105_v32, %v3101_v5  ;;  %6445 = vrcp.f32 %v7580_v16  ;;  %v7593_v28 = vpop.f32.mrf.mxu3  ;;  %vm7611_vm6 = vmor %vm3113_vm5, %vm3114_vm4  ;;  %v3132_v38 = vand.u32 2147483647, %v7580_v16  ;;  %v3134_v5 = vand.u32 2147483648, %v7580_v16 }
 0x167   : > { %v4529_v51 = vsub.f32 %v3106_v43, %v7137_v46  ;;  %v3110_v55 = vsub.f32 1.0, %v3109_v26  ;;  %vm3128_vm9 = vweird.f32 %v7580_v16 }
 0x168   : > { %v2137_v56 = vpop.f32.mrf.mxu2  ;;  %v1562_v7 = vpop.f32.mrf.mxu0  ;;  %vm3133_vm11 = vcmp.eq.f32.partialorder %v3132_v38, 8.507059e+37 }
 0x169   : > { %v6032_v59 = vpack.c.bf16 %v4529_v51, %v4528_v49  ;;  %v3111_v2 = vmul.f32 %v7577_v54, %v3110_v55  ;;  %v2138_v62 = vadd.f32 %v2137_v56, %v1849_v60  ;;  %v1563_v48 = vadd.f32 %v7406_v50, %v1562_v7  ;;  %v1851_v61 = vpop.f32.mrf.mxu1  ;;  %v5163_v56 = vld [vmem:[%s6936_s4 + $0x1f8] sm:$0xf] }
 0x16b   : > { %v6444_v14 = vpop.eup %6443  ;;  %6272 = vst [vmem:[%s7165_s22 + $0x48] sm:$0xff] %v6032_v59   ;;  %v5700_v15 = vmul.f32 -1.442695, %v2138_v62  ;;  %1601 = vmatmul.bf16.gmra.mxu0 %v5152_v39  ;;  %2030 = vmatmul.bf16.gmra.mxu3 %v5492_v63  ;;  %v3112_v20 = vadd.f32 %v7577_v54, %v3111_v2  ;;  %v1852_v21 = vadd.f32 %v1851_v61, %v1563_v48  ;;  %v3135_v63 = vor.u32 1.1754944e-38, %v3134_v5  ;;  %v5855_v2 = vld [vmem:[%s6936_s4 + $0x1fc] sm:$0xf] }
 0x16c   : > { %v6446_v19 = vpop.eup %6445  ;;  %v7599_v18 = vadd.f32 1.0, %v6444_v14  ;;  %1890 = vmatmul.bf16.gmra.mxu1 %v5156_v57  ;;  %v5165_v62 = vld [vmem:[%s6936_s4 + $0x204] sm:$0xf0]  ;;  %v5171_v14 = vld [vmem:[%s6936_s4 + $0x200] sm:$0xf] }
 0x16d   : > { %v3124_v58 = vmul.f32 %v6446_v19, %v7580_v16  ;;  %6447 = vpow2.f32 %v5700_v15  ;;  %2179 = vmatmul.bf16.gmra.mxu2 %v5160_v23  ;;  %v3116_v52 = vsel %vm7611_vm6, %v7577_v54, %v3112_v20  ;;  %vm3129_vm7 = vweird.f32 %v6446_v19  ;;  %v5856_v54 = vld [vmem:[%s6936_s4 + $0x200] sm:$0xf0]  ;;  %v5939_v23 = vld [vmem:[%s6936_s4 + $0x49c] sm:$0xf]  ;;  %v5501_v48 = vld [vmem:[%s6936_s4 + $0x4a4] sm:$0xf0] }
 0x16e   : > { %6449 = vrcp.f32 %v7599_v18  ;;  %v7607_v32 = vpop.f32.mrf.mxu3  ;;  %v3121_v57 = vsel %vm3118_vm8, %v3120_v27, %v3116_v52  ;;  %vm3130_vm10 = vmor %vm3128_vm9, %vm3129_vm7  ;;  %v5857_v15 = vld [vmem:[%s6936_s4 + $0x208] sm:$0xf0]  ;;  %v5168_v33 = vor.u32 %v5855_v2, %v5165_v62  ;;  %v5504_v38 = vor.u32 %v5939_v23, %v5501_v48 }
 0x16f   : > { %v3125_v30 = vsub.f32 1.0, %v3124_v58  ;;  %v4530_v20 = vsub.f32 %v3121_v57, %v7137_v46  ;;  %v3147_v57 = vand.u32 2147483647, %v7599_v18  ;;  %vm3143_vm13 = vweird.f32 %v7599_v18 }
 0x170   : > { %v2140_v26 = vpop.f32.mrf.mxu2  ;;  %v1564_v43 = vpop.f32.mrf.mxu0 }
 0x171   : > { %v3126_v41 = vmul.f32 %v6446_v19, %v3125_v30  ;;  %v2141_v22 = vadd.f32 %v2140_v26, %v1852_v21  ;;  %v1853_v47 = vpop.f32.mrf.mxu1  ;;  %v1565_v60 = vadd.f32 %v7406_v50, %v1564_v43  ;;  %v5164_v30 = vor.u32 %v5856_v54, %v5163_v56 }
 0x172   : > { %vm3148_vm0 = vcmp.eq.f32.partialorder %v3147_v57, 8.507059e+37 }
 0x173   : > { %v6448_v49 = vpop.eup %6447  ;;  %v3127_v51 = vadd.f32 %v6446_v19, %v3126_v41  ;;  %v5701_v55 = vmul.f32 -1.442695, %v2141_v22  ;;  %v1854_v10 = vadd.f32 %v1853_v47, %v1565_v60  ;;  %v5172_v22 = vor.u32 %v5857_v15, %v5171_v14 }
 0x174   : > { %v7624_v39 = vpop.eup %6449  ;;  %v7627_v59 = vadd.f32 1.0, %v6448_v49 }
 0x175   : > { %v3131_v16 = vsel %vm3130_vm10, %v6446_v19, %v3127_v51  ;;  %v3139_v7 = vmul.f32 %v7624_v39, %v7599_v18  ;;  %6451 = vpow2.f32 %v5701_v55  ;;  %vm3144_vm12 = vweird.f32 %v7624_v39 }
 0x176   : > { %v3136_v61 = vsel %vm3133_vm11, %v3135_v63, %v3131_v16  ;;  %6453 = vrcp.f32 %v7627_v59  ;;  %v7640_v19 = vpop.f32.mrf.mxu3  ;;  %v3149_v63 = vand.u32 2147483648, %v7599_v18  ;;  %vm7658_vm14 = vmor %vm3143_vm13, %vm3144_vm12  ;;  %v3164_v23 = vand.u32 2147483648, %v7627_v59 }
 0x177   : > { %v4531_v58 = vsub.f32 %v3136_v61, %v7137_v46  ;;  %v3140_v21 = vsub.f32 1.0, %v3139_v7  ;;  %v3162_v7 = vand.u32 2147483647, %v7627_v59  ;;  %vm3158_vm1 = vweird.f32 %v7627_v59 }
 0x178   : > { %v2142_v0 = vpop.f32.mrf.mxu2  ;;  %v1567_v41 = vpop.f32.mrf.mxu0 }
 0x179   : > { %v6037_v5 = vpack.c.bf16 %v4531_v58, %v4530_v20  ;;  %v3141_v26 = vmul.f32 %v7624_v39, %v3140_v21  ;;  %v2143_v52 = vadd.f32 %v2142_v0, %v1854_v10  ;;  %v1568_v43 = vadd.f32 %v7406_v50, %v1567_v41  ;;  %v1856_v27 = vpop.f32.mrf.mxu1  ;;  %v5858_v41 = vld [vmem:[%s6936_s4 + $0x214] sm:$0xf] }
 0x17a   : > { %v3150_v20 = vor.u32 1.1754944e-38, %v3149_v63  ;;  %vm3163_vm3 = vcmp.eq.f32.partialorder %v3162_v7, 8.507059e+37 }
 0x17b   : > { %v6452_v49 = vpop.eup %6451  ;;  %6273 = vst [vmem:[%s7165_s22 + $0x50] sm:$0xff] %v6037_v5   ;;  %v5702_v51 = vmul.f32 -1.442695, %v2143_v52  ;;  %1606 = vmatmul.bf16.gmra.mxu0 %v5164_v30  ;;  %2035 = vmatmul.bf16.gmra.mxu3 %v5504_v38  ;;  %v3142_v60 = vadd.f32 %v7624_v39, %v3141_v26  ;;  %v1857_v54 = vadd.f32 %v1856_v27, %v1568_v43  ;;  %v3165_v26 = vor.u32 1.1754944e-38, %v3164_v23  ;;  %v5942_v27 = vld [vmem:[%s6936_s4 + $0x4b4] sm:$0xf] }
 0x17c   : > { %v6454_v55 = vpop.eup %6453  ;;  %v7646_v47 = vadd.f32 1.0, %v6452_v49  ;;  %1895 = vmatmul.bf16.gmra.mxu1 %v5168_v33  ;;  %v5175_v33 = vld [vmem:[%s6936_s4 + $0x210] sm:$0xf]  ;;  %v5513_v49 = vld [vmem:[%s6936_s4 + $0x4bc] sm:$0xf0] }
 0x17d   : > { %v3154_v56 = vmul.f32 %v6454_v55, %v7627_v59  ;;  %6455 = vpow2.f32 %v5702_v51  ;;  %2184 = vmatmul.bf16.gmra.mxu2 %v5172_v22  ;;  %v3146_v18 = vsel %vm7658_vm14, %v7624_v39, %v3142_v60  ;;  %vm3159_vm15 = vweird.f32 %v6454_v55  ;;  %v5859_v39 = vld [vmem:[%s6936_s4 + $0x218] sm:$0xf0]  ;;  %v5177_v22 = vld [vmem:[%s6936_s4 + $0x21c] sm:$0xf0]  ;;  %v5183_v60 = vld [vmem:[%s6936_s4 + $0x218] sm:$0xf] }
 0x17e   : > { %6457 = vrcp.f32 %v7646_v47  ;;  %v7654_v62 = vpop.f32.mrf.mxu3  ;;  %v3151_v5 = vsel %vm3148_vm0, %v3150_v20, %v3146_v18  ;;  %vm3160_vm2 = vmor %vm3158_vm1, %vm3159_vm15  ;;  %v5176_v7 = vor.u32 %v5859_v39, %v5175_v33  ;;  %v5180_v23 = vor.u32 %v5858_v41, %v5177_v22 }
 0x17f   : > { %v3155_v2 = vsub.f32 1.0, %v3154_v56  ;;  %v5860_v56 = vld [vmem:[%s6936_s4 + $0x220] sm:$0xf0]  ;;  %v1713_v41 = vadd.f32 %v7406_v50, %v7052_v12  ;;  %v3177_v22 = vand.u32 2147483647, %v7646_v47  ;;  %vm3173_vm5 = vweird.f32 %v7646_v47 }
 0x180   : > { %v2145_v48 = vpop.f32.mrf.mxu2  ;;  %v1569_v15 = vpop.f32.mrf.mxu0  ;;  %v5184_v20 = vor.u32 %v5860_v56, %v5183_v60 }
 0x181   : > { %v3156_v61 = vmul.f32 %v6454_v55, %v3155_v2  ;;  %v2146_v14 = vadd.f32 %v2145_v48, %v1857_v54  ;;  %v1858_v58 = vpop.f32.mrf.mxu1  ;;  %v1570_v30 = vadd.f32 %v7406_v50, %v1569_v15  ;;  %v4532_v54 = vsub.f32 %v3151_v5, %v7137_v46 }
 0x182   : > { %v5516_v48 = vor.u32 %v5942_v27, %v5513_v49  ;;  %vm3178_vm8 = vcmp.eq.f32.partialorder %v3177_v22, 8.507059e+37  ;;  %v5195_v22 = vld [vmem:[%s6936_s4 + $0x230] sm:$0xf] }
 0x183   : > { %v6456_v21 = vpop.eup %6455  ;;  %v3157_v10 = vadd.f32 %v6454_v55, %v3156_v61  ;;  %v5703_v0 = vmul.f32 -1.442695, %v2146_v14  ;;  %v1859_v2 = vadd.f32 %v1858_v58, %v1570_v30 }
 0x184   : > { %v7671_v38 = vpop.eup %6457  ;;  %v7674_v52 = vadd.f32 1.0, %v6456_v21 }
 0x185   : > { %v3161_v59 = vsel %vm3160_vm2, %v6454_v55, %v3157_v10  ;;  %v3169_v43 = vmul.f32 %v7671_v38, %v7646_v47  ;;  %6459 = vpow2.f32 %v5703_v0  ;;  %vm3174_vm4 = vweird.f32 %v7671_v38 }
 0x186   : > { %v3166_v51 = vsel %vm3163_vm3, %v3165_v26, %v3161_v59  ;;  %6461 = vrcp.f32 %v7674_v52  ;;  %v7687_v55 = vpop.f32.mrf.mxu3  ;;  %v3179_v59 = vand.u32 2147483648, %v7646_v47  ;;  %vm7705_vm6 = vmor %vm3173_vm5, %vm3174_vm4  ;;  %v3194_v12 = vand.u32 2147483648, %v7674_v52 }
 0x187   : > { %v4533_v57 = vsub.f32 %v3166_v51, %v7137_v46  ;;  %v3170_v63 = vsub.f32 1.0, %v3169_v43  ;;  %v3192_v51 = vand.u32 2147483647, %v7674_v52  ;;  %vm3188_vm9 = vweird.f32 %v7674_v52 }
 0x188   : > { %v2147_v16 = vpop.f32.mrf.mxu2  ;;  %v1572_v15 = vpop.f32.mrf.mxu0 }
 0x189   : > { %v6042_v18 = vpack.c.bf16 %v4533_v57, %v4532_v54  ;;  %v3171_v61 = vmul.f32 %v7671_v38, %v3170_v63  ;;  %v2148_v14 = vadd.f32 %v2147_v16, %v1859_v2  ;;  %v1573_v21 = vadd.f32 %v7406_v50, %v1572_v15  ;;  %v1861_v10 = vpop.f32.mrf.mxu1 }
 0x18a   : > { %v3180_v2 = vor.u32 1.1754944e-38, %v3179_v59  ;;  %vm3193_vm11 = vcmp.eq.f32.partialorder %v3192_v51, 8.507059e+37  ;;  %v5863_v59 = vld [vmem:[%s6936_s4 + $0x238] sm:$0xf0] }
 0x18b   : > { %v6460_v0 = vpop.eup %6459  ;;  %6274 = vst [vmem:[%s7165_s22 + $0x58] sm:$0xff] %v6042_v18   ;;  %v5704_v5 = vmul.f32 -1.442695, %v2148_v14  ;;  %1611 = vmatmul.bf16.gmra.mxu0 %v5176_v7  ;;  %2040 = vmatmul.bf16.gmra.mxu3 %v5516_v48  ;;  %v3172_v30 = vadd.f32 %v7671_v38, %v3171_v61  ;;  %v1862_v39 = vadd.f32 %v1861_v10, %v1573_v21  ;;  %v5187_v61 = vld [vmem:[%s6936_s4 + $0x228] sm:$0xf] }
 0x18c   : > { %v6462_v26 = vpop.eup %6461  ;;  %v7693_v58 = vadd.f32 1.0, %v6460_v0  ;;  %1900 = vmatmul.bf16.gmra.mxu1 %v5180_v23  ;;  %v5861_v10 = vld [vmem:[%s6936_s4 + $0x22c] sm:$0xf]  ;;  %v5189_v0 = vld [vmem:[%s6936_s4 + $0x234] sm:$0xf0] }
 0x18d   : > { %v3184_v33 = vmul.f32 %v6462_v26, %v7674_v52  ;;  %6463 = vpow2.f32 %v5704_v5  ;;  %2189 = vmatmul.bf16.gmra.mxu2 %v5184_v20  ;;  %v3176_v47 = vsel %vm7705_vm6, %v7671_v38, %v3172_v30  ;;  %vm3189_vm7 = vweird.f32 %v6462_v26  ;;  %v5862_v38 = vld [vmem:[%s6936_s4 + $0x230] sm:$0xf0]  ;;  %v5945_v30 = vld [vmem:[%s6936_s4 + $0x4cc] sm:$0xf] }
 0x18e   : > { %6465 = vrcp.f32 %v7693_v58  ;;  %v2001_v27 = vpop.f32.mrf.mxu3  ;;  %v3181_v15 = vsel %vm3178_vm8, %v3180_v2, %v3176_v47  ;;  %vm3190_vm10 = vmor %vm3188_vm9, %vm3189_vm7  ;;  %v3195_v20 = vor.u32 1.1754944e-38, %v3194_v12  ;;  %v5188_v47 = vor.u32 %v5862_v38, %v5187_v61 }
 0x18f   : > { %v3185_v43 = vsub.f32 1.0, %v3184_v33  ;;  %v7711_v60 = vadd.f32 %v2001_v27, %v1713_v41  ;;  %v5525_v33 = vld [vmem:[%s6936_s4 + $0x4d4] sm:$0xf0]  ;;  %vm3203_vm13 = vweird.f32 %v7693_v58 }
 0x190   : > { %v2150_v56 = vpop.f32.mrf.mxu2  ;;  %v1574_v63 = vpop.f32.mrf.mxu0 }
 0x191   : > { %v3186_v54 = vmul.f32 %v6462_v26, %v3185_v43  ;;  %v2151_v57 = vadd.f32 %v2150_v56, %v1862_v39  ;;  %v1863_v16 = vpop.f32.mrf.mxu1  ;;  %v1575_v18 = vadd.f32 %v7406_v50, %v1574_v63  ;;  %v1715_v39 = vadd.f32 %v7406_v50, %v7066_v29 }
 0x192   : > { %v4534_v43 = vsub.f32 %v3181_v15, %v7137_v46 }
 0x193   : > { %v6464_v7 = vpop.eup %6463  ;;  %v3187_v23 = vadd.f32 %v6462_v26, %v3186_v54  ;;  %v5705_v48 = vmul.f32 -1.442695, %v2151_v57  ;;  %v1864_v49 = vadd.f32 %v1863_v16, %v1575_v18  ;;  %v5192_v54 = vor.u32 %v5861_v10, %v5189_v0 }
 0x194   : > { %v7720_v14 = vpop.eup %6465  ;;  %v7723_v21 = vadd.f32 1.0, %v6464_v7  ;;  %v5528_v57 = vor.u32 %v5945_v30, %v5525_v33  ;;  %v3209_v30 = vand.u32 2147483648, %v7693_v58 }
 0x195   : > { %v3191_v52 = vsel %vm3190_vm10, %v6462_v26, %v3187_v23  ;;  %v3199_v5 = vmul.f32 %v7720_v14, %v7693_v58  ;;  %6467 = vpow2.f32 %v5705_v48  ;;  %v5196_v23 = vor.u32 %v5863_v59, %v5195_v22 }
 0x196   : > { %v3196_v41 = vsel %vm3193_vm11, %v3195_v20, %v3191_v52  ;;  %6469 = vrcp.f32 %v7723_v21  ;;  %v2003_v51 = vpop.f32.mrf.mxu3  ;;  %vm3204_vm12 = vweird.f32 %v7720_v14  ;;  %v3222_v22 = vand.u32 2147483647, %v7723_v21 }
 0x197   : > { %v4535_v27 = vsub.f32 %v3196_v41, %v7137_v46  ;;  %v3200_v26 = vsub.f32 1.0, %v3199_v5  ;;  %v7738_v12 = vadd.f32 %v2003_v51, %v1715_v39  ;;  %v3207_v5 = vand.u32 2147483647, %v7693_v58  ;;  %vm7761_vm14 = vmor %vm3203_vm13, %vm3204_vm12 }
 0x198   : > { %v2152_v56 = vpop.f32.mrf.mxu2  ;;  %v1577_v7 = vpop.f32.mrf.mxu0  ;;  %v3210_v51 = vor.u32 1.1754944e-38, %v3209_v30  ;;  %vm3218_vm1 = vweird.f32 %v7723_v21  ;;  %vm3223_vm3 = vcmp.eq.f32.partialorder %v3222_v22, 8.507059e+37  ;;  %v5866_v30 = vld [vmem:[%s6936_s4 + $0x250] sm:$0xf0] }
 0x199   : > { %v6047_v29 = vpack.c.bf16 %v4535_v27, %v4534_v43  ;;  %v3201_v63 = vmul.f32 %v7720_v14, %v3200_v26  ;;  %v2153_v2 = vadd.f32 %v2152_v56, %v1864_v49  ;;  %v1578_v48 = vadd.f32 %v7406_v50, %v1577_v7  ;;  %v1866_v15 = vpop.f32.mrf.mxu1  ;;  %v7751_v50 = vld [vmem:[%s9952_s2] ss:$0 sm:$0xff] }
 0x19a   : > { %v1718_v0 = vadd.f32 %v7751_v50, %v7076_v45  ;;  %v3224_v45 = vand.u32 2147483648, %v7723_v21  ;;  %vm3208_vm0 = vcmp.eq.f32.partialorder %v3207_v5, 8.507059e+37  ;;  %v5207_v5 = vld [vmem:[%s6936_s4 + $0x248] sm:$0xf] }
 0x19b   : > { %v6468_v20 = vpop.eup %6467  ;;  %6275 = vst [vmem:[%s7165_s22 + $0x60] sm:$0xff] %v6047_v29   ;;  %v5706_v52 = vmul.f32 -1.442695, %v2153_v2  ;;  %1616 = vmatmul.bf16.gmra.mxu0 %v5188_v47  ;;  %2045 = vmatmul.bf16.gmra.mxu3 %v5528_v57  ;;  %v3202_v61 = vadd.f32 %v7720_v14, %v3201_v63  ;;  %v1867_v10 = vadd.f32 %v1866_v15, %v1578_v48  ;;  %v5199_v63 = vld [vmem:[%s6936_s4 + $0x240] sm:$0xf] }
 0x19c   : > { %v6470_v16 = vpop.eup %6469  ;;  %v7744_v18 = vadd.f32 1.0, %v6468_v20  ;;  %1905 = vmatmul.bf16.gmra.mxu1 %v5192_v54  ;;  %v5864_v15 = vld [vmem:[%s6936_s4 + $0x244] sm:$0xf]  ;;  %v5201_v20 = vld [vmem:[%s6936_s4 + $0x24c] sm:$0xf0] }
 0x19d   : > { %v3214_v38 = vmul.f32 %v6470_v16, %v7723_v21  ;;  %6471 = vpow2.f32 %v5706_v52  ;;  %2194 = vmatmul.bf16.gmra.mxu2 %v5196_v23  ;;  %v3206_v58 = vsel %vm7761_vm14, %v7720_v14, %v3202_v61  ;;  %vm3219_vm15 = vweird.f32 %v6470_v16  ;;  %v5865_v14 = vld [vmem:[%s6936_s4 + $0x248] sm:$0xf0]  ;;  %v5948_v61 = vld [vmem:[%s6936_s4 + $0x4e4] sm:$0xf] }
 0x19e   : > { %6473 = vrcp.f32 %v7744_v18  ;;  %v2006_v39 = vpop.f32.mrf.mxu3  ;;  %v3211_v7 = vsel %vm3208_vm0, %v3210_v51, %v3206_v58  ;;  %vm3220_vm2 = vmor %vm3218_vm1, %vm3219_vm15  ;;  %v3225_v23 = vor.u32 1.1754944e-38, %v3224_v45  ;;  %v5200_v58 = vor.u32 %v5865_v14, %v5199_v63 }
 0x19f   : > { %v3215_v33 = vsub.f32 1.0, %v3214_v38  ;;  %v7767_v59 = vadd.f32 %v2006_v39, %v1718_v0  ;;  %v5537_v38 = vld [vmem:[%s6936_s4 + $0x4ec] sm:$0xf0]  ;;  %vm3233_vm5 = vweird.f32 %v7744_v18 }
 0x1a0   : > { %v2155_v43 = vpop.f32.mrf.mxu2  ;;  %v1579_v49 = vpop.f32.mrf.mxu0 }
 0x1a1   : > { %v3216_v27 = vmul.f32 %v6470_v16, %v3215_v33  ;;  %v2156_v26 = vadd.f32 %v2155_v43, %v1867_v10  ;;  %v1868_v56 = vpop.f32.mrf.mxu1  ;;  %v1580_v29 = vadd.f32 %v7751_v50, %v1579_v49  ;;  %v1720_v10 = vadd.f32 %v7751_v50, %v7098_v6 }
 0x1a2   : > { %v4536_v33 = vsub.f32 %v3211_v7, %v7137_v46 }
 0x1a3   : > { %v6472_v47 = vpop.eup %6471  ;;  %v3217_v54 = vadd.f32 %v6470_v16, %v3216_v27  ;;  %v5707_v57 = vmul.f32 -1.442695, %v2156_v26  ;;  %v1869_v41 = vadd.f32 %v1868_v56, %v1580_v29  ;;  %v5204_v27 = vor.u32 %v5864_v15, %v5201_v20 }
 0x1a4   : > { %v7776_v2 = vpop.eup %6473  ;;  %v7779_v48 = vadd.f32 1.0, %v6472_v47  ;;  %v5540_v26 = vor.u32 %v5948_v61, %v5537_v38  ;;  %v1723_v20 = vadd.f32 %v7751_v50, %v7124_v35  ;;  %v3239_v61 = vand.u32 2147483648, %v7744_v18 }
 0x1a5   : > { %v3221_v21 = vsel %vm3220_vm2, %v6470_v16, %v3217_v54  ;;  %v3229_v52 = vmul.f32 %v7776_v2, %v7744_v18  ;;  %6475 = vpow2.f32 %v5707_v57  ;;  %v5208_v54 = vor.u32 %v5866_v30, %v5207_v5 }
 0x1a6   : > { %v3226_v0 = vsel %vm3223_vm3, %v3225_v23, %v3221_v21  ;;  %6477 = vrcp.f32 %v7779_v48  ;;  %v2008_v22 = vpop.f32.mrf.mxu3  ;;  %vm3234_vm4 = vweird.f32 %v7776_v2  ;;  %v3252_v5 = vand.u32 2147483647, %v7779_v48 }
 0x1a7   : > { %v4537_v39 = vsub.f32 %v3226_v0, %v7137_v46  ;;  %v3230_v16 = vsub.f32 1.0, %v3229_v52  ;;  %v7794_v45 = vadd.f32 %v2008_v22, %v1720_v10  ;;  %v3237_v52 = vand.u32 2147483647, %v7744_v18  ;;  %vm7812_vm6 = vmor %vm3233_vm5, %vm3234_vm4 }
 0x1a8   : > { %v2157_v43 = vpop.f32.mrf.mxu2  ;;  %v1582_v47 = vpop.f32.mrf.mxu0  ;;  %v3254_v35 = vand.u32 2147483648, %v7779_v48  ;;  %v3240_v22 = vor.u32 1.1754944e-38, %v3239_v61  ;;  %vm3248_vm9 = vweird.f32 %v7779_v48  ;;  %vm3253_vm11 = vcmp.eq.f32.partialorder %v3252_v5, 8.507059e+37  ;;  %v5869_v61 = vld [vmem:[%s6936_s4 + $0x268] sm:$0xf0] }
 0x1a9   : > { %v6052_v6 = vpack.c.bf16 %v4537_v39, %v4536_v33  ;;  %v3231_v49 = vmul.f32 %v7776_v2, %v3230_v16  ;;  %v2158_v51 = vadd.f32 %v2157_v43, %v1869_v41  ;;  %v1583_v57 = vadd.f32 %v7751_v50, %v1582_v47  ;;  %v1871_v7 = vpop.f32.mrf.mxu1 }
 0x1aa   : > { %vm3238_vm8 = vcmp.eq.f32.partialorder %v3237_v52, 8.507059e+37  ;;  %v5219_v52 = vld [vmem:[%s6936_s4 + $0x260] sm:$0xf] }
 0x1ab   : > { %v6476_v23 = vpop.eup %6475  ;;  %6276 = vst [vmem:[%s7165_s22 + $0x68] sm:$0xff] %v6052_v6   ;;  %v5708_v21 = vmul.f32 -1.442695, %v2158_v51  ;;  %1621 = vmatmul.bf16.gmra.mxu0 %v5200_v58  ;;  %2050 = vmatmul.bf16.gmra.mxu3 %v5540_v26  ;;  %v3232_v63 = vadd.f32 %v7776_v2, %v3231_v49  ;;  %v1872_v15 = vadd.f32 %v1871_v7, %v1583_v57  ;;  %v5211_v49 = vld [vmem:[%s6936_s4 + $0x258] sm:$0xf] }
 0x1ac   : > { %v6478_v56 = vpop.eup %6477  ;;  %v7800_v29 = vadd.f32 1.0, %v6476_v23  ;;  %1910 = vmatmul.bf16.gmra.mxu1 %v5204_v27  ;;  %v5867_v7 = vld [vmem:[%s6936_s4 + $0x25c] sm:$0xf]  ;;  %v5213_v23 = vld [vmem:[%s6936_s4 + $0x264] sm:$0xf0] }
 0x1ad   : > { %v3244_v14 = vmul.f32 %v6478_v56, %v7779_v48  ;;  %6479 = vpow2.f32 %v5708_v21  ;;  %2199 = vmatmul.bf16.gmra.mxu2 %v5208_v54  ;;  %v3236_v18 = vsel %vm7812_vm6, %v7776_v2, %v3232_v63  ;;  %vm3249_vm7 = vweird.f32 %v6478_v56  ;;  %v5868_v2 = vld [vmem:[%s6936_s4 + $0x260] sm:$0xf0]  ;;  %v5951_v63 = vld [vmem:[%s6936_s4 + $0x4fc] sm:$0xf] }
 0x1ae   : > { %6481 = vrcp.f32 %v7800_v29  ;;  %v2011_v10 = vpop.f32.mrf.mxu3  ;;  %v3241_v47 = vsel %vm3238_vm8, %v3240_v22, %v3236_v18  ;;  %vm3250_vm10 = vmor %vm3248_vm9, %vm3249_vm7  ;;  %v3255_v54 = vor.u32 1.1754944e-38, %v3254_v35  ;;  %v5212_v18 = vor.u32 %v5868_v2, %v5211_v49 }
 0x1af   : > { %v3245_v38 = vsub.f32 1.0, %v3244_v14  ;;  %v7818_v30 = vadd.f32 %v2011_v10, %v1723_v20  ;;  %v5549_v14 = vld [vmem:[%s6936_s4 + $0x504] sm:$0xf0]  ;;  %vm3263_vm13 = vweird.f32 %v7800_v29 }
 0x1b0   : > { %v2160_v33 = vpop.f32.mrf.mxu2  ;;  %v1584_v41 = vpop.f32.mrf.mxu0 }
 0x1b1   : > { %v3246_v39 = vmul.f32 %v6478_v56, %v3245_v38  ;;  %v2161_v16 = vadd.f32 %v2160_v33, %v1872_v15  ;;  %v1873_v43 = vpop.f32.mrf.mxu1  ;;  %v1585_v6 = vadd.f32 %v7751_v50, %v1584_v41  ;;  %v1725_v15 = vadd.f32 %v7751_v50, %v7160_v9 }
 0x1b2   : > { %v4538_v38 = vsub.f32 %v3241_v47, %v7137_v46 }
 0x1b3   : > { %v6480_v58 = vpop.eup %6479  ;;  %v3247_v27 = vadd.f32 %v6478_v56, %v3246_v39  ;;  %v5709_v26 = vmul.f32 -1.442695, %v2161_v16  ;;  %v1874_v0 = vadd.f32 %v1873_v43, %v1585_v6  ;;  %v5216_v39 = vor.u32 %v5867_v7, %v5213_v23 }
 0x1b4   : > { %v7827_v51 = vpop.eup %6481  ;;  %v7830_v57 = vadd.f32 1.0, %v6480_v58  ;;  %v5552_v16 = vor.u32 %v5951_v63, %v5549_v14  ;;  %v1728_v23 = vadd.f32 %v7751_v50, %v7179_v34  ;;  %v3269_v63 = vand.u32 2147483648, %v7800_v29 }
 0x1b5   : > { %v3251_v48 = vsel %vm3250_vm10, %v6478_v56, %v3247_v27  ;;  %v3259_v21 = vmul.f32 %v7827_v51, %v7800_v29  ;;  %6483 = vpow2.f32 %v5709_v26  ;;  %v5220_v27 = vor.u32 %v5869_v61, %v5219_v52 }
 0x1b6   : > { %v3256_v20 = vsel %vm3253_vm11, %v3255_v54, %v3251_v48  ;;  %6485 = vrcp.f32 %v7830_v57  ;;  %v2013_v5 = vpop.f32.mrf.mxu3  ;;  %vm3264_vm12 = vweird.f32 %v7827_v51  ;;  %v3282_v52 = vand.u32 2147483647, %v7830_v57 }
 0x1b7   : > { %v4539_v10 = vsub.f32 %v3256_v20, %v7137_v46  ;;  %v3260_v56 = vsub.f32 1.0, %v3259_v21  ;;  %v7845_v35 = vadd.f32 %v2013_v5, %v1725_v15  ;;  %v3267_v21 = vand.u32 2147483647, %v7800_v29  ;;  %vm7863_vm14 = vmor %vm3263_vm13, %vm3264_vm12 }
 0x1b8   : > { %v2162_v33 = vpop.f32.mrf.mxu2  ;;  %v1587_v58 = vpop.f32.mrf.mxu0  ;;  %v3284_v34 = vand.u32 2147483648, %v7830_v57  ;;  %v3270_v5 = vor.u32 1.1754944e-38, %v3269_v63  ;;  %vm3278_vm1 = vweird.f32 %v7830_v57  ;;  %vm3283_vm3 = vcmp.eq.f32.partialorder %v3282_v52, 8.507059e+37  ;;  %v5872_v63 = vld [vmem:[%s6936_s4 + $0x280] sm:$0xf0] }
 0x1b9   : > { %v6057_v9 = vpack.c.bf16 %v4539_v10, %v4538_v38  ;;  %v3261_v41 = vmul.f32 %v7827_v51, %v3260_v56  ;;  %v2163_v22 = vadd.f32 %v2162_v33, %v1874_v0  ;;  %v1588_v26 = vadd.f32 %v7751_v50, %v1587_v58  ;;  %v1876_v47 = vpop.f32.mrf.mxu1 }
 0x1ba   : > { %vm3268_vm0 = vcmp.eq.f32.partialorder %v3267_v21, 8.507059e+37  ;;  %v5231_v21 = vld [vmem:[%s6936_s4 + $0x278] sm:$0xf] }
 0x1bb   : > { %v6484_v54 = vpop.eup %6483  ;;  %6277 = vst [vmem:[%s7165_s22 + $0x70] sm:$0xff] %v6057_v9   ;;  %v5710_v48 = vmul.f32 -1.442695, %v2163_v22  ;;  %1626 = vmatmul.bf16.gmra.mxu0 %v5212_v18  ;;  %2055 = vmatmul.bf16.gmra.mxu3 %v5552_v16  ;;  %v3262_v49 = vadd.f32 %v7827_v51, %v3261_v41  ;;  %v1877_v7 = vadd.f32 %v1876_v47, %v1588_v26  ;;  %v5223_v41 = vld [vmem:[%s6936_s4 + $0x270] sm:$0xf] }
 0x1bc   : > { %v6486_v43 = vpop.eup %6485  ;;  %v7851_v6 = vadd.f32 1.0, %v6484_v54  ;;  %1915 = vmatmul.bf16.gmra.mxu1 %v5216_v39  ;;  %v5870_v47 = vld [vmem:[%s6936_s4 + $0x274] sm:$0xf]  ;;  %v5225_v54 = vld [vmem:[%s6936_s4 + $0x27c] sm:$0xf0] }
 0x1bd   : > { %v3274_v2 = vmul.f32 %v6486_v43, %v7830_v57  ;;  %6487 = vpow2.f32 %v5710_v48  ;;  %2204 = vmatmul.bf16.gmra.mxu2 %v5220_v27  ;;  %v3266_v29 = vsel %vm7863_vm14, %v7827_v51, %v3262_v49  ;;  %vm3279_vm15 = vweird.f32 %v6486_v43  ;;  %v5871_v51 = vld [vmem:[%s6936_s4 + $0x278] sm:$0xf0]  ;;  %v5954_v49 = vld [vmem:[%s6936_s4 + $0x514] sm:$0xf] }
 0x1be   : > { %6489 = vrcp.f32 %v7851_v6  ;;  %v2016_v15 = vpop.f32.mrf.mxu3  ;;  %v3271_v58 = vsel %vm3268_vm0, %v3270_v5, %v3266_v29  ;;  %vm3280_vm2 = vmor %vm3278_vm1, %vm3279_vm15  ;;  %v3285_v27 = vor.u32 1.1754944e-38, %v3284_v34  ;;  %v5224_v29 = vor.u32 %v5871_v51, %v5223_v41 }
 0x1bf   : > { %v3275_v14 = vsub.f32 1.0, %v3274_v2  ;;  %v7869_v61 = vadd.f32 %v2016_v15, %v1728_v23  ;;  %v5561_v2 = vld [vmem:[%s6936_s4 + $0x51c] sm:$0xf0]  ;;  %vm3293_vm5 = vweird.f32 %v7851_v6 }
 0x1c0   : > { %v2165_v38 = vpop.f32.mrf.mxu2  ;;  %v1589_v0 = vpop.f32.mrf.mxu0 }
 0x1c1   : > { %v3276_v10 = vmul.f32 %v6486_v43, %v3275_v14  ;;  %v2166_v56 = vadd.f32 %v2165_v38, %v1877_v7  ;;  %v1878_v33 = vpop.f32.mrf.mxu1  ;;  %v1590_v9 = vadd.f32 %v7751_v50, %v1589_v0  ;;  %v1730_v7 = vadd.f32 %v7751_v50, %v7212_v8 }
 0x1c2   : > { %v4540_v14 = vsub.f32 %v3271_v58, %v7137_v46 }
 0x1c3   : > { %v6488_v18 = vpop.eup %6487  ;;  %v3277_v39 = vadd.f32 %v6486_v43, %v3276_v10  ;;  %v5711_v16 = vmul.f32 -1.442695, %v2166_v56  ;;  %v1879_v20 = vadd.f32 %v1878_v33, %v1590_v9  ;;  %v5228_v10 = vor.u32 %v5870_v47, %v5225_v54 }
 0x1c4   : > { %v7878_v22 = vpop.eup %6489  ;;  %v7881_v26 = vadd.f32 1.0, %v6488_v18  ;;  %v5564_v56 = vor.u32 %v5954_v49, %v5561_v2  ;;  %v1733_v54 = vadd.f32 %v7751_v50, %v7226_v37  ;;  %v3299_v49 = vand.u32 2147483648, %v7851_v6 }
 0x1c5   : > { %v3281_v57 = vsel %vm3280_vm2, %v6486_v43, %v3277_v39  ;;  %v3289_v48 = vmul.f32 %v7878_v22, %v7851_v6  ;;  %6491 = vpow2.f32 %v5711_v16  ;;  %v5232_v39 = vor.u32 %v5872_v63, %v5231_v21 }
 0x1c6   : > { %v3286_v23 = vsel %vm3283_vm3, %v3285_v27, %v3281_v57  ;;  %6493 = vrcp.f32 %v7881_v26  ;;  %v2018_v52 = vpop.f32.mrf.mxu3  ;;  %vm3294_vm4 = vweird.f32 %v7878_v22  ;;  %v3312_v21 = vand.u32 2147483647, %v7881_v26 }
 0x1c7   : > { %v4541_v15 = vsub.f32 %v3286_v23, %v7137_v46  ;;  %v3290_v43 = vsub.f32 1.0, %v3289_v48  ;;  %v7896_v34 = vadd.f32 %v2018_v52, %v1730_v7  ;;  %v3297_v48 = vand.u32 2147483647, %v7851_v6  ;;  %vm7914_vm6 = vmor %vm3293_vm5, %vm3294_vm4 }
 0x1c8   : > { %v2167_v38 = vpop.f32.mrf.mxu2  ;;  %v1592_v18 = vpop.f32.mrf.mxu0  ;;  %v3314_v37 = vand.u32 2147483648, %v7881_v26  ;;  %v3300_v52 = vor.u32 1.1754944e-38, %v3299_v49  ;;  %vm3308_vm9 = vweird.f32 %v7881_v26  ;;  %vm3313_vm11 = vcmp.eq.f32.partialorder %v3312_v21, 8.507059e+37  ;;  %v5875_v49 = vld [vmem:[%s6936_s4 + $0x298] sm:$0xf0] }
 0x1c9   : > { %v6062_v8 = vpack.c.bf16 %v4541_v15, %v4540_v14  ;;  %v3291_v0 = vmul.f32 %v7878_v22, %v3290_v43  ;;  %v2168_v5 = vadd.f32 %v2167_v38, %v1879_v20  ;;  %v1593_v16 = vadd.f32 %v7751_v50, %v1592_v18  ;;  %v1881_v58 = vpop.f32.mrf.mxu1 }
 0x1ca   : > { %vm3298_vm8 = vcmp.eq.f32.partialorder %v3297_v48, 8.507059e+37  ;;  %v5243_v48 = vld [vmem:[%s6936_s4 + $0x290] sm:$0xf] }
 0x1cb   : > { %v6492_v27 = vpop.eup %6491  ;;  %6278 = vst [vmem:[%s7165_s22 + $0x78] sm:$0xff] %v6062_v8   ;;  %v5712_v57 = vmul.f32 -1.442695, %v2168_v5  ;;  %1631 = vmatmul.bf16.gmra.mxu0 %v5224_v29  ;;  %2060 = vmatmul.bf16.gmra.mxu3 %v5564_v56  ;;  %v3292_v41 = vadd.f32 %v7878_v22, %v3291_v0  ;;  %v1882_v47 = vadd.f32 %v1881_v58, %v1593_v16  ;;  %v5235_v0 = vld [vmem:[%s6936_s4 + $0x288] sm:$0xf] }
 0x1cc   : > { %v6494_v33 = vpop.eup %6493  ;;  %v7902_v9 = vadd.f32 1.0, %v6492_v27  ;;  %1920 = vmatmul.bf16.gmra.mxu1 %v5228_v10  ;;  %v5873_v58 = vld [vmem:[%s6936_s4 + $0x28c] sm:$0xf]  ;;  %v5237_v27 = vld [vmem:[%s6936_s4 + $0x294] sm:$0xf0] }
 0x1cd   : > { %v3304_v51 = vmul.f32 %v6494_v33, %v7881_v26  ;;  %6495 = vpow2.f32 %v5712_v57  ;;  %2209 = vmatmul.bf16.gmra.mxu2 %v5232_v39  ;;  %v3296_v6 = vsel %vm7914_vm6, %v7878_v22, %v3292_v41  ;;  %vm3309_vm7 = vweird.f32 %v6494_v33  ;;  %v5874_v22 = vld [vmem:[%s6936_s4 + $0x290] sm:$0xf0]  ;;  %v5957_v41 = vld [vmem:[%s6936_s4 + $0x52c] sm:$0xf] }
 0x1ce   : > { %6497 = vrcp.f32 %v7902_v9  ;;  %v2021_v7 = vpop.f32.mrf.mxu3  ;;  %v3301_v18 = vsel %vm3298_vm8, %v3300_v52, %v3296_v6  ;;  %vm3310_vm10 = vmor %vm3308_vm9, %vm3309_vm7  ;;  %v3315_v39 = vor.u32 1.1754944e-38, %v3314_v37  ;;  %v5236_v6 = vor.u32 %v5874_v22, %v5235_v0 }
 0x1cf   : > { %v3305_v2 = vsub.f32 1.0, %v3304_v51  ;;  %v7920_v63 = vadd.f32 %v2021_v7, %v1733_v54  ;;  %v5573_v51 = vld [vmem:[%s6936_s4 + $0x534] sm:$0xf0]  ;;  %vm3323_vm13 = vweird.f32 %v7902_v9 }
 0x1d0   : > { %v2170_v14 = vpop.f32.mrf.mxu2  ;;  %v1594_v20 = vpop.f32.mrf.mxu0 }
 0x1d1   : > { %v3306_v15 = vmul.f32 %v6494_v33, %v3305_v2  ;;  %v2171_v43 = vadd.f32 %v2170_v14, %v1882_v47  ;;  %v1883_v38 = vpop.f32.mrf.mxu1  ;;  %v1595_v8 = vadd.f32 %v7751_v50, %v1594_v20  ;;  %v1735_v47 = vadd.f32 %v7751_v50, %v7259_v11 }
 0x1d2   : > { %v4542_v2 = vsub.f32 %v3301_v18, %v7137_v46 }
 0x1d3   : > { %v6496_v29 = vpop.eup %6495  ;;  %v3307_v10 = vadd.f32 %v6494_v33, %v3306_v15  ;;  %v5713_v56 = vmul.f32 -1.442695, %v2171_v43  ;;  %v1884_v23 = vadd.f32 %v1883_v38, %v1595_v8  ;;  %v5240_v15 = vor.u32 %v5873_v58, %v5237_v27 }
 0x1d4   : > { %v7929_v5 = vpop.eup %6497  ;;  %v7932_v16 = vadd.f32 1.0, %v6496_v29  ;;  %v5576_v43 = vor.u32 %v5957_v41, %v5573_v51  ;;  %v1738_v27 = vadd.f32 %v7751_v50, %v7273_v40  ;;  %v3329_v41 = vand.u32 2147483648, %v7902_v9 }
 0x1d5   : > { %v3311_v26 = vsel %vm3310_vm10, %v6494_v33, %v3307_v10  ;;  %v3319_v57 = vmul.f32 %v7929_v5, %v7902_v9  ;;  %6499 = vpow2.f32 %v5713_v56  ;;  %v5244_v10 = vor.u32 %v5875_v49, %v5243_v48 }
 0x1d6   : > { %v3316_v54 = vsel %vm3313_vm11, %v3315_v39, %v3311_v26  ;;  %6501 = vrcp.f32 %v7932_v16  ;;  %v2023_v21 = vpop.f32.mrf.mxu3  ;;  %vm3324_vm12 = vweird.f32 %v7929_v5  ;;  %v3342_v48 = vand.u32 2147483647, %v7932_v16 }
 0x1d7   : > { %v4543_v7 = vsub.f32 %v3316_v54, %v7137_v46  ;;  %v3320_v33 = vsub.f32 1.0, %v3319_v57  ;;  %v7947_v37 = vadd.f32 %v2023_v21, %v1735_v47  ;;  %v3327_v57 = vand.u32 2147483647, %v7902_v9  ;;  %vm7965_vm14 = vmor %vm3323_vm13, %vm3324_vm12 }
 0x1d8   : > { %v2172_v14 = vpop.f32.mrf.mxu2  ;;  %v1597_v29 = vpop.f32.mrf.mxu0  ;;  %v3344_v40 = vand.u32 2147483648, %v7932_v16  ;;  %v3330_v21 = vor.u32 1.1754944e-38, %v3329_v41  ;;  %vm3338_vm1 = vweird.f32 %v7932_v16  ;;  %vm3343_vm3 = vcmp.eq.f32.partialorder %v3342_v48, 8.507059e+37  ;;  %v5878_v41 = vld [vmem:[%s6936_s4 + $0x2b0] sm:$0xf0] }
 0x1d9   : > { %v6067_v11 = vpack.c.bf16 %v4543_v7, %v4542_v2  ;;  %v3321_v20 = vmul.f32 %v7929_v5, %v3320_v33  ;;  %v2173_v52 = vadd.f32 %v2172_v14, %v1884_v23  ;;  %v1598_v56 = vadd.f32 %v7751_v50, %v1597_v29  ;;  %v1886_v18 = vpop.f32.mrf.mxu1 }
 0x1da   : > { %vm3328_vm0 = vcmp.eq.f32.partialorder %v3327_v57, 8.507059e+37  ;;  %v5255_v57 = vld [vmem:[%s6936_s4 + $0x2a8] sm:$0xf] }
 0x1db   : > { %v6500_v39 = vpop.eup %6499  ;;  %6279 = vst [vmem:[%s7165_s22 + $0x80] sm:$0xff] %v6067_v11   ;;  %v5714_v26 = vmul.f32 -1.442695, %v2173_v52  ;;  %1636 = vmatmul.bf16.gmra.mxu0 %v5236_v6  ;;  %2065 = vmatmul.bf16.gmra.mxu3 %v5576_v43  ;;  %v3322_v0 = vadd.f32 %v7929_v5, %v3321_v20  ;;  %v1887_v58 = vadd.f32 %v1886_v18, %v1598_v56  ;;  %v5247_v20 = vld [vmem:[%s6936_s4 + $0x2a0] sm:$0xf] }
 0x1dc   : > { %v6502_v38 = vpop.eup %6501  ;;  %v7953_v8 = vadd.f32 1.0, %v6500_v39  ;;  %1925 = vmatmul.bf16.gmra.mxu1 %v5240_v15  ;;  %v5876_v18 = vld [vmem:[%s6936_s4 + $0x2a4] sm:$0xf]  ;;  %v5249_v39 = vld [vmem:[%s6936_s4 + $0x2ac] sm:$0xf0] }
 0x1dd   : > { %v3334_v22 = vmul.f32 %v6502_v38, %v7932_v16  ;;  %6503 = vpow2.f32 %v5714_v26  ;;  %2214 = vmatmul.bf16.gmra.mxu2 %v5244_v10  ;;  %v3326_v9 = vsel %vm7965_vm14, %v7929_v5, %v3322_v0  ;;  %vm3339_vm15 = vweird.f32 %v6502_v38  ;;  %v5877_v5 = vld [vmem:[%s6936_s4 + $0x2a8] sm:$0xf0]  ;;  %v5423_v0 = vld [vmem:[%s6936_s4 + $0x3f8] sm:$0xf] }
 0x1de   : > { %6505 = vrcp.f32 %v7953_v8  ;;  %v2026_v47 = vpop.f32.mrf.mxu3  ;;  %v3331_v29 = vsel %vm3328_vm0, %v3330_v21, %v3326_v9  ;;  %vm3340_vm2 = vmor %vm3338_vm1, %vm3339_vm15  ;;  %v3345_v10 = vor.u32 1.1754944e-38, %v3344_v40  ;;  %v5248_v9 = vor.u32 %v5877_v5, %v5247_v20 }
 0x1df   : > { %v3335_v51 = vsub.f32 1.0, %v3334_v22  ;;  %v7971_v49 = vadd.f32 %v2026_v47, %v1738_v27  ;;  %v5920_v22 = vld [vmem:[%s6936_s4 + $0x400] sm:$0xf0]  ;;  %vm3353_vm5 = vweird.f32 %v7953_v8 }
 0x1e0   : > { %v2175_v2 = vpop.f32.mrf.mxu2  ;;  %v1599_v23 = vpop.f32.mrf.mxu0 }
 0x1e1   : > { %v3336_v7 = vmul.f32 %v6502_v38, %v3335_v51  ;;  %v2176_v33 = vadd.f32 %v2175_v2, %v1887_v58  ;;  %v1888_v14 = vpop.f32.mrf.mxu1  ;;  %v1600_v11 = vadd.f32 %v7751_v50, %v1599_v23  ;;  %v1740_v58 = vadd.f32 %v7751_v50, %v7306_v17 }
 0x1e2   : > { %v4544_v51 = vsub.f32 %v3331_v29, %v7137_v46 }
 0x1e3   : > { %v6504_v6 = vpop.eup %6503  ;;  %v3337_v15 = vadd.f32 %v6502_v38, %v3336_v7  ;;  %v5715_v43 = vmul.f32 -1.442695, %v2176_v33  ;;  %v1889_v54 = vadd.f32 %v1888_v14, %v1600_v11  ;;  %v5252_v7 = vor.u32 %v5876_v18, %v5249_v39 }
 0x1e4   : > { %v7980_v52 = vpop.eup %6505  ;;  %v7983_v56 = vadd.f32 1.0, %v6504_v6  ;;  %v5424_v33 = vor.u32 %v5920_v22, %v5423_v0  ;;  %v1743_v39 = vadd.f32 %v7751_v50, %v7320_v44  ;;  %v3359_v0 = vand.u32 2147483648, %v7953_v8 }
 0x1e5   : > { %v3341_v16 = vsel %vm3340_vm2, %v6502_v38, %v3337_v15  ;;  %v3349_v26 = vmul.f32 %v7980_v52, %v7953_v8  ;;  %6507 = vpow2.f32 %v5715_v43  ;;  %v5256_v15 = vor.u32 %v5878_v41, %v5255_v57 }
 0x1e6   : > { %v3346_v27 = vsel %vm3343_vm3, %v3345_v10, %v3341_v16  ;;  %6509 = vrcp.f32 %v7983_v56  ;;  %v2028_v48 = vpop.f32.mrf.mxu3  ;;  %vm3354_vm4 = vweird.f32 %v7980_v52  ;;  %v3372_v57 = vand.u32 2147483647, %v7983_v56 }
 0x1e7   : > { %v4545_v47 = vsub.f32 %v3346_v27, %v7137_v46  ;;  %v3350_v38 = vsub.f32 1.0, %v3349_v26  ;;  %v7998_v40 = vadd.f32 %v2028_v48, %v1740_v58  ;;  %v3357_v26 = vand.u32 2147483647, %v7953_v8  ;;  %vm8016_vm6 = vmor %vm3353_vm5, %vm3354_vm4 }
 0x1e8   : > { %v2177_v2 = vpop.f32.mrf.mxu2  ;;  %v1602_v6 = vpop.f32.mrf.mxu0  ;;  %v3374_v44 = vand.u32 2147483648, %v7983_v56  ;;  %v3360_v48 = vor.u32 1.1754944e-38, %v3359_v0  ;;  %vm3368_vm9 = vweird.f32 %v7983_v56  ;;  %vm3373_vm11 = vcmp.eq.f32.partialorder %v3372_v57, 8.507059e+37  ;;  %v5881_v0 = vld [vmem:[%s6936_s4 + $0x2c8] sm:$0xf0] }
 0x1e9   : > { %v6072_v17 = vpack.c.bf16 %v4545_v47, %v4544_v51  ;;  %v3351_v23 = vmul.f32 %v7980_v52, %v3350_v38  ;;  %v2178_v21 = vadd.f32 %v2177_v2, %v1889_v54  ;;  %v1603_v43 = vadd.f32 %v7751_v50, %v1602_v6  ;;  %v1891_v29 = vpop.f32.mrf.mxu1 }
 0x1ea   : > { %vm3358_vm8 = vcmp.eq.f32.partialorder %v3357_v26, 8.507059e+37  ;;  %v5267_v26 = vld [vmem:[%s6936_s4 + $0x2c0] sm:$0xf] }
 0x1eb   : > { %v6508_v10 = vpop.eup %6507  ;;  %6280 = vst [vmem:[%s7165_s22 + $0x88] sm:$0xff] %v6072_v17   ;;  %v5716_v16 = vmul.f32 -1.442695, %v2178_v21  ;;  %1641 = vmatmul.bf16.gmra.mxu0 %v5248_v9  ;;  %2289 = vmatmul.bf16.vlgmr.msra.gmra.mxu3 %v5424_v33  ;;  %v3352_v20 = vadd.f32 %v7980_v52, %v3351_v23  ;;  %v1892_v18 = vadd.f32 %v1891_v29, %v1603_v43  ;;  %v5259_v23 = vld [vmem:[%s6936_s4 + $0x2b8] sm:$0xf] }
 0x1ec   : > { %v6510_v14 = vpop.eup %6509  ;;  %v8004_v11 = vadd.f32 1.0, %v6508_v10  ;;  %1930 = vmatmul.bf16.gmra.mxu1 %v5252_v7  ;;  %v5879_v29 = vld [vmem:[%s6936_s4 + $0x2bc] sm:$0xf]  ;;  %v5261_v10 = vld [vmem:[%s6936_s4 + $0x2c4] sm:$0xf0] }
 0x1ed   : > { %v3364_v5 = vmul.f32 %v6510_v14, %v7983_v56  ;;  %6511 = vpow2.f32 %v5716_v16  ;;  %2219 = vmatmul.bf16.gmra.mxu2 %v5256_v15  ;;  %v3356_v8 = vsel %vm8016_vm6, %v7980_v52, %v3352_v20  ;;  %vm3369_vm7 = vweird.f32 %v6510_v14  ;;  %v5880_v52 = vld [vmem:[%s6936_s4 + $0x2c0] sm:$0xf0]  ;;  %v5435_v20 = vld [vmem:[%s6936_s4 + $0x410] sm:$0xf] }
 0x1ee   : > { %6513 = vrcp.f32 %v8004_v11  ;;  %v2031_v58 = vpop.f32.mrf.mxu3  ;;  %v3361_v6 = vsel %vm3358_vm8, %v3360_v48, %v3356_v8  ;;  %vm3370_vm10 = vmor %vm3368_vm9, %vm3369_vm7  ;;  %v3375_v15 = vor.u32 1.1754944e-38, %v3374_v44  ;;  %v5260_v8 = vor.u32 %v5880_v52, %v5259_v23 }
 0x1ef   : > { %v3365_v22 = vsub.f32 1.0, %v3364_v5  ;;  %v8022_v41 = vadd.f32 %v2031_v58, %v1743_v39  ;;  %v5923_v5 = vld [vmem:[%s6936_s4 + $0x418] sm:$0xf0]  ;;  %vm3383_vm13 = vweird.f32 %v8004_v11 }
 0x1f0   : > { %v2180_v51 = vpop.f32.mrf.mxu2  ;;  %v1604_v54 = vpop.f32.mrf.mxu0 }
 0x1f1   : > { %v3366_v47 = vmul.f32 %v6510_v14, %v3365_v22  ;;  %v2181_v38 = vadd.f32 %v2180_v51, %v1892_v18  ;;  %v1893_v2 = vpop.f32.mrf.mxu1  ;;  %v1605_v17 = vadd.f32 %v7751_v50, %v1604_v54  ;;  %v1745_v18 = vadd.f32 %v7751_v50, %v7353_v24 }
 0x1f2   : > { %v4546_v22 = vsub.f32 %v3361_v6, %v7137_v46 }
 0x1f3   : > { %v6512_v9 = vpop.eup %6511  ;;  %v3367_v7 = vadd.f32 %v6510_v14, %v3366_v47  ;;  %v5717_v33 = vmul.f32 -1.442695, %v2181_v38  ;;  %v1894_v27 = vadd.f32 %v1893_v2, %v1605_v17  ;;  %v5264_v47 = vor.u32 %v5879_v29, %v5261_v10 }
 0x1f4   : > { %v8031_v21 = vpop.eup %6513  ;;  %v8034_v43 = vadd.f32 1.0, %v6512_v9  ;;  %v5436_v38 = vor.u32 %v5923_v5, %v5435_v20  ;;  %v1748_v10 = vadd.f32 %v7751_v50, %v7367_v53  ;;  %v3389_v20 = vand.u32 2147483648, %v8004_v11 }
 0x1f5   : > { %v3371_v56 = vsel %vm3370_vm10, %v6510_v14, %v3367_v7  ;;  %v3379_v16 = vmul.f32 %v8031_v21, %v8004_v11  ;;  %6515 = vpow2.f32 %v5717_v33  ;;  %v5268_v7 = vor.u32 %v5881_v0, %v5267_v26 }
 0x1f6   : > { %v3376_v39 = vsel %vm3373_vm11, %v3375_v15, %v3371_v56  ;;  %6517 = vrcp.f32 %v8034_v43  ;;  %v2033_v57 = vpop.f32.mrf.mxu3  ;;  %vm3384_vm12 = vweird.f32 %v8031_v21  ;;  %v3402_v26 = vand.u32 2147483647, %v8034_v43 }
 0x1f7   : > { %v4547_v58 = vsub.f32 %v3376_v39, %v7137_v46  ;;  %v3380_v14 = vsub.f32 1.0, %v3379_v16  ;;  %v8049_v44 = vadd.f32 %v2033_v57, %v1745_v18  ;;  %v3387_v16 = vand.u32 2147483647, %v8004_v11  ;;  %vm8067_vm14 = vmor %vm3383_vm13, %vm3384_vm12 }
 0x1f8   : > { %v2182_v51 = vpop.f32.mrf.mxu2  ;;  %v1607_v9 = vpop.f32.mrf.mxu0  ;;  %v3404_v53 = vand.u32 2147483648, %v8034_v43  ;;  %v3390_v57 = vor.u32 1.1754944e-38, %v3389_v20  ;;  %vm3398_vm1 = vweird.f32 %v8034_v43  ;;  %vm3403_vm3 = vcmp.eq.f32.partialorder %v3402_v26, 8.507059e+37  ;;  %v5884_v20 = vld [vmem:[%s6936_s4 + $0x2e0] sm:$0xf0] }
 0x1f9   : > { %v6077_v24 = vpack.c.bf16 %v4547_v58, %v4546_v22  ;;  %v3381_v54 = vmul.f32 %v8031_v21, %v3380_v14  ;;  %v2183_v48 = vadd.f32 %v2182_v51, %v1894_v27  ;;  %v1608_v33 = vadd.f32 %v7751_v50, %v1607_v9  ;;  %v1896_v6 = vpop.f32.mrf.mxu1 }
 0x1fa   : > { %vm3388_vm0 = vcmp.eq.f32.partialorder %v3387_v16, 8.507059e+37  ;;  %v5279_v16 = vld [vmem:[%s6936_s4 + $0x2d8] sm:$0xf] }
 0x1fb   : > { %v6516_v15 = vpop.eup %6515  ;;  %6281 = vst [vmem:[%s7165_s22 + $0x90] sm:$0xff] %v6077_v24   ;;  %v5718_v56 = vmul.f32 -1.442695, %v2183_v48  ;;  %1646 = vmatmul.bf16.gmra.mxu0 %v5260_v8  ;;  %2294 = vmatmul.bf16.gmra.mxu3 %v5436_v38  ;;  %v3382_v23 = vadd.f32 %v8031_v21, %v3381_v54  ;;  %v1897_v29 = vadd.f32 %v1896_v6, %v1608_v33  ;;  %v5271_v54 = vld [vmem:[%s6936_s4 + $0x2d0] sm:$0xf] }
 0x1fc   : > { %v6518_v2 = vpop.eup %6517  ;;  %v8055_v17 = vadd.f32 1.0, %v6516_v15  ;;  %1935 = vmatmul.bf16.gmra.mxu1 %v5264_v47  ;;  %v5882_v6 = vld [vmem:[%s6936_s4 + $0x2d4] sm:$0xf]  ;;  %v5273_v15 = vld [vmem:[%s6936_s4 + $0x2dc] sm:$0xf0] }
 0x1fd   : > { %v3394_v52 = vmul.f32 %v6518_v2, %v8034_v43  ;;  %6519 = vpow2.f32 %v5718_v56  ;;  %2224 = vmatmul.bf16.gmra.mxu2 %v5268_v7  ;;  %v3386_v11 = vsel %vm8067_vm14, %v8031_v21, %v3382_v23  ;;  %vm3399_vm15 = vweird.f32 %v6518_v2  ;;  %v5883_v21 = vld [vmem:[%s6936_s4 + $0x2d8] sm:$0xf0]  ;;  %v5447_v23 = vld [vmem:[%s6936_s4 + $0x428] sm:$0xf] }
 0x1fe   : > { %6521 = vrcp.f32 %v8055_v17  ;;  %v2036_v18 = vpop.f32.mrf.mxu3  ;;  %v3391_v9 = vsel %vm3388_vm0, %v3390_v57, %v3386_v11  ;;  %vm3400_vm2 = vmor %vm3398_vm1, %vm3399_vm15  ;;  %v3405_v7 = vor.u32 1.1754944e-38, %v3404_v53  ;;  %v5272_v11 = vor.u32 %v5883_v21, %v5271_v54 }
 0x1ff   : > { %v3395_v5 = vsub.f32 1.0, %v3394_v52  ;;  %v8073_v0 = vadd.f32 %v2036_v18, %v1748_v10  ;;  %v5926_v52 = vld [vmem:[%s6936_s4 + $0x430] sm:$0xf0]  ;;  %vm3413_vm5 = vweird.f32 %v8055_v17 }
 0x200   : > { %v2185_v22 = vpop.f32.mrf.mxu2  ;;  %v1609_v27 = vpop.f32.mrf.mxu0 }
 0x201   : > { %v3396_v58 = vmul.f32 %v6518_v2, %v3395_v5  ;;  %v2186_v14 = vadd.f32 %v2185_v22, %v1897_v29  ;;  %v1898_v51 = vpop.f32.mrf.mxu1  ;;  %v1610_v24 = vadd.f32 %v7751_v50, %v1609_v27  ;;  %v1750_v29 = vadd.f32 %v7751_v50, %v7400_v36 }
 0x202   : > { %v4548_v5 = vsub.f32 %v3391_v9, %v7137_v46 }
 0x203   : > { %v6520_v8 = vpop.eup %6519  ;;  %v3397_v47 = vadd.f32 %v6518_v2, %v3396_v58  ;;  %v5719_v38 = vmul.f32 -1.442695, %v2186_v14  ;;  %v1899_v39 = vadd.f32 %v1898_v51, %v1610_v24  ;;  %v5276_v58 = vor.u32 %v5882_v6, %v5273_v15 }
 0x204   : > { %v8082_v48 = vpop.eup %6521  ;;  %v8085_v33 = vadd.f32 1.0, %v6520_v8  ;;  %v5448_v14 = vor.u32 %v5926_v52, %v5447_v23  ;;  %v5280_v8 = vor.u32 %v5884_v20, %v5279_v16  ;;  %v3419_v23 = vand.u32 2147483648, %v8055_v17 }
 0x205   : > { %v3401_v43 = vsel %vm3400_vm2, %v6518_v2, %v3397_v47  ;;  %v3409_v56 = vmul.f32 %v8082_v48, %v8055_v17  ;;  %6523 = vpow2.f32 %v5719_v38  ;;  %v8106_v47 = vld [vmem:[%s9952_s2] ss:$0 sm:$0xff]  ;;  %vm3414_vm4 = vweird.f32 %v8082_v48 }
 0x206   : > { %v3406_v10 = vsel %vm3403_vm3, %v3405_v7, %v3401_v43  ;;  %6525 = vrcp.f32 %v8085_v33  ;;  %v2038_v26 = vpop.f32.mrf.mxu3  ;;  %v1753_v43 = vadd.f32 %v8106_v47, %v7419_v1  ;;  %vm8123_vm6 = vmor %vm3413_vm5, %vm3414_vm4  ;;  %v3432_v16 = vand.u32 2147483647, %v8085_v33 }
 0x207   : > { %v4549_v18 = vsub.f32 %v3406_v10, %v7137_v46  ;;  %v3410_v2 = vsub.f32 1.0, %v3409_v56  ;;  %v8100_v53 = vadd.f32 %v2038_v26, %v1750_v29  ;;  %v3417_v56 = vand.u32 2147483647, %v8055_v17 }
 0x208   : > { %v2187_v22 = vpop.f32.mrf.mxu2  ;;  %v1612_v57 = vpop.f32.mrf.mxu0  ;;  %v3434_v1 = vand.u32 2147483648, %v8085_v33  ;;  %v3420_v26 = vor.u32 1.1754944e-38, %v3419_v23  ;;  %vm3428_vm9 = vweird.f32 %v8085_v33  ;;  %vm3433_vm11 = vcmp.eq.f32.partialorder %v3432_v16, 8.507059e+37  ;;  %v5887_v23 = vld [vmem:[%s6936_s4 + $0x2f8] sm:$0xf0] }
 0x209   : > { %v6082_v36 = vpack.c.bf16 %v4549_v18, %v4548_v5  ;;  %v3411_v50 = vmul.f32 %v8082_v48, %v3410_v2  ;;  %v2188_v27 = vadd.f32 %v2187_v22, %v1899_v39  ;;  %v1613_v51 = vadd.f32 %v8106_v47, %v1612_v57  ;;  %v1901_v38 = vpop.f32.mrf.mxu1 }
 0x20a   : > { %vm3418_vm8 = vcmp.eq.f32.partialorder %v3417_v56, 8.507059e+37  ;;  %v5291_v56 = vld [vmem:[%s6936_s4 + $0x2f0] sm:$0xf] }
 0x20b   : > { %v6524_v24 = vpop.eup %6523  ;;  %6282 = vst [vmem:[%s7165_s22 + $0x98] sm:$0xff] %v6082_v36   ;;  %v5720_v9 = vmul.f32 -1.442695, %v2188_v27  ;;  %1651 = vmatmul.bf16.gmra.mxu0 %v5272_v11  ;;  %2299 = vmatmul.bf16.gmra.mxu3 %v5448_v14  ;;  %v3412_v7 = vadd.f32 %v8082_v48, %v3411_v50  ;;  %v1902_v15 = vadd.f32 %v1901_v38, %v1613_v51  ;;  %v5283_v50 = vld [vmem:[%s6936_s4 + $0x2e8] sm:$0xf] }
 0x20c   : > { %v6526_v54 = vpop.eup %6525  ;;  %v8111_v21 = vadd.f32 1.0, %v6524_v24  ;;  %1940 = vmatmul.bf16.gmra.mxu1 %v5276_v58  ;;  %v5885_v38 = vld [vmem:[%s6936_s4 + $0x2ec] sm:$0xf]  ;;  %v5285_v24 = vld [vmem:[%s6936_s4 + $0x2f4] sm:$0xf0] }
 0x20d   : > { %v3424_v6 = vmul.f32 %v6526_v54, %v8085_v33  ;;  %6527 = vpow2.f32 %v5720_v9  ;;  %2229 = vmatmul.bf16.gmra.mxu2 %v5280_v8  ;;  %v3416_v17 = vsel %vm8123_vm6, %v8082_v48, %v3412_v7  ;;  %vm3429_vm7 = vweird.f32 %v6526_v54  ;;  %v5886_v48 = vld [vmem:[%s6936_s4 + $0x2f0] sm:$0xf0]  ;;  %v5459_v7 = vld [vmem:[%s6936_s4 + $0x440] sm:$0xf] }
 0x20e   : > { %6529 = vrcp.f32 %v8111_v21  ;;  %v2041_v29 = vpop.f32.mrf.mxu3  ;;  %v3421_v57 = vsel %vm3418_vm8, %v3420_v26, %v3416_v17  ;;  %vm3430_vm10 = vmor %vm3428_vm9, %vm3429_vm7  ;;  %v3435_v8 = vor.u32 1.1754944e-38, %v3434_v1  ;;  %v5284_v17 = vor.u32 %v5886_v48, %v5283_v50 }
 0x20f   : > { %v3425_v52 = vsub.f32 1.0, %v3424_v6  ;;  %v8129_v20 = vadd.f32 %v2041_v29, %v1753_v43  ;;  %v5929_v6 = vld [vmem:[%s6936_s4 + $0x448] sm:$0xf0]  ;;  %vm3443_vm13 = vweird.f32 %v8111_v21 }
 0x210   : > { %v2190_v5 = vpop.f32.mrf.mxu2  ;;  %v1614_v39 = vpop.f32.mrf.mxu0 }
 0x211   : > { %v3426_v18 = vmul.f32 %v6526_v54, %v3425_v52  ;;  %v2191_v2 = vadd.f32 %v2190_v5, %v1902_v15  ;;  %v1903_v22 = vpop.f32.mrf.mxu1  ;;  %v1615_v36 = vadd.f32 %v8106_v47, %v1614_v39  ;;  %v1755_v15 = vadd.f32 %v8106_v47, %v7452_v31 }
 0x212   : > { %v4550_v52 = vsub.f32 %v3421_v57, %v7137_v46 }
 0x213   : > { %v6528_v11 = vpop.eup %6527  ;;  %v3427_v58 = vadd.f32 %v6526_v54, %v3426_v18  ;;  %v5721_v14 = vmul.f32 -1.442695, %v2191_v2  ;;  %v1904_v10 = vadd.f32 %v1903_v22, %v1615_v36  ;;  %v5288_v18 = vor.u32 %v5885_v38, %v5285_v24 }
 0x214   : > { %v8138_v27 = vpop.eup %6529  ;;  %v8141_v51 = vadd.f32 1.0, %v6528_v11  ;;  %v5460_v2 = vor.u32 %v5929_v6, %v5459_v7  ;;  %v1758_v24 = vadd.f32 %v8106_v47, %v7466_v3  ;;  %v3449_v7 = vand.u32 2147483648, %v8111_v21 }
 0x215   : > { %v3431_v33 = vsel %vm3430_vm10, %v6526_v54, %v3427_v58  ;;  %v3439_v9 = vmul.f32 %v8138_v27, %v8111_v21  ;;  %6531 = vpow2.f32 %v5721_v14  ;;  %v5292_v58 = vor.u32 %v5887_v23, %v5291_v56 }
 0x216   : > { %v3436_v43 = vsel %vm3433_vm11, %v3435_v8, %v3431_v33  ;;  %6533 = vrcp.f32 %v8141_v51  ;;  %v2043_v16 = vpop.f32.mrf.mxu3  ;;  %vm3444_vm12 = vweird.f32 %v8138_v27  ;;  %v3462_v56 = vand.u32 2147483647, %v8141_v51 }
 0x217   : > { %v4551_v29 = vsub.f32 %v3436_v43, %v7137_v46  ;;  %v3440_v54 = vsub.f32 1.0, %v3439_v9  ;;  %v8156_v1 = vadd.f32 %v2043_v16, %v1755_v15  ;;  %v3447_v9 = vand.u32 2147483647, %v8111_v21  ;;  %vm8174_vm14 = vmor %vm3443_vm13, %vm3444_vm12 }
 0x218   : > { %v2192_v5 = vpop.f32.mrf.mxu2  ;;  %v1617_v11 = vpop.f32.mrf.mxu0  ;;  %v3464_v3 = vand.u32 2147483648, %v8141_v51  ;;  %v3450_v16 = vor.u32 1.1754944e-38, %v3449_v7  ;;  %vm3458_vm1 = vweird.f32 %v8141_v51  ;;  %vm3463_vm3 = vcmp.eq.f32.partialorder %v3462_v56, 8.507059e+37  ;;  %v5890_v7 = vld [vmem:[%s6936_s4 + $0x310] sm:$0xf0] }
 0x219   : > { %v6087_v31 = vpack.c.bf16 %v4551_v29, %v4550_v52  ;;  %v3441_v39 = vmul.f32 %v8138_v27, %v3440_v54  ;;  %v2193_v26 = vadd.f32 %v2192_v5, %v1904_v10  ;;  %v1618_v14 = vadd.f32 %v8106_v47, %v1617_v11  ;;  %v1906_v57 = vpop.f32.mrf.mxu1 }
 0x21a   : > { %vm3448_vm0 = vcmp.eq.f32.partialorder %v3447_v9, 8.507059e+37  ;;  %v5303_v9 = vld [vmem:[%s6936_s4 + $0x308] sm:$0xf] }
 0x21b   : > { %v6532_v8 = vpop.eup %6531  ;;  %6283 = vst [vmem:[%s7165_s22 + $0xa0] sm:$0xff] %v6087_v31   ;;  %v5722_v33 = vmul.f32 -1.442695, %v2193_v26  ;;  %1656 = vmatmul.bf16.gmra.mxu0 %v5284_v17  ;;  %2304 = vmatmul.bf16.gmra.mxu3 %v5460_v2  ;;  %v3442_v50 = vadd.f32 %v8138_v27, %v3441_v39  ;;  %v1907_v38 = vadd.f32 %v1906_v57, %v1618_v14  ;;  %v5295_v39 = vld [vmem:[%s6936_s4 + $0x300] sm:$0xf] }
 0x21c   : > { %v6534_v22 = vpop.eup %6533  ;;  %v8162_v36 = vadd.f32 1.0, %v6532_v8  ;;  %1945 = vmatmul.bf16.gmra.mxu1 %v5288_v18  ;;  %v5888_v57 = vld [vmem:[%s6936_s4 + $0x304] sm:$0xf]  ;;  %v5297_v8 = vld [vmem:[%s6936_s4 + $0x30c] sm:$0xf0] }
 0x21d   : > { %v3454_v48 = vmul.f32 %v6534_v22, %v8141_v51  ;;  %6535 = vpow2.f32 %v5722_v33  ;;  %2234 = vmatmul.bf16.gmra.mxu2 %v5292_v58  ;;  %v3446_v21 = vsel %vm8174_vm14, %v8138_v27, %v3442_v50  ;;  %vm3459_vm15 = vweird.f32 %v6534_v22  ;;  %v5889_v27 = vld [vmem:[%s6936_s4 + $0x308] sm:$0xf0]  ;;  %v5471_v50 = vld [vmem:[%s6936_s4 + $0x458] sm:$0xf] }
 0x21e   : > { %6537 = vrcp.f32 %v8162_v36  ;;  %v2046_v15 = vpop.f32.mrf.mxu3  ;;  %v3451_v11 = vsel %vm3448_vm0, %v3450_v16, %v3446_v21  ;;  %vm3460_vm2 = vmor %vm3458_vm1, %vm3459_vm15  ;;  %v3465_v58 = vor.u32 1.1754944e-38, %v3464_v3  ;;  %v5296_v21 = vor.u32 %v5889_v27, %v5295_v39 }
 0x21f   : > { %v3455_v6 = vsub.f32 1.0, %v3454_v48  ;;  %v8180_v23 = vadd.f32 %v2046_v15, %v1758_v24  ;;  %v5932_v48 = vld [vmem:[%s6936_s4 + $0x460] sm:$0xf0]  ;;  %vm3473_vm5 = vweird.f32 %v8162_v36 }
 0x220   : > { %v2195_v52 = vpop.f32.mrf.mxu2  ;;  %v1619_v10 = vpop.f32.mrf.mxu0 }
 0x221   : > { %v3456_v29 = vmul.f32 %v6534_v22, %v3455_v6  ;;  %v2196_v54 = vadd.f32 %v2195_v52, %v1907_v38  ;;  %v1908_v5 = vpop.f32.mrf.mxu1  ;;  %v1620_v31 = vadd.f32 %v8106_v47, %v1619_v10  ;;  %v1760_v38 = vadd.f32 %v8106_v47, %v7499_v4 }
 0x222   : > { %v4552_v6 = vsub.f32 %v3451_v11, %v7137_v46 }
 0x223   : > { %v6536_v17 = vpop.eup %6535  ;;  %v3457_v18 = vadd.f32 %v6534_v22, %v3456_v29  ;;  %v5723_v2 = vmul.f32 -1.442695, %v2196_v54  ;;  %v1909_v43 = vadd.f32 %v1908_v5, %v1620_v31  ;;  %v5300_v29 = vor.u32 %v5888_v57, %v5297_v8 }
 0x224   : > { %v8189_v26 = vpop.eup %6537  ;;  %v8192_v14 = vadd.f32 1.0, %v6536_v17  ;;  %v5472_v54 = vor.u32 %v5932_v48, %v5471_v50  ;;  %v1763_v8 = vadd.f32 %v8106_v47, %v7513_v13  ;;  %v3479_v50 = vand.u32 2147483648, %v8162_v36 }
 0x225   : > { %v3461_v51 = vsel %vm3460_vm2, %v6534_v22, %v3457_v18  ;;  %v3469_v33 = vmul.f32 %v8189_v26, %v8162_v36  ;;  %6539 = vpow2.f32 %v5723_v2  ;;  %v5304_v18 = vor.u32 %v5890_v7, %v5303_v9 }
 0x226   : > { %v3466_v24 = vsel %vm3463_vm3, %v3465_v58, %v3461_v51  ;;  %6541 = vrcp.f32 %v8192_v14  ;;  %v2048_v56 = vpop.f32.mrf.mxu3  ;;  %vm3474_vm4 = vweird.f32 %v8189_v26  ;;  %v3492_v9 = vand.u32 2147483647, %v8192_v14 }
 0x227   : > { %v4553_v15 = vsub.f32 %v3466_v24, %v7137_v46  ;;  %v3470_v22 = vsub.f32 1.0, %v3469_v33  ;;  %v8207_v3 = vadd.f32 %v2048_v56, %v1760_v38  ;;  %v3477_v33 = vand.u32 2147483647, %v8162_v36  ;;  %vm8225_vm6 = vmor %vm3473_vm5, %vm3474_vm4 }
 0x228   : > { %v2197_v52 = vpop.f32.mrf.mxu2  ;;  %v1622_v17 = vpop.f32.mrf.mxu0  ;;  %v3494_v13 = vand.u32 2147483648, %v8192_v14  ;;  %v3480_v56 = vor.u32 1.1754944e-38, %v3479_v50  ;;  %vm3488_vm9 = vweird.f32 %v8192_v14  ;;  %vm3493_vm11 = vcmp.eq.f32.partialorder %v3492_v9, 8.507059e+37  ;;  %v5893_v50 = vld [vmem:[%s6936_s4 + $0x328] sm:$0xf0] }
 0x229   : > { %v6092_v4 = vpack.c.bf16 %v4553_v15, %v4552_v6  ;;  %v3471_v10 = vmul.f32 %v8189_v26, %v3470_v22  ;;  %v2198_v16 = vadd.f32 %v2197_v52, %v1909_v43  ;;  %v1623_v2 = vadd.f32 %v8106_v47, %v1622_v17  ;;  %v1911_v11 = vpop.f32.mrf.mxu1 }
 0x22a   : > { %vm3478_vm8 = vcmp.eq.f32.partialorder %v3477_v33, 8.507059e+37  ;;  %v5315_v33 = vld [vmem:[%s6936_s4 + $0x320] sm:$0xf] }
 0x22b   : > { %v6540_v58 = vpop.eup %6539  ;;  %6284 = vst [vmem:[%s7165_s22 + $0xa8] sm:$0xff] %v6092_v4   ;;  %v5724_v51 = vmul.f32 -1.442695, %v2198_v16  ;;  %1661 = vmatmul.bf16.gmra.mxu0 %v5296_v21  ;;  %2309 = vmatmul.bf16.gmra.mxu3 %v5472_v54  ;;  %v3472_v39 = vadd.f32 %v8189_v26, %v3471_v10  ;;  %v1912_v57 = vadd.f32 %v1911_v11, %v1623_v2  ;;  %v5307_v10 = vld [vmem:[%s6936_s4 + $0x318] sm:$0xf] }
 0x22c   : > { %v6542_v5 = vpop.eup %6541  ;;  %v8213_v31 = vadd.f32 1.0, %v6540_v58  ;;  %1950 = vmatmul.bf16.gmra.mxu1 %v5300_v29  ;;  %v5891_v11 = vld [vmem:[%s6936_s4 + $0x31c] sm:$0xf]  ;;  %v5309_v58 = vld [vmem:[%s6936_s4 + $0x324] sm:$0xf0] }
 0x22d   : > { %v3484_v27 = vmul.f32 %v6542_v5, %v8192_v14  ;;  %6543 = vpow2.f32 %v5724_v51  ;;  %2239 = vmatmul.bf16.gmra.mxu2 %v5304_v18  ;;  %v3476_v36 = vsel %vm8225_vm6, %v8189_v26, %v3472_v39  ;;  %vm3489_vm7 = vweird.f32 %v6542_v5  ;;  %v5892_v26 = vld [vmem:[%s6936_s4 + $0x320] sm:$0xf0]  ;;  %v5483_v39 = vld [vmem:[%s6936_s4 + $0x470] sm:$0xf] }
 0x22e   : > { %6545 = vrcp.f32 %v8213_v31  ;;  %v2051_v38 = vpop.f32.mrf.mxu3  ;;  %v3481_v17 = vsel %vm3478_vm8, %v3480_v56, %v3476_v36  ;;  %vm3490_vm10 = vmor %vm3488_vm9, %vm3489_vm7  ;;  %v3495_v18 = vor.u32 1.1754944e-38, %v3494_v13  ;;  %v5308_v36 = vor.u32 %v5892_v26, %v5307_v10 }
 0x22f   : > { %v3485_v48 = vsub.f32 1.0, %v3484_v27  ;;  %v8231_v7 = vadd.f32 %v2051_v38, %v1763_v8  ;;  %v5935_v27 = vld [vmem:[%s6936_s4 + $0x478] sm:$0xf0]  ;;  %vm3503_vm13 = vweird.f32 %v8213_v31 }
 0x230   : > { %v2200_v6 = vpop.f32.mrf.mxu2  ;;  %v1624_v43 = vpop.f32.mrf.mxu0 }
 0x231   : > { %v3486_v15 = vmul.f32 %v6542_v5, %v3485_v48  ;;  %v2201_v22 = vadd.f32 %v2200_v6, %v1912_v57  ;;  %v1913_v52 = vpop.f32.mrf.mxu1  ;;  %v1625_v4 = vadd.f32 %v8106_v47, %v1624_v43  ;;  %v1765_v57 = vadd.f32 %v8106_v47, %v7546_v25 }
 0x232   : > { %v4554_v48 = vsub.f32 %v3481_v17, %v7137_v46 }
 0x233   : > { %v6544_v21 = vpop.eup %6543  ;;  %v3487_v29 = vadd.f32 %v6542_v5, %v3486_v15  ;;  %v5725_v54 = vmul.f32 -1.442695, %v2201_v22  ;;  %v1914_v24 = vadd.f32 %v1913_v52, %v1625_v4  ;;  %v5312_v15 = vor.u32 %v5891_v11, %v5309_v58 }
 0x234   : > { %v8240_v16 = vpop.eup %6545  ;;  %v8243_v2 = vadd.f32 1.0, %v6544_v21  ;;  %v5484_v22 = vor.u32 %v5935_v27, %v5483_v39  ;;  %v1768_v58 = vadd.f32 %v8106_v47, %v7560_v42  ;;  %v3509_v39 = vand.u32 2147483648, %v8213_v31 }
 0x235   : > { %v3491_v14 = vsel %vm3490_vm10, %v6542_v5, %v3487_v29  ;;  %v3499_v51 = vmul.f32 %v8240_v16, %v8213_v31  ;;  %6547 = vpow2.f32 %v5725_v54  ;;  %v5316_v29 = vor.u32 %v5893_v50, %v5315_v33 }
 0x236   : > { %v3496_v8 = vsel %vm3493_vm11, %v3495_v18, %v3491_v14  ;;  %6549 = vrcp.f32 %v8243_v2  ;;  %v2053_v9 = vpop.f32.mrf.mxu3  ;;  %vm3504_vm12 = vweird.f32 %v8240_v16  ;;  %v3522_v33 = vand.u32 2147483647, %v8243_v2 }
 0x237   : > { %v4555_v38 = vsub.f32 %v3496_v8, %v7137_v46  ;;  %v3500_v5 = vsub.f32 1.0, %v3499_v51  ;;  %v8258_v13 = vadd.f32 %v2053_v9, %v1765_v57  ;;  %v3507_v51 = vand.u32 2147483647, %v8213_v31  ;;  %vm8276_vm14 = vmor %vm3503_vm13, %vm3504_vm12 }
 0x238   : > { %v2202_v6 = vpop.f32.mrf.mxu2  ;;  %v1627_v21 = vpop.f32.mrf.mxu0  ;;  %v3524_v42 = vand.u32 2147483648, %v8243_v2  ;;  %v3510_v9 = vor.u32 1.1754944e-38, %v3509_v39  ;;  %vm3518_vm1 = vweird.f32 %v8243_v2  ;;  %vm3523_vm3 = vcmp.eq.f32.partialorder %v3522_v33, 8.507059e+37  ;;  %v5896_v39 = vld [vmem:[%s6936_s4 + $0x340] sm:$0xf0] }
 0x239   : > { %v6097_v25 = vpack.c.bf16 %v4555_v38, %v4554_v48  ;;  %v3501_v43 = vmul.f32 %v8240_v16, %v3500_v5  ;;  %v2203_v56 = vadd.f32 %v2202_v6, %v1914_v24  ;;  %v1628_v54 = vadd.f32 %v8106_v47, %v1627_v21  ;;  %v1916_v17 = vpop.f32.mrf.mxu1 }
 0x23a   : > { %vm3508_vm0 = vcmp.eq.f32.partialorder %v3507_v51, 8.507059e+37  ;;  %v5327_v51 = vld [vmem:[%s6936_s4 + $0x338] sm:$0xf] }
 0x23b   : > { %v6548_v18 = vpop.eup %6547  ;;  %6285 = vst [vmem:[%s7165_s22 + $0xb0] sm:$0xff] %v6097_v25   ;;  %v5726_v14 = vmul.f32 -1.442695, %v2203_v56  ;;  %1666 = vmatmul.bf16.gmra.mxu0 %v5308_v36  ;;  %2314 = vmatmul.bf16.gmra.mxu3 %v5484_v22  ;;  %v3502_v10 = vadd.f32 %v8240_v16, %v3501_v43  ;;  %v1917_v11 = vadd.f32 %v1916_v17, %v1628_v54  ;;  %v5319_v43 = vld [vmem:[%s6936_s4 + $0x330] sm:$0xf] }
 0x23c   : > { %v6550_v52 = vpop.eup %6549  ;;  %v8264_v4 = vadd.f32 1.0, %v6548_v18  ;;  %1955 = vmatmul.bf16.gmra.mxu1 %v5312_v15  ;;  %v5894_v17 = vld [vmem:[%s6936_s4 + $0x334] sm:$0xf]  ;;  %v5321_v18 = vld [vmem:[%s6936_s4 + $0x33c] sm:$0xf0] }
 0x23d   : > { %v3514_v26 = vmul.f32 %v6550_v52, %v8243_v2  ;;  %6551 = vpow2.f32 %v5726_v14  ;;  %2244 = vmatmul.bf16.gmra.mxu2 %v5316_v29  ;;  %v3506_v31 = vsel %vm8276_vm14, %v8240_v16, %v3502_v10  ;;  %vm3519_vm15 = vweird.f32 %v6550_v52  ;;  %v5895_v16 = vld [vmem:[%s6936_s4 + $0x338] sm:$0xf0]  ;;  %v5495_v10 = vld [vmem:[%s6936_s4 + $0x488] sm:$0xf] }
 0x23e   : > { %6553 = vrcp.f32 %v8264_v4  ;;  %v2056_v57 = vpop.f32.mrf.mxu3  ;;  %v3511_v21 = vsel %vm3508_vm0, %v3510_v9, %v3506_v31  ;;  %vm3520_vm2 = vmor %vm3518_vm1, %vm3519_vm15  ;;  %v3525_v29 = vor.u32 1.1754944e-38, %v3524_v42  ;;  %v5320_v31 = vor.u32 %v5895_v16, %v5319_v43 }
 0x23f   : > { %v3515_v27 = vsub.f32 1.0, %v3514_v26  ;;  %v8282_v50 = vadd.f32 %v2056_v57, %v1768_v58  ;;  %v5938_v26 = vld [vmem:[%s6936_s4 + $0x490] sm:$0xf0]  ;;  %vm3533_vm5 = vweird.f32 %v8264_v4 }
 0x240   : > { %v2205_v48 = vpop.f32.mrf.mxu2  ;;  %v1629_v24 = vpop.f32.mrf.mxu0 }
 0x241   : > { %v3516_v38 = vmul.f32 %v6550_v52, %v3515_v27  ;;  %v2206_v5 = vadd.f32 %v2205_v48, %v1917_v11  ;;  %v1918_v6 = vpop.f32.mrf.mxu1  ;;  %v1630_v25 = vadd.f32 %v8106_v47, %v1629_v24  ;;  %v1770_v11 = vadd.f32 %v8106_v47, %v7593_v28 }
 0x242   : > { %v4556_v27 = vsub.f32 %v3511_v21, %v7137_v46 }
 0x243   : > { %v6552_v36 = vpop.eup %6551  ;;  %v3517_v15 = vadd.f32 %v6550_v52, %v3516_v38  ;;  %v5727_v22 = vmul.f32 -1.442695, %v2206_v5  ;;  %v1919_v8 = vadd.f32 %v1918_v6, %v1630_v25  ;;  %v5324_v38 = vor.u32 %v5894_v17, %v5321_v18 }
 0x244   : > { %v8291_v56 = vpop.eup %6553  ;;  %v8294_v54 = vadd.f32 1.0, %v6552_v36  ;;  %v5496_v5 = vor.u32 %v5938_v26, %v5495_v10  ;;  %v1773_v18 = vadd.f32 %v8106_v47, %v7607_v32  ;;  %v3539_v10 = vand.u32 2147483648, %v8264_v4 }
 0x245   : > { %v3521_v2 = vsel %vm3520_vm2, %v6550_v52, %v3517_v15  ;;  %v3529_v14 = vmul.f32 %v8291_v56, %v8264_v4  ;;  %6555 = vpow2.f32 %v5727_v22  ;;  %v5328_v15 = vor.u32 %v5896_v39, %v5327_v51 }
 0x246   : > { %v3526_v58 = vsel %vm3523_vm3, %v3525_v29, %v3521_v2  ;;  %6557 = vrcp.f32 %v8294_v54  ;;  %v2058_v33 = vpop.f32.mrf.mxu3  ;;  %vm3534_vm4 = vweird.f32 %v8291_v56  ;;  %v3552_v51 = vand.u32 2147483647, %v8294_v54 }
 0x247   : > { %v4557_v57 = vsub.f32 %v3526_v58, %v7137_v46  ;;  %v3530_v52 = vsub.f32 1.0, %v3529_v14  ;;  %v8309_v42 = vadd.f32 %v2058_v33, %v1770_v11  ;;  %v3537_v14 = vand.u32 2147483647, %v8264_v4  ;;  %vm8327_vm6 = vmor %vm3533_vm5, %vm3534_vm4 }
 0x248   : > { %v2207_v48 = vpop.f32.mrf.mxu2  ;;  %v1632_v36 = vpop.f32.mrf.mxu0  ;;  %v3554_v32 = vand.u32 2147483648, %v8294_v54  ;;  %v3540_v33 = vor.u32 1.1754944e-38, %v3539_v10  ;;  %vm3548_vm9 = vweird.f32 %v8294_v54  ;;  %vm3553_vm11 = vcmp.eq.f32.partialorder %v3552_v51, 8.507059e+37  ;;  %v5899_v10 = vld [vmem:[%s6936_s4 + $0x358] sm:$0xf0] }
 0x249   : > { %v6102_v28 = vpack.c.bf16 %v4557_v57, %v4556_v27  ;;  %v3531_v24 = vmul.f32 %v8291_v56, %v3530_v52  ;;  %v2208_v9 = vadd.f32 %v2207_v48, %v1919_v8  ;;  %v1633_v22 = vadd.f32 %v8106_v47, %v1632_v36  ;;  %v1921_v21 = vpop.f32.mrf.mxu1 }
 0x24a   : > { %vm3538_vm8 = vcmp.eq.f32.partialorder %v3537_v14, 8.507059e+37  ;;  %v5339_v14 = vld [vmem:[%s6936_s4 + $0x350] sm:$0xf] }
 0x24b   : > { %v6556_v29 = vpop.eup %6555  ;;  %6286 = vst [vmem:[%s7165_s22 + $0xb8] sm:$0xff] %v6102_v28   ;;  %v5728_v2 = vmul.f32 -1.442695, %v2208_v9  ;;  %1671 = vmatmul.bf16.gmra.mxu0 %v5320_v31  ;;  %2319 = vmatmul.bf16.gmra.mxu3 %v5496_v5  ;;  %v3532_v43 = vadd.f32 %v8291_v56, %v3531_v24  ;;  %v1922_v17 = vadd.f32 %v1921_v21, %v1633_v22  ;;  %v5331_v24 = vld [vmem:[%s6936_s4 + $0x348] sm:$0xf] }
 0x24c   : > { %v6558_v6 = vpop.eup %6557  ;;  %v8315_v25 = vadd.f32 1.0, %v6556_v29  ;;  %1960 = vmatmul.bf16.gmra.mxu1 %v5324_v38  ;;  %v5897_v21 = vld [vmem:[%s6936_s4 + $0x34c] sm:$0xf]  ;;  %v5333_v29 = vld [vmem:[%s6936_s4 + $0x354] sm:$0xf0] }
 0x24d   : > { %v3544_v16 = vmul.f32 %v6558_v6, %v8294_v54  ;;  %6559 = vpow2.f32 %v5728_v2  ;;  %2249 = vmatmul.bf16.gmra.mxu2 %v5328_v15  ;;  %v3536_v4 = vsel %vm8327_vm6, %v8291_v56, %v3532_v43  ;;  %vm3549_vm7 = vweird.f32 %v6558_v6  ;;  %v5898_v56 = vld [vmem:[%s6936_s4 + $0x350] sm:$0xf0]  ;;  %v5507_v43 = vld [vmem:[%s6936_s4 + $0x4a0] sm:$0xf] }
 0x24e   : > { %6561 = vrcp.f32 %v8315_v25  ;;  %v2061_v11 = vpop.f32.mrf.mxu3  ;;  %v3541_v36 = vsel %vm3538_vm8, %v3540_v33, %v3536_v4  ;;  %vm3550_vm10 = vmor %vm3548_vm9, %vm3549_vm7  ;;  %v3555_v15 = vor.u32 1.1754944e-38, %v3554_v32  ;;  %v5332_v4 = vor.u32 %v5898_v56, %v5331_v24 }
 0x24f   : > { %v3545_v26 = vsub.f32 1.0, %v3544_v16  ;;  %v8333_v39 = vadd.f32 %v2061_v11, %v1773_v18  ;;  %v5941_v16 = vld [vmem:[%s6936_s4 + $0x4a8] sm:$0xf0]  ;;  %vm3563_vm13 = vweird.f32 %v8315_v25 }
 0x250   : > { %v2210_v27 = vpop.f32.mrf.mxu2  ;;  %v1634_v8 = vpop.f32.mrf.mxu0 }
 0x251   : > { %v3546_v57 = vmul.f32 %v6558_v6, %v3545_v26  ;;  %v2211_v52 = vadd.f32 %v2210_v27, %v1922_v17  ;;  %v1923_v48 = vpop.f32.mrf.mxu1  ;;  %v1635_v28 = vadd.f32 %v8106_v47, %v1634_v8  ;;  %v1775_v17 = vadd.f32 %v8106_v47, %v7640_v19 }
 0x252   : > { %v4558_v26 = vsub.f32 %v3541_v36, %v7137_v46 }
 0x253   : > { %v6560_v31 = vpop.eup %6559  ;;  %v3547_v38 = vadd.f32 %v6558_v6, %v3546_v57  ;;  %v5729_v5 = vmul.f32 -1.442695, %v2211_v52  ;;  %v1924_v58 = vadd.f32 %v1923_v48, %v1635_v28  ;;  %v5336_v57 = vor.u32 %v5897_v21, %v5333_v29 }
 0x254   : > { %v8342_v9 = vpop.eup %6561  ;;  %v8345_v22 = vadd.f32 1.0, %v6560_v31  ;;  %v5508_v52 = vor.u32 %v5941_v16, %v5507_v43  ;;  %v1778_v29 = vadd.f32 %v8106_v47, %v7654_v62  ;;  %v3569_v43 = vand.u32 2147483648, %v8315_v25 }
 0x255   : > { %v3551_v54 = vsel %vm3550_vm10, %v6558_v6, %v3547_v38  ;;  %v3559_v2 = vmul.f32 %v8342_v9, %v8315_v25  ;;  %6563 = vpow2.f32 %v5729_v5  ;;  %v5340_v38 = vor.u32 %v5899_v10, %v5339_v14 }
 0x256   : > { %v3556_v18 = vsel %vm3553_vm11, %v3555_v15, %v3551_v54  ;;  %6565 = vrcp.f32 %v8345_v22  ;;  %v2063_v51 = vpop.f32.mrf.mxu3  ;;  %vm3564_vm12 = vweird.f32 %v8342_v9  ;;  %v3582_v14 = vand.u32 2147483647, %v8345_v22 }
 0x257   : > { %v4559_v11 = vsub.f32 %v3556_v18, %v7137_v46  ;;  %v3560_v6 = vsub.f32 1.0, %v3559_v2  ;;  %v8360_v32 = vadd.f32 %v2063_v51, %v1775_v17  ;;  %v3567_v2 = vand.u32 2147483647, %v8315_v25  ;;  %vm8378_vm14 = vmor %vm3563_vm13, %vm3564_vm12 }
 0x258   : > { %v2212_v27 = vpop.f32.mrf.mxu2  ;;  %v1637_v31 = vpop.f32.mrf.mxu0  ;;  %v3584_v62 = vand.u32 2147483648, %v8345_v22  ;;  %v3570_v51 = vor.u32 1.1754944e-38, %v3569_v43  ;;  %vm3578_vm1 = vweird.f32 %v8345_v22  ;;  %vm3583_vm3 = vcmp.eq.f32.partialorder %v3582_v14, 8.507059e+37 }
 0x259   : > { %v6107_v19 = vpack.c.bf16 %v4559_v11, %v4558_v26  ;;  %v3561_v8 = vmul.f32 %v8342_v9, %v3560_v6  ;;  %v2213_v33 = vadd.f32 %v2212_v27, %v1924_v58  ;;  %v1638_v5 = vadd.f32 %v8106_v47, %v1637_v31  ;;  %v1926_v36 = vpop.f32.mrf.mxu1 }
 0x25a   : > { %vm3568_vm0 = vcmp.eq.f32.partialorder %v3567_v2, 8.507059e+37  ;;  %v5902_v2 = vld [vmem:[%s6936_s4 + $0x370] sm:$0xf0] }
 0x25b   : > { %v6564_v15 = vpop.eup %6563  ;;  %6287 = vst [vmem:[%s7165_s22 + $0xc0] sm:$0xff] %v6107_v19   ;;  %v5730_v54 = vmul.f32 -1.442695, %v2213_v33  ;;  %1676 = vmatmul.bf16.gmra.mxu0 %v5332_v4  ;;  %2324 = vmatmul.bf16.gmra.mxu3 %v5508_v52  ;;  %v3562_v24 = vadd.f32 %v8342_v9, %v3561_v8  ;;  %v1927_v21 = vadd.f32 %v1926_v36, %v1638_v5  ;;  %v5343_v8 = vld [vmem:[%s6936_s4 + $0x360] sm:$0xf] }
 0x25c   : > { %v6566_v48 = vpop.eup %6565  ;;  %v8366_v28 = vadd.f32 1.0, %v6564_v15  ;;  %1965 = vmatmul.bf16.gmra.mxu1 %v5336_v57  ;;  %v5900_v36 = vld [vmem:[%s6936_s4 + $0x364] sm:$0xf]  ;;  %v5345_v15 = vld [vmem:[%s6936_s4 + $0x36c] sm:$0xf0] }
 0x25d   : > { %v3574_v56 = vmul.f32 %v6566_v48, %v8345_v22  ;;  %6567 = vpow2.f32 %v5730_v54  ;;  %2254 = vmatmul.bf16.gmra.mxu2 %v5340_v38  ;;  %v3566_v25 = vsel %vm8378_vm14, %v8342_v9, %v3562_v24  ;;  %vm3579_vm15 = vweird.f32 %v6566_v48  ;;  %v5901_v9 = vld [vmem:[%s6936_s4 + $0x368] sm:$0xf0]  ;;  %v5519_v24 = vld [vmem:[%s6936_s4 + $0x4b8] sm:$0xf] }
 0x25e   : > { %6569 = vrcp.f32 %v8366_v28  ;;  %v2066_v17 = vpop.f32.mrf.mxu3  ;;  %v3571_v31 = vsel %vm3568_vm0, %v3570_v51, %v3566_v25  ;;  %vm3580_vm2 = vmor %vm3578_vm1, %vm3579_vm15  ;;  %v3585_v38 = vor.u32 1.1754944e-38, %v3584_v62  ;;  %v5344_v62 = vor.u32 %v5901_v9, %v5343_v8 }
 0x25f   : > { %v3575_v16 = vsub.f32 1.0, %v3574_v56  ;;  %v8384_v10 = vadd.f32 %v2066_v17, %v1778_v29  ;;  %v5944_v56 = vld [vmem:[%s6936_s4 + $0x4c0] sm:$0xf0]  ;;  %v5351_v29 = vld [vmem:[%s6936_s4 + $0x368] sm:$0xf]  ;;  %v4560_v43 = vsub.f32 %v3571_v31, %v7137_v46  ;;  %vm3593_vm5 = vweird.f32 %v8366_v28 }
 0x260   : > { %v2215_v26 = vpop.f32.mrf.mxu2  ;;  %v1639_v58 = vpop.f32.mrf.mxu0  ;;  %v5520_v25 = vor.u32 %v5944_v56, %v5519_v24 }
 0x261   : > { %v3576_v11 = vmul.f32 %v6566_v48, %v3575_v16  ;;  %v2216_v6 = vadd.f32 %v2215_v26, %v1927_v21  ;;  %v1928_v27 = vpop.f32.mrf.mxu1  ;;  %v1640_v19 = vadd.f32 %v8106_v47, %v1639_v58  ;;  %v5348_v26 = vor.u32 %v5900_v36, %v5345_v15 }
 0x262   : > { %v3597_v36 = vand.u32 2147483647, %v8366_v28  ;;  %v3599_v15 = vand.u32 2147483648, %v8366_v28 }
 0x263   : > { %v6568_v4 = vpop.eup %6567  ;;  %v3577_v57 = vadd.f32 %v6566_v48, %v3576_v11  ;;  %v5731_v52 = vmul.f32 -1.442695, %v2216_v6  ;;  %v1929_v18 = vadd.f32 %v1928_v27, %v1640_v19 }
 0x264   : > { %v8393_v33 = vpop.eup %6569  ;;  %v8396_v5 = vadd.f32 1.0, %v6568_v4  ;;  %v5352_v4 = vor.u32 %v5902_v2, %v5351_v29  ;;  %vm3598_vm8 = vcmp.eq.f32.partialorder %v3597_v36, 8.507059e+37  ;;  %v5947_v36 = vld [vmem:[%s6936_s4 + $0x4d8] sm:$0xf0] }
 0x265   : > { %v3581_v22 = vsel %vm3580_vm2, %v6566_v48, %v3577_v57  ;;  %v3589_v54 = vmul.f32 %v8393_v33, %v8366_v28  ;;  %6571 = vpow2.f32 %v5731_v52  ;;  %vm3594_vm4 = vweird.f32 %v8393_v33 }
 0x266   : > { %v3586_v21 = vsel %vm3583_vm3, %v3585_v38, %v3581_v22  ;;  %6573 = vrcp.f32 %v8396_v5  ;;  %v8409_v48 = vpop.f32.mrf.mxu3  ;;  %vm8425_vm6 = vmor %vm3593_vm5, %vm3594_vm4  ;;  %v3614_v29 = vand.u32 2147483648, %v8396_v5  ;;  %vm3608_vm9 = vweird.f32 %v8396_v5 }
 0x267   : > { %v4561_v16 = vsub.f32 %v3586_v21, %v7137_v46  ;;  %v3590_v17 = vsub.f32 1.0, %v3589_v54  ;;  %v3612_v21 = vand.u32 2147483647, %v8396_v5 }
 0x268   : > { %v2217_v14 = vpop.f32.mrf.mxu2  ;;  %v1642_v51 = vpop.f32.mrf.mxu0 }
 0x269   : > { %v6112_v11 = vpack.c.bf16 %v4561_v16, %v4560_v43  ;;  %v3591_v6 = vmul.f32 %v8393_v33, %v3590_v17  ;;  %v2218_v58 = vadd.f32 %v2217_v14, %v1929_v18  ;;  %v1643_v57 = vadd.f32 %v8106_v47, %v1642_v51  ;;  %v1931_v52 = vpop.f32.mrf.mxu1  ;;  %v8436_v14 = vld [vmem:[%s6936_s4 + $0x378] sm:$0xf]  ;;  %v5903_v51 = vld [vmem:[%s6936_s4 + $0x37c] sm:$0xf] }
 0x26a   : > { %vm3613_vm11 = vcmp.eq.f32.partialorder %v3612_v21, 8.507059e+37 }
 0x26b   : > { %v6572_v31 = vpop.eup %6571  ;;  %6288 = vst [vmem:[%s7165_s22 + $0xc8] sm:$0xff] %v6112_v11   ;;  %v5732_v38 = vmul.f32 -1.442695, %v2218_v58  ;;  %1681 = vmatmul.bf16.gmra.mxu0 %v5344_v62  ;;  %2329 = vmatmul.bf16.gmra.mxu3 %v5520_v25  ;;  %v3592_v19 = vadd.f32 %v8393_v33, %v3591_v6  ;;  %v1932_v9 = vadd.f32 %v1931_v52, %v1643_v57  ;;  %v3600_v62 = vor.u32 1.1754944e-38, %v3599_v15  ;;  %v5904_v11 = vld [vmem:[%s6936_s4 + $0x380] sm:$0xf0] }
 0x26c   : > { %v6574_v22 = vpop.eup %6573  ;;  %v8415_v27 = vadd.f32 1.0, %v6572_v31  ;;  %1970 = vmatmul.bf16.gmra.mxu1 %v5348_v26  ;;  %v3615_v31 = vor.u32 1.1754944e-38, %v3614_v29 }
 0x26d   : > { %v3604_v8 = vmul.f32 %v6574_v22, %v8396_v5  ;;  %6575 = vpow2.f32 %v5732_v38  ;;  %2259 = vmatmul.bf16.gmra.mxu2 %v5352_v4  ;;  %v3596_v28 = vsel %vm8425_vm6, %v8393_v33, %v3592_v19  ;;  %vm3609_vm7 = vweird.f32 %v6574_v22  ;;  %v5357_v4 = vld [vmem:[%s6936_s4 + $0x384] sm:$0xf0]  ;;  %v5363_v19 = vld [vmem:[%s6936_s4 + $0x380] sm:$0xf] }
 0x26e   : > { %6577 = vrcp.f32 %v8415_v27  ;;  %v2290_v24 = vpop.f32.mrf.mxu3  ;;  %v3601_v52 = vsel %vm3598_vm8, %v3600_v62, %v3596_v28  ;;  %vm3610_vm10 = vmor %vm3608_vm9, %vm3609_vm7  ;;  %v5360_v28 = vor.u32 %v5903_v51, %v5357_v4  ;;  %vm3623_vm13 = vweird.f32 %v8415_v27 }
 0x26f   : > { %v3605_v54 = vsub.f32 1.0, %v3604_v8  ;;  %v2291_v43 = vadd.f32 %v2290_v24, %v7711_v60  ;;  %v5905_v8 = vld [vmem:[%s6936_s4 + $0x388] sm:$0xf0]  ;;  %v4562_v24 = vsub.f32 %v3601_v52, %v7137_v46 }
 0x270   : > { %v2220_v2 = vpop.f32.mrf.mxu2  ;;  %v1644_v18 = vpop.f32.mrf.mxu0 }
 0x271   : > { %v3606_v16 = vmul.f32 %v6574_v22, %v3605_v54  ;;  %v2221_v17 = vadd.f32 %v2220_v2, %v1932_v9  ;;  %v5761_v26 = vmul.f32 -1.442695, %v2291_v43  ;;  %v1933_v25 = vpop.f32.mrf.mxu1  ;;  %v1645_v58 = vadd.f32 %v8106_v47, %v1644_v18  ;;  %v5531_v47 = vld [vmem:[%s6936_s4 + $0x4d0] sm:$0xf] }
 0x272   : > { %v5356_v54 = vor.u32 %v5904_v11, %v8436_v14  ;;  %v3627_v14 = vand.u32 2147483647, %v8415_v27 }
 0x273   : > { %v6576_v60 = vpop.eup %6575  ;;  %v3607_v6 = vadd.f32 %v6574_v22, %v3606_v16  ;;  %v5733_v33 = vmul.f32 -1.442695, %v2221_v17  ;;  %6579 = vpow2.f32 %v5761_v26  ;;  %v1934_v2 = vadd.f32 %v1933_v25, %v1645_v58 }
 0x274   : > { %v8443_v57 = vpop.eup %6577  ;;  %v8446_v38 = vadd.f32 1.0, %v6576_v60  ;;  %v5364_v16 = vor.u32 %v5905_v8, %v5363_v19  ;;  %v5532_v17 = vor.u32 %v5947_v36, %v5531_v47  ;;  %v3629_v25 = vand.u32 2147483648, %v8415_v27  ;;  %v8477_v19 = vld [vmem:[%s6936_s4 + $0x398] sm:$0xf0]  ;;  %v8480_v8 = vld [vmem:[%s6936_s4 + $0x394] sm:$0xf] }
 0x275   : > { %v3611_v9 = vsel %vm3610_vm10, %v6574_v22, %v3607_v6  ;;  %v3619_v5 = vmul.f32 %v8443_v57, %v8415_v27  ;;  %6581 = vpow2.f32 %v5733_v33  ;;  %vm3624_vm12 = vweird.f32 %v8443_v57  ;;  %v8466_v6 = vld [vmem:[%s9952_s2] ss:$0 sm:$0xff] }
 0x276   : > { %v3616_v15 = vsel %vm3613_vm11, %v3615_v31, %v3611_v9  ;;  %6583 = vrcp.f32 %v8446_v38  ;;  %v2292_v43 = vpop.f32.mrf.mxu3  ;;  %v8474_v31 = vld [vmem:[%s6936_s4 + $0x390] sm:$0xf]  ;;  %v8486_v36 = vld [vmem:[%s6936_s4 + $0x39c] sm:$0xf0]  ;;  %vm8490_vm14 = vmor %vm3623_vm13, %vm3624_vm12  ;;  %vm8494_vm15 = vcmp.eq.f32.partialorder %v3627_v14, 8.507059e+37  ;;  %vm3638_vm1 = vweird.f32 %v8446_v38 }
 0x277   : > { %v4563_v56 = vsub.f32 %v3616_v15, %v7137_v46  ;;  %v3620_v29 = vsub.f32 1.0, %v3619_v5  ;;  %v2293_v21 = vadd.f32 %v2292_v43, %v7738_v12  ;;  %v3642_v43 = vand.u32 2147483647, %v8446_v38 }
 0x278   : > { %v2222_v22 = vpop.f32.mrf.mxu2  ;;  %v1647_v11 = vpop.f32.mrf.mxu0 }
 0x279   : > { %v6117_v18 = vpack.c.bf16 %v4563_v56, %v4562_v24  ;;  %v3621_v62 = vmul.f32 %v8443_v57, %v3620_v29  ;;  %v2223_v26 = vadd.f32 %v2222_v22, %v1934_v2  ;;  %v6580_v60 = vpop.eup %6579  ;;  %v5762_v12 = vmul.f32 -1.442695, %v2293_v21  ;;  %v1936_v58 = vpop.f32.mrf.mxu1  ;;  %v8501_v56 = vld [vmem:[%s6936_s4 + $0x398] sm:$0xf]  ;;  %v8504_v29 = vld [vmem:[%s6936_s4 + $0x3a0] sm:$0xf0] }
 0x27a   : > { %v1648_v33 = vadd.f32 %v8466_v6, %v1647_v11  ;;  %v8471_v52 = vadd.f32 1.0, %v6580_v60  ;;  %v3644_v22 = vand.u32 2147483648, %v8446_v38  ;;  %v3630_v21 = vor.u32 1.1754944e-38, %v3629_v25 }
 0x27b   : > { %v6582_v51 = vpop.eup %6581  ;;  %6289 = vst [vmem:[%s7165_s22 + $0xd0] sm:$0xff] %v6117_v18   ;;  %v3622_v4 = vadd.f32 %v8443_v57, %v3621_v62  ;;  %v5734_v47 = vmul.f32 -1.442695, %v2223_v26  ;;  %6585 = vpow2.f32 %v5762_v12  ;;  %1686 = vmatmul.bf16.gmra.mxu0 %v5356_v54  ;;  %2334 = vmatmul.bf16.gmra.mxu3 %v5532_v17  ;;  %v8513_v62 = vld [vmem:[%s6936_s4 + $0x4e8] sm:$0xf]  ;;  %vm8527_vm2 = vcmp.eq.f32.partialorder %v3642_v43, 8.507059e+37 }
 0x27c   : > { %v6584_v9 = vpop.eup %6583  ;;  %v8483_v5 = vadd.f32 1.0, %v6582_v51  ;;  %6587 = vrcp.f32 %v8471_v52  ;;  %v1937_v54 = vadd.f32 %v1936_v58, %v1648_v33  ;;  %1975 = vmatmul.bf16.gmra.mxu1 %v5360_v28  ;;  %v8516_v28 = vld [vmem:[%s6936_s4 + $0x4f0] sm:$0xf0]  ;;  %v3645_v51 = vor.u32 1.1754944e-38, %v3644_v22 }
 0x27d   : > { %v3634_v27 = vmul.f32 %v6584_v9, %v8446_v38  ;;  %2264 = vmatmul.bf16.gmra.mxu2 %v5364_v16  ;;  %v3626_v2 = vsel %vm8490_vm14, %v8443_v57, %v3622_v4  ;;  %vm3639_vm0 = vweird.f32 %v6584_v9  ;;  %v5544_v4 = vor.u32 %v8516_v28, %v8513_v62 }
 0x27e   : > { %6589 = vrcp.f32 %v8483_v5  ;;  %v2295_v18 = vpop.f32.mrf.mxu3  ;;  %v3631_v11 = vsel %vm8494_vm15, %v3630_v21, %v3626_v2  ;;  %v3657_v24 = vand.u32 2147483647, %v8483_v5  ;;  %vm3640_vm3 = vmor %vm3638_vm1, %vm3639_vm0  ;;  %v3659_v43 = vand.u32 2147483648, %v8483_v5 }
 0x27f   : > { %v3635_v17 = vsub.f32 1.0, %v3634_v27  ;;  %6591 = vpow2.f32 %v5734_v47  ;;  %v4564_v38 = vsub.f32 %v3631_v11, %v7137_v46  ;;  %vm3653_vm4 = vweird.f32 %v8483_v5 }
 0x280   : > { %v2225_v16 = vpop.f32.mrf.mxu2  ;;  %v1649_v12 = vpop.f32.mrf.mxu0  ;;  %vm8564_vm7 = vcmp.eq.f32.partialorder %v3657_v24, 8.507059e+37  ;;  %vm4073_vm8 = vweird.f32 %v8471_v52 }
 0x281   : > { %v3636_v60 = vmul.f32 %v6584_v9, %v3635_v17  ;;  %v2226_v25 = vadd.f32 %v2225_v16, %v1937_v54  ;;  %v6586_v33 = vpop.eup %6585  ;;  %v2296_v54 = vadd.f32 %v2295_v18, %v7767_v59  ;;  %v1938_v2 = vpop.f32.mrf.mxu1  ;;  %v1650_v59 = vadd.f32 %v8466_v6, %v1649_v12 }
 0x282   : > { %v8533_v47 = vpop.eup %6587  ;;  %v8536_v27 = vadd.f32 1.0, %v6586_v33  ;;  %v4079_v33 = vand.u32 2147483648, %v8471_v52 }
 0x283   : > { %v3637_v15 = vadd.f32 %v6584_v9, %v3636_v60  ;;  %v4069_v22 = vmul.f32 %v8533_v47, %v8471_v52  ;;  %v5735_v17 = vmul.f32 -1.442695, %v2226_v25  ;;  %v4077_v60 = vand.u32 2147483647, %v8471_v52 }
 0x284   : > { %v8539_v21 = vpop.eup %6589  ;;  %6593 = vrcp.f32 %v8536_v27  ;;  %v5763_v26 = vmul.f32 -1.442695, %v2296_v54  ;;  %vm4074_vm5 = vweird.f32 %v8533_v47  ;;  %vm4088_vm11 = vweird.f32 %v8536_v27 }
 0x285   : > { %v3641_v62 = vsel %vm3640_vm3, %v6584_v9, %v3637_v15  ;;  %v3649_v28 = vmul.f32 %v8539_v21, %v8483_v5  ;;  %v6592_v18 = vpop.eup %6591  ;;  %v4070_v11 = vsub.f32 1.0, %v4069_v22  ;;  %6595 = vpow2.f32 %v5735_v17  ;;  %vm8574_vm9 = vmor %vm4073_vm8, %vm4074_vm5 }
 0x286   : > { %v3646_v16 = vsel %vm8527_vm2, %v3645_v51, %v3641_v62  ;;  %v8556_v15 = vadd.f32 1.0, %v6592_v18  ;;  %v2297_v57 = vpop.f32.mrf.mxu3  ;;  %v1939_v62 = vadd.f32 %v1938_v2, %v1650_v59  ;;  %vm3654_vm6 = vweird.f32 %v8539_v21 }
 0x287   : > { %v4565_v9 = vsub.f32 %v3646_v16, %v7137_v46  ;;  %v3650_v25 = vsub.f32 1.0, %v3649_v28  ;;  %v4071_v14 = vmul.f32 %v8533_v47, %v4070_v11  ;;  %v2298_v58 = vadd.f32 %v2297_v57, %v7794_v45  ;;  %vm8601_vm12 = vmor %vm3653_vm4, %vm3654_vm6 }
 0x288   : > { %v2227_v12 = vpop.f32.mrf.mxu2  ;;  %6597 = vrcp.f32 %v8556_v15  ;;  %v1652_v28 = vpop.f32.mrf.mxu0  ;;  %v3660_v16 = vor.u32 1.1754944e-38, %v3659_v43  ;;  %vm8578_vm10 = vcmp.eq.f32.partialorder %v4077_v60, 8.507059e+37  ;;  %v10022_v59 = vor.u32 %v8477_v19, %v8474_v31 }
 0x289   : > { %v6122_v51 = vpack.c.bf16 %v4565_v9, %v4564_v38  ;;  %v3651_v22 = vmul.f32 %v8539_v21, %v3650_v25  ;;  %v4072_v18 = vadd.f32 %v8533_v47, %v4071_v14  ;;  %6599 = vpow2.f32 %v5763_v26  ;;  %v1941_v60 = vpop.f32.mrf.mxu1 }
 0x28a   : > { %v6594_v17 = vpop.eup %6593  ;;  %v2228_v57 = vadd.f32 %v2227_v12, %v1939_v62  ;;  %v5764_v38 = vmul.f32 -1.442695, %v2298_v58  ;;  %v4080_v14 = vor.u32 1.1754944e-38, %v4079_v33  ;;  %v4092_v43 = vand.u32 2147483647, %v8536_v27 }
 0x28b   : > { %6290 = vst [vmem:[%s7165_s22 + $0xd8] sm:$0xff] %v6122_v51   ;;  %v3652_v45 = vadd.f32 %v8539_v21, %v3651_v22  ;;  %v4084_v52 = vmul.f32 %v6594_v17, %v8536_v27  ;;  %1691 = vmatmul.bf16.gmra.mxu0 %v10022_v59  ;;  %2339 = vmatmul.bf16.gmra.mxu3 %v5544_v4  ;;  %v6596_v31 = vpop.eup %6595  ;;  %v3672_v4 = vand.u32 2147483647, %v8556_v15  ;;  %v4094_v25 = vand.u32 2147483648, %v8536_v27 }
 0x28c   : > { %v4076_v26 = vsel %vm8574_vm9, %v8533_v47, %v4072_v18  ;;  %v5736_v11 = vmul.f32 -1.442695, %v2228_v57  ;;  %v10023_v33 = vor.u32 %v8480_v8, %v8486_v36  ;;  %v10024_v9 = vor.u32 %v8504_v29, %v8501_v56 }
 0x28d   : > { %v4085_v47 = vsub.f32 1.0, %v4084_v52  ;;  %6601 = vpow2.f32 %v5764_v38  ;;  %v3656_v36 = vsel %vm8601_vm12, %v8539_v21, %v3652_v45  ;;  %v3674_v56 = vand.u32 2147483648, %v8556_v15 }
 0x28e   : > { %1980 = vmatmul.bf16.gmra.mxu1 %v10023_v33  ;;  %2269 = vmatmul.bf16.gmra.mxu2 %v10024_v9  ;;  %v6598_v8 = vpop.eup %6597  ;;  %v8611_v29 = vadd.f32 1.0, %v6596_v31  ;;  %6603 = vpow2.f32 %v5736_v11  ;;  %v2300_v5 = vpop.f32.mrf.mxu3  ;;  %v4081_v12 = vsel %vm8578_vm10, %v4080_v14, %v4076_v26  ;;  %vm4089_vm13 = vweird.f32 %v6594_v17 }
 0x28f   : > { %v3664_v58 = vmul.f32 %v6598_v8, %v8556_v15  ;;  %v4086_v51 = vmul.f32 %v6594_v17, %v4085_v47  ;;  %v6600_v62 = vpop.eup %6599  ;;  %vm3668_vm14 = vweird.f32 %v8556_v15  ;;  %vm8617_vm15 = vcmp.eq.f32.partialorder %v4092_v43, 8.507059e+37  ;;  %vm4090_vm1 = vmor %vm4088_vm11, %vm4089_vm13 }
 0x290   : > { %v2230_v22 = vpop.f32.mrf.mxu2  ;;  %6605 = vrcp.f32 %v8611_v29  ;;  %v1653_v21 = vadd.f32 %v8466_v6, %v1652_v28  ;;  %v1654_v45 = vpop.f32.mrf.mxu0  ;;  %v4095_v2 = vor.u32 1.1754944e-38, %v4094_v25  ;;  %v8623_v24 = vadd.f32 1.0, %v6600_v62 }
 0x291   : > { %v3665_v57 = vsub.f32 1.0, %v3664_v58  ;;  %v4087_v38 = vadd.f32 %v6594_v17, %v4086_v51  ;;  %v3661_v14 = vsel %vm8564_vm7, %v3660_v16, %v3656_v36  ;;  %v4594_v52 = vsub.f32 %v4081_v12, %v7137_v46 }
 0x292   : > { %vm8628_vm0 = vcmp.eq.f32.partialorder %v3672_v4, 8.507059e+37  ;;  %v3675_v26 = vor.u32 1.1754944e-38, %v3674_v56  ;;  %vm3669_vm2 = vweird.f32 %v6598_v8  ;;  %6607 = vrcp.f32 %v8623_v24 }
 0x293   : > { %v6602_v28 = vpop.eup %6601  ;;  %v3666_v43 = vmul.f32 %v6598_v8, %v3665_v57  ;;  %v4091_v11 = vsel %vm4090_vm1, %v6594_v17, %v4087_v38  ;;  %v1942_v9 = vadd.f32 %v1941_v60, %v1653_v21  ;;  %v2301_v31 = vadd.f32 %v2300_v5, %v7818_v30  ;;  %vm3670_vm3 = vmor %vm3668_vm14, %vm3669_vm2  ;;  %v1943_v30 = vpop.f32.mrf.mxu1 }
 0x294   : > { %v6604_v33 = vpop.eup %6603  ;;  %v4096_v54 = vsel %vm8617_vm15, %v4095_v2, %v4091_v11  ;;  %v8638_v16 = vadd.f32 1.0, %v6602_v28  ;;  %v3689_v27 = vand.u32 2147483648, %v8611_v29  ;;  %v4566_v17 = vsub.f32 %v3661_v14, %v7137_v46 }
 0x295   : > { %v3667_v19 = vadd.f32 %v6598_v8, %v3666_v43  ;;  %v4595_v4 = vsub.f32 %v4096_v54, %v7137_v46  ;;  %v8643_v47 = vadd.f32 1.0, %v6604_v33  ;;  %v3687_v36 = vand.u32 2147483647, %v8611_v29 }
 0x296   : > { %v8645_v25 = vpop.eup %6605  ;;  %v4109_v60 = vand.u32 2147483648, %v8623_v24  ;;  %6609 = vrcp.f32 %v8638_v16  ;;  %v2302_v56 = vpop.f32.mrf.mxu3  ;;  %vm3683_vm4 = vweird.f32 %v8611_v29  ;;  %v4107_v51 = vand.u32 2147483647, %v8623_v24 }
 0x297   : > { %v3671_v5 = vsel %vm3670_vm3, %v6598_v8, %v3667_v19  ;;  %v6197_v12 = vpack.c.bf16 %v4595_v4, %v4594_v52  ;;  %v3679_v58 = vmul.f32 %v8645_v25, %v8611_v29  ;;  %6611 = vrcp.f32 %v8643_v47 }
 0x298   : > { %v2232_v15 = vpop.f32.mrf.mxu2  ;;  %v3676_v62 = vsel %vm8628_vm0, %v3675_v26, %v3671_v5  ;;  %v2231_v18 = vadd.f32 %v2230_v22, %v1942_v9  ;;  %v5765_v21 = vmul.f32 -1.442695, %v2301_v31  ;;  %v8660_v57 = vpop.eup %6607  ;;  %v8664_v2 = vor.u32 1.1754944e-38, %v3689_v27 }
 0x299   : > { %v4567_v8 = vsub.f32 %v3676_v62, %v7137_v46  ;;  %6305 = vst [vmem:[%s7165_s22 + $0x150] sm:$0xff] %v6197_v12   ;;  %v3680_v38 = vsub.f32 1.0, %v3679_v58  ;;  %v1655_v14 = vadd.f32 %v8466_v6, %v1654_v45  ;;  %v4099_v52 = vmul.f32 %v8660_v57, %v8623_v24  ;;  %v1657_v26 = vpop.f32.mrf.mxu0  ;;  %v5379_v58 = vld [vmem:[%s6936_s4 + $0x3a8] sm:$0xf] }
 0x29a   : > { %vm4103_vm5 = vweird.f32 %v8623_v24  ;;  %v4110_v59 = vor.u32 1.1754944e-38, %v4109_v60  ;;  %v3702_v22 = vand.u32 2147483647, %v8643_v47  ;;  %vm8672_vm6 = vcmp.eq.f32.partialorder %v4107_v51, 8.507059e+37 }
 0x29b   : > { %v6127_v28 = vpack.c.bf16 %v4567_v8, %v4566_v17  ;;  %v3681_v43 = vmul.f32 %v8645_v25, %v3680_v38  ;;  %vm4118_vm7 = vweird.f32 %v8638_v16  ;;  %v4122_v45 = vand.u32 2147483647, %v8638_v16  ;;  %v5910_v38 = vld [vmem:[%s6936_s4 + $0x3b0] sm:$0xf0] }
 0x29c   : > { %v4124_v33 = vand.u32 2147483648, %v8638_v16  ;;  %v8679_v54 = vpop.eup %6609  ;;  %vm3684_vm8 = vweird.f32 %v8645_v25  ;;  %v4100_v9 = vsub.f32 1.0, %v4099_v52  ;;  %v5737_v31 = vmul.f32 -1.442695, %v2231_v18 }
 0x29d   : > { %6613 = vpow2.f32 %v5765_v21  ;;  %6291 = vst [vmem:[%s7165_s22 + $0xe0] sm:$0xff] %v6127_v28   ;;  %v3682_v19 = vadd.f32 %v8645_v25, %v3681_v43  ;;  %vm8684_vm9 = vcmp.eq.f32.partialorder %v3687_v36, 8.507059e+37  ;;  %vm4104_vm10 = vweird.f32 %v8660_v57  ;;  %v8693_v60 = vpop.eup %6611  ;;  %vm8715_vm14 = vmor %vm3683_vm4, %vm3684_vm8  ;;  %v5909_v28 = vld [vmem:[%s6936_s4 + $0x3ac] sm:$0xf]  ;;  %v5381_v43 = vld [vmem:[%s6936_s4 + $0x3b4] sm:$0xf0] }
 0x29e   : > { %vm3698_vm11 = vweird.f32 %v8643_v47  ;;  %v3704_v27 = vand.u32 2147483648, %v8643_v47  ;;  %v4114_v17 = vmul.f32 %v8679_v54, %v8638_v16  ;;  %v4101_v5 = vmul.f32 %v8660_v57, %v4100_v9  ;;  %v8698_v51 = vpop.f32.mrf.mxu3  ;;  %vm8730_vm0 = vmor %vm4103_vm5, %vm4104_vm10 }
 0x29f   : > { %6615 = vpow2.f32 %v5737_v31  ;;  %v1944_v12 = vadd.f32 %v1943_v30, %v1655_v14  ;;  %v2303_v36 = vadd.f32 %v2302_v56, %v7845_v35  ;;  %v3694_v62 = vmul.f32 %v8693_v60, %v8643_v47  ;;  %v5953_v47 = vld [vmem:[%s6936_s4 + $0x508] sm:$0xf0] }
 0x2a0   : > { %vm8702_vm12 = vcmp.eq.f32.partialorder %v3702_v22, 8.507059e+37  ;;  %v4115_v21 = vsub.f32 1.0, %v4114_v17  ;;  %vm8706_vm13 = vcmp.eq.f32.partialorder %v4122_v45, 8.507059e+37  ;;  %v4125_v30 = vor.u32 1.1754944e-38, %v4124_v33  ;;  %v1946_v22 = vpop.f32.mrf.mxu1  ;;  %v2235_v45 = vpop.f32.mrf.mxu2  ;;  %v5387_v17 = vld [vmem:[%s6936_s4 + $0x3b0] sm:$0xf] }
 0x2a1   : > { %v4102_v56 = vadd.f32 %v8660_v57, %v4101_v5  ;;  %vm4119_vm15 = vweird.f32 %v8679_v54  ;;  %v2233_v14 = vadd.f32 %v2232_v15, %v1944_v12  ;;  %v5766_v52 = vmul.f32 -1.442695, %v2303_v36  ;;  %v5911_v5 = vld [vmem:[%s6936_s4 + $0x3b8] sm:$0xf0] }
 0x2a2   : > { %v3686_v33 = vsel %vm8715_vm14, %v8645_v25, %v3682_v19  ;;  %v3695_v9 = vsub.f32 1.0, %v3694_v62  ;;  %v4116_v15 = vmul.f32 %v8679_v54, %v4115_v21  ;;  %v1658_v31 = vadd.f32 %v8466_v6, %v1657_v26  ;;  %vm4120_vm2 = vmor %vm4118_vm7, %vm4119_vm15 }
 0x2a3   : > { %v6614_v12 = vpop.eup %6613  ;;  %v4106_v25 = vsel %vm8730_vm0, %v8660_v57, %v4102_v56  ;;  %v5738_v19 = vmul.f32 -1.442695, %v2233_v14  ;;  %6617 = vpow2.f32 %v5766_v52  ;;  %v5380_v36 = vor.u32 %v5910_v38, %v5379_v58  ;;  %v1659_v38 = vpop.f32.mrf.mxu0 }
 0x2a4   : > { %v3696_v24 = vmul.f32 %v8693_v60, %v3695_v9  ;;  %vm3699_vm1 = vweird.f32 %v8693_v60  ;;  %v4117_v62 = vadd.f32 %v8679_v54, %v4116_v15  ;;  %v8744_v35 = vadd.f32 1.0, %v6614_v12 }
 0x2a5   : > { %v6616_v21 = vpop.eup %6615  ;;  %v4111_v26 = vsel %vm8672_vm6, %v4110_v59, %v4106_v25  ;;  %6619 = vpow2.f32 %v5738_v19  ;;  %1696 = vmatmul.bf16.gmra.mxu0 %v5380_v36  ;;  %v5384_v57 = vor.u32 %v5909_v28, %v5381_v43  ;;  %v5388_v58 = vor.u32 %v5911_v5, %v5387_v17  ;;  %vm3700_vm3 = vmor %vm3698_vm11, %vm3699_vm1 }
 0x2a6   : > { %v3697_v56 = vadd.f32 %v8693_v60, %v3696_v24  ;;  %v4121_v14 = vsel %vm4120_vm2, %v8679_v54, %v4117_v62  ;;  %v8754_v52 = vadd.f32 1.0, %v6616_v21  ;;  %6621 = vrcp.f32 %v8744_v35  ;;  %v2307_v54 = vpop.f32.mrf.mxu3 }
 0x2a7   : > { %v3691_v16 = vsel %vm8684_vm9, %v8664_v2, %v3686_v33  ;;  %v3705_v59 = vor.u32 1.1754944e-38, %v3704_v27  ;;  %v4126_v11 = vsel %vm8706_vm13, %v4125_v30, %v4121_v14  ;;  %v1947_v28 = vadd.f32 %v1946_v22, %v1658_v31  ;;  %1985 = vmatmul.bf16.gmra.mxu1 %v5384_v57  ;;  %2274 = vmatmul.bf16.gmra.mxu2 %v5388_v58  ;;  %v5555_v2 = vld [vmem:[%s6936_s4 + $0x500] sm:$0xf] }
 0x2a8   : > { %v4596_v43 = vsub.f32 %v4111_v26, %v7137_v46  ;;  %v3701_v29 = vsel %vm3700_vm3, %v8693_v60, %v3697_v56  ;;  %v4597_v4 = vsub.f32 %v4126_v11, %v7137_v46  ;;  %6623 = vrcp.f32 %v8754_v52  ;;  %v1948_v5 = vpop.f32.mrf.mxu1  ;;  %v2237_v12 = vpop.f32.mrf.mxu2  ;;  %v5391_v26 = vld [vmem:[%s6936_s4 + $0x3c0] sm:$0xf] }
 0x2a9   : > { %v6618_v33 = vpop.eup %6617  ;;  %v3706_v27 = vsel %vm8702_vm12, %v3705_v59, %v3701_v29  ;;  %v4568_v8 = vsub.f32 %v3691_v16, %v7137_v46  ;;  %v3719_v15 = vand.u32 2147483648, %v8754_v52  ;;  %v4139_v31 = vand.u32 2147483648, %v8744_v35  ;;  %v5913_v16 = vld [vmem:[%s6936_s4 + $0x3c8] sm:$0xf0] }
 0x2aa   : > { %v4569_v30 = vsub.f32 %v3706_v27, %v7137_v46  ;;  %v6202_v22 = vpack.c.bf16 %v4597_v4, %v4596_v43  ;;  %v8776_v9 = vadd.f32 1.0, %v6618_v33  ;;  %v5556_v17 = vor.u32 %v5953_v47, %v5555_v2 }
 0x2ab   : > { %v6620_v60 = vpop.eup %6619  ;;  %v2236_v36 = vadd.f32 %v2235_v45, %v1947_v28  ;;  %vm4133_vm4 = vweird.f32 %v8744_v35  ;;  %v4137_v21 = vand.u32 2147483647, %v8744_v35  ;;  %vm3713_vm5 = vweird.f32 %v8754_v52  ;;  %v1662_v14 = vpop.f32.mrf.mxu0 }
 0x2ac   : > { %v8780_v25 = vpop.eup %6621  ;;  %v6132_v18 = vpack.c.bf16 %v4569_v30, %v4568_v8  ;;  %6306 = vst [vmem:[%s7165_s22 + $0x158] sm:$0xff] %v6202_v22   ;;  %v8783_v19 = vadd.f32 1.0, %v6620_v60  ;;  %6625 = vrcp.f32 %v8776_v9  ;;  %2344 = vmatmul.bf16.gmra.mxu3 %v5556_v17  ;;  %v3717_v45 = vand.u32 2147483647, %v8754_v52 }
 0x2ad   : > { %v4129_v24 = vmul.f32 %v8780_v25, %v8744_v35  ;;  %v8799_v56 = vor.u32 1.1754944e-38, %v4139_v31  ;;  %v8804_v11 = vor.u32 1.1754944e-38, %v3719_v15  ;;  %vm4134_vm6 = vweird.f32 %v8780_v25  ;;  %v5956_v35 = vld [vmem:[%s6936_s4 + $0x520] sm:$0xf0] }
 0x2ae   : > { %v8788_v62 = vpop.eup %6623  ;;  %6292 = vst [vmem:[%s7165_s22 + $0xe8] sm:$0xff] %v6132_v18   ;;  %6627 = vrcp.f32 %v8783_v19  ;;  %v8802_v59 = vpop.f32.mrf.mxu3  ;;  %v4152_v28 = vand.u32 2147483647, %v8776_v9  ;;  %v5739_v43 = vmul.f32 -1.442695, %v2236_v36  ;;  %v2306_v2 = vadd.f32 %v8698_v51, %v7869_v61  ;;  %vm8845_vm12 = vmor %vm4133_vm4, %vm4134_vm6 }
 0x2af   : > { %v3709_v57 = vmul.f32 %v8788_v62, %v8754_v52  ;;  %v4130_v58 = vsub.f32 1.0, %v4129_v24  ;;  %v1660_v47 = vadd.f32 %v8466_v6, %v1659_v38  ;;  %vm8814_vm7 = vcmp.eq.f32.partialorder %v4137_v21, 8.507059e+37 }
 0x2b0   : > { %vm4148_vm8 = vweird.f32 %v8776_v9  ;;  %v4154_v8 = vand.u32 2147483648, %v8776_v9  ;;  %6629 = vpow2.f32 %v5739_v43  ;;  %v2308_v30 = vadd.f32 %v2307_v54, %v7896_v34  ;;  %v5399_v43 = vld [vmem:[%s6936_s4 + $0x3c8] sm:$0xf] }
 0x2b1   : > { %v3710_v29 = vsub.f32 1.0, %v3709_v57  ;;  %v4131_v4 = vmul.f32 %v8780_v25, %v4130_v58  ;;  %v5392_v22 = vor.u32 %v5913_v16, %v5391_v26  ;;  %vm8822_vm9 = vcmp.eq.f32.partialorder %v3717_v45, 8.507059e+37  ;;  %v1951_v26 = vpop.f32.mrf.mxu1  ;;  %v5912_v57 = vld [vmem:[%s6936_s4 + $0x3c4] sm:$0xf]  ;;  %v5393_v45 = vld [vmem:[%s6936_s4 + $0x3cc] sm:$0xf0]  ;;  %v2240_v58 = vpop.f32.mrf.mxu2 }
 0x2b2   : > { %v8812_v33 = vpop.eup %6625  ;;  %vm3728_vm10 = vweird.f32 %v8783_v19  ;;  %v1663_v15 = vadd.f32 %v8466_v6, %v1662_v14  ;;  %v3732_v34 = vand.u32 2147483647, %v8783_v19  ;;  %v5767_v54 = vmul.f32 -1.442695, %v2306_v2 }
 0x2b3   : > { %v3711_v60 = vmul.f32 %v8788_v62, %v3710_v29  ;;  %v4132_v51 = vadd.f32 %v8780_v25, %v4131_v4  ;;  %v4144_v38 = vmul.f32 %v8812_v33, %v8776_v9  ;;  %v1949_v17 = vadd.f32 %v1948_v5, %v1660_v47  ;;  %v5914_v29 = vld [vmem:[%s6936_s4 + $0x3d0] sm:$0xf0]  ;;  %v8873_v52 = vpop.f32.mrf.mxu0 }
 0x2b4   : > { %v8831_v31 = vpop.eup %6627  ;;  %v5768_v18 = vmul.f32 -1.442695, %v2308_v30  ;;  %vm3714_vm11 = vweird.f32 %v8788_v62  ;;  %v3734_v21 = vand.u32 2147483648, %v8783_v19  ;;  %vm4149_vm13 = vweird.f32 %v8812_v33  ;;  %v5567_v30 = vld [vmem:[%s6936_s4 + $0x518] sm:$0xf] }
 0x2b5   : > { %v3712_v36 = vadd.f32 %v8788_v62, %v3711_v60  ;;  %v3724_v24 = vmul.f32 %v8831_v31, %v8783_v19  ;;  %1701 = vmatmul.bf16.gmra.mxu0 %v5392_v22  ;;  %v4145_v14 = vsub.f32 1.0, %v4144_v38  ;;  %6631 = vpow2.f32 %v5767_v54  ;;  %vm8861_vm14 = vmor %vm3713_vm5, %vm3714_vm11 }
 0x2b6   : > { %v2238_v16 = vadd.f32 %v2237_v12, %v1949_v17  ;;  %v4136_v4 = vsel %vm8845_vm12, %v8780_v25, %v4132_v51  ;;  %6633 = vpow2.f32 %v5768_v18  ;;  %v1952_v47 = vadd.f32 %v1951_v26, %v1663_v15  ;;  %v6630_v22 = vpop.eup %6629  ;;  %v8875_v18 = vpop.f32.mrf.mxu3  ;;  %vm4150_vm1 = vmor %vm4148_vm8, %vm4149_vm13 }
 0x2b7   : > { %v3725_v2 = vsub.f32 1.0, %v3724_v24  ;;  %vm3729_vm15 = vweird.f32 %v8831_v31  ;;  %v4146_v12 = vmul.f32 %v8812_v33, %v4145_v14  ;;  %v5396_v25 = vor.u32 %v5912_v57, %v5393_v45 }
 0x2b8   : > { %v5740_v38 = vmul.f32 -1.442695, %v2238_v16  ;;  %v3716_v51 = vsel %vm8861_vm14, %v8788_v62, %v3712_v36  ;;  %v8871_v54 = vadd.f32 1.0, %v6630_v22  ;;  %v5400_v17 = vor.u32 %v5914_v29, %v5399_v43  ;;  %vm3730_vm2 = vmor %vm3728_vm10, %vm3729_vm15 }
 0x2b9   : > { %v3726_v15 = vmul.f32 %v8831_v31, %v3725_v2  ;;  %v4147_v24 = vadd.f32 %v8812_v33, %v4146_v12  ;;  %vm8878_vm0 = vcmp.eq.f32.partialorder %v4152_v28, 8.507059e+37  ;;  %1990 = vmatmul.bf16.gmra.mxu1 %v5396_v25  ;;  %v5568_v57 = vor.u32 %v5956_v35, %v5567_v30 }
 0x2ba   : > { %6635 = vpow2.f32 %v5740_v38  ;;  %v4141_v62 = vsel %vm8814_vm7, %v8799_v56, %v4136_v4  ;;  %v4155_v45 = vor.u32 1.1754944e-38, %v4154_v8  ;;  %2279 = vmatmul.bf16.gmra.mxu2 %v5400_v17  ;;  %v3721_v5 = vsel %vm8822_vm9, %v8804_v11, %v3716_v51 }
 0x2bb   : > { %v3727_v36 = vadd.f32 %v8831_v31, %v3726_v15  ;;  %6637 = vrcp.f32 %v8871_v54  ;;  %v6632_v28 = vpop.eup %6631  ;;  %v3735_v56 = vor.u32 1.1754944e-38, %v3734_v21  ;;  %v4151_v27 = vsel %vm4150_vm1, %v8812_v33, %v4147_v24  ;;  %v8928_v15 = vpop.f32.mrf.mxu0  ;;  %v5403_v24 = vld [vmem:[%s6936_s4 + $0x3d8] sm:$0xf] }
 0x2bc   : > { %v2241_v14 = vadd.f32 %v2240_v58, %v1952_v47  ;;  %v6634_v9 = vpop.eup %6633  ;;  %vm3733_vm3 = vcmp.eq.f32.partialorder %v3732_v34, 8.507059e+37  ;;  %v4156_v16 = vsel %vm8878_vm0, %v4155_v45, %v4151_v27  ;;  %v8902_v43 = vadd.f32 1.0, %v6632_v28  ;;  %2349 = vmatmul.bf16.gmra.mxu3 %v5568_v57  ;;  %v2242_v34 = vpop.f32.mrf.mxu2  ;;  %v5916_v45 = vld [vmem:[%s6936_s4 + $0x3e0] sm:$0xf0] }
 0x2bd   : > { %v3731_v8 = vsel %vm3730_vm2, %v8831_v31, %v3727_v36  ;;  %v4598_v11 = vsub.f32 %v4141_v62, %v7137_v46  ;;  %v4599_v19 = vsub.f32 %v4156_v16, %v7137_v46  ;;  %v8906_v21 = vadd.f32 1.0, %v6634_v9  ;;  %v1953_v31 = vpop.f32.mrf.mxu1  ;;  %v5405_v16 = vld [vmem:[%s6936_s4 + $0x3e4] sm:$0xf0] }
 0x2be   : > { %v3736_v61 = vsel %vm3733_vm3, %v3735_v56, %v3731_v8  ;;  %v4570_v33 = vsub.f32 %v3721_v5, %v7137_v46  ;;  %6639 = vrcp.f32 %v8902_v43  ;;  %v3749_v2 = vand.u32 2147483648, %v8871_v54  ;;  %v8930_v17 = vpop.f32.mrf.mxu3  ;;  %v5915_v8 = vld [vmem:[%s6936_s4 + $0x3dc] sm:$0xf] }
 0x2bf   : > { %v4571_v58 = vsub.f32 %v3736_v61, %v7137_v46  ;;  %v6207_v4 = vpack.c.bf16 %v4599_v19, %v4598_v11  ;;  %6641 = vrcp.f32 %v8906_v21  ;;  %v5741_v47 = vmul.f32 -1.442695, %v2241_v14 }
 0x2c0   : > { %v6636_v29 = vpop.eup %6635  ;;  %v2311_v60 = vadd.f32 %v8802_v59, %v7920_v63  ;;  %v4167_v38 = vand.u32 2147483647, %v8902_v43  ;;  %v4169_v25 = vand.u32 2147483648, %v8902_v43  ;;  %vm3743_vm4 = vweird.f32 %v8871_v54 }
 0x2c1   : > { %v8913_v30 = vpop.eup %6637  ;;  %v6137_v35 = vpack.c.bf16 %v4571_v58, %v4570_v33  ;;  %v8915_v22 = vadd.f32 1.0, %v6636_v29  ;;  %6307 = vst [vmem:[%s7165_s22 + $0x160] sm:$0xff] %v6207_v4   ;;  %v3747_v51 = vand.u32 2147483647, %v8871_v54  ;;  %v8932_v59 = vor.u32 1.1754944e-38, %v3749_v2 }
 0x2c2   : > { %v3739_v12 = vmul.f32 %v8913_v30, %v8871_v54  ;;  %vm4163_vm5 = vweird.f32 %v8902_v43  ;;  %vm3744_vm6 = vweird.f32 %v8913_v30  ;;  %vm4178_vm7 = vweird.f32 %v8906_v21 }
 0x2c3   : > { %6293 = vst [vmem:[%s7165_s22 + $0xf0] sm:$0xff] %v6137_v35   ;;  %6643 = vrcp.f32 %v8915_v22  ;;  %v4182_v57 = vand.u32 2147483647, %v8906_v21  ;;  %v5769_v62 = vmul.f32 -1.442695, %v2311_v60  ;;  %v1665_v36 = vadd.f32 %v8466_v6, %v8873_v52  ;;  %vm8975_vm12 = vmor %vm3743_vm4, %vm3744_vm6 }
 0x2c4   : > { %v3740_v63 = vsub.f32 1.0, %v3739_v12  ;;  %6645 = vpow2.f32 %v5741_v47  ;;  %v6640_v26 = vpop.eup %6639  ;;  %vm8946_vm8 = vcmp.eq.f32.partialorder %v4167_v38, 8.507059e+37  ;;  %v4170_v14 = vor.u32 1.1754944e-38, %v4169_v25  ;;  %v8963_v12 = vpop.f32.mrf.mxu2 }
 0x2c5   : > { %v8942_v28 = vpop.eup %6641  ;;  %v4159_v56 = vmul.f32 %v6640_v26, %v8902_v43  ;;  %v2313_v9 = vadd.f32 %v8875_v18, %v7947_v37  ;;  %v4184_v11 = vand.u32 2147483648, %v8906_v21  ;;  %6647 = vpow2.f32 %v5769_v62  ;;  %v1956_v47 = vpop.f32.mrf.mxu1 }
 0x2c6   : > { %v3741_v5 = vmul.f32 %v8913_v30, %v3740_v63  ;;  %v4174_v52 = vmul.f32 %v8942_v28, %v8906_v21  ;;  %v1954_v61 = vadd.f32 %v1953_v31, %v1665_v36  ;;  %vm8958_vm9 = vcmp.eq.f32.partialorder %v3747_v51, 8.507059e+37 }
 0x2c7   : > { %v4160_v58 = vsub.f32 1.0, %v4159_v56  ;;  %v3762_v29 = vand.u32 2147483647, %v8915_v22  ;;  %v5770_v4 = vmul.f32 -1.442695, %v2313_v9  ;;  %v5404_v35 = vor.u32 %v5916_v45, %v5403_v24 }
 0x2c8   : > { %v3742_v19 = vadd.f32 %v8913_v30, %v3741_v5  ;;  %v4175_v18 = vsub.f32 1.0, %v4174_v52  ;;  %v2243_v2 = vadd.f32 %v2242_v34, %v1954_v61  ;;  %v5408_v60 = vor.u32 %v5915_v8, %v5405_v16  ;;  %v8993_v16 = vpop.f32.mrf.mxu3 }
 0x2c9   : > { %v6644_v37 = vpop.eup %6643  ;;  %v4161_v31 = vmul.f32 %v6640_v26, %v4160_v58  ;;  %vm4164_vm10 = vweird.f32 %v6640_v26  ;;  %v3764_v51 = vand.u32 2147483648, %v8915_v22  ;;  %vm4179_vm11 = vweird.f32 %v8942_v28  ;;  %1706 = vmatmul.bf16.gmra.mxu0 %v5404_v35  ;;  %v5411_v58 = vld [vmem:[%s6936_s4 + $0x3e0] sm:$0xf] }
 0x2ca   : > { %v6646_v38 = vpop.eup %6645  ;;  %v3754_v25 = vmul.f32 %v6644_v37, %v8915_v22  ;;  %v4176_v63 = vmul.f32 %v8942_v28, %v4175_v18  ;;  %v5742_v36 = vmul.f32 -1.442695, %v2243_v2  ;;  %1995 = vmatmul.bf16.gmra.mxu1 %v5408_v60  ;;  %vm8979_vm13 = vcmp.eq.f32.partialorder %v4182_v57, 8.507059e+37  ;;  %vm4165_vm14 = vmor %vm4163_vm5, %vm4164_vm10  ;;  %v8991_v57 = vpop.f32.mrf.mxu0 }
 0x2cb   : > { %v8969_v62 = vadd.f32 1.0, %v6646_v38  ;;  %v4162_v24 = vadd.f32 %v6640_v26, %v4161_v31  ;;  %6649 = vpow2.f32 %v5770_v4  ;;  %v6648_v56 = vpop.eup %6647  ;;  %v3746_v9 = vsel %vm8975_vm12, %v8913_v30, %v3742_v19  ;;  %vm4180_vm0 = vmor %vm4178_vm7, %vm4179_vm11  ;;  %v5579_v38 = vld [vmem:[%s6936_s4 + $0x530] sm:$0xf]  ;;  %v5959_v31 = vld [vmem:[%s6936_s4 + $0x538] sm:$0xf0] }
 0x2cc   : > { %v3755_v45 = vsub.f32 1.0, %v3754_v25  ;;  %v4177_v54 = vadd.f32 %v8942_v28, %v4176_v63  ;;  %v4185_v8 = vor.u32 1.1754944e-38, %v4184_v11  ;;  %vm3759_vm15 = vweird.f32 %v6644_v37 }
 0x2cd   : > { %6651 = vrcp.f32 %v8969_v62  ;;  %v4166_v52 = vsel %vm4165_vm14, %v6640_v26, %v4162_v24  ;;  %v8999_v43 = vadd.f32 1.0, %v6648_v56  ;;  %v1668_v19 = vadd.f32 %v8466_v6, %v8928_v15  ;;  %v5917_v26 = vld [vmem:[%s6936_s4 + $0x3e8] sm:$0xf0]  ;;  %v1958_v25 = vpop.f32.mrf.mxu1 }
 0x2ce   : > { %v3756_v61 = vmul.f32 %v6644_v37, %v3755_v45  ;;  %v4171_v30 = vsel %vm8946_vm8, %v4170_v14, %v4166_v52  ;;  %v4181_v11 = vsel %vm4180_vm0, %v8942_v28, %v4177_v54  ;;  %6653 = vpow2.f32 %v5742_v36 }
 0x2cf   : > { %vm3758_vm1 = vweird.f32 %v8915_v22  ;;  %v3765_v18 = vor.u32 1.1754944e-38, %v3764_v51  ;;  %v4186_v21 = vsel %vm8979_vm13, %v4185_v8, %v4181_v11  ;;  %v3751_v27 = vsel %vm8958_vm9, %v8932_v59, %v3746_v9  ;;  %v2247_v51 = vpop.f32.mrf.mxu2 }
 0x2d0   : > { %v3757_v4 = vadd.f32 %v6644_v37, %v3756_v61  ;;  %v4600_v28 = vsub.f32 %v4171_v30, %v7137_v46  ;;  %vm3760_vm2 = vmor %vm3758_vm1, %vm3759_vm15  ;;  %v4601_v6 = vsub.f32 %v4186_v21, %v7137_v46  ;;  %6655 = vrcp.f32 %v8999_v43  ;;  %v9041_v11 = vpop.f32.mrf.mxu3  ;;  %v9061_v21 = vld [vmem:[%s9952_s2] ss:$0 sm:$0xff] }
 0x2d1   : > { %v6650_v15 = vpop.eup %6649  ;;  %vm3763_vm3 = vcmp.eq.f32.partialorder %v3762_v29, 8.507059e+37  ;;  %v5412_v14 = vor.u32 %v5917_v26, %v5411_v58  ;;  %v1957_v59 = vadd.f32 %v1956_v47, %v1668_v19  ;;  %v4572_v63 = vsub.f32 %v3751_v27, %v7137_v46 }
 0x2d2   : > { %v3761_v22 = vsel %vm3760_vm2, %v6644_v37, %v3757_v4  ;;  %v6212_v60 = vpack.c.bf16 %v4601_v6, %v4600_v28  ;;  %v9020_v33 = vadd.f32 1.0, %v6650_v15  ;;  %v3779_v37 = vand.u32 2147483648, %v8969_v62  ;;  %v1672_v30 = vpop.f32.mrf.mxu0 }
 0x2d3   : > { %v9018_v2 = vpop.eup %6651  ;;  %v3766_v35 = vsel %vm3763_vm3, %v3765_v18, %v3761_v22  ;;  %2284 = vmatmul.bf16.gmra.mxu2 %v5412_v14  ;;  %v4197_v24 = vand.u32 2147483647, %v8999_v43  ;;  %v5580_v56 = vor.u32 %v5959_v31, %v5579_v38  ;;  %v3777_v54 = vand.u32 2147483647, %v8969_v62 }
 0x2d4   : > { %v4573_v36 = vsub.f32 %v3766_v35, %v7137_v46  ;;  %v3769_v29 = vmul.f32 %v9018_v2, %v8969_v62  ;;  %v6654_v34 = vpop.eup %6653  ;;  %6308 = vst [vmem:[%s7165_s22 + $0x168] sm:$0xff] %v6212_v60   ;;  %6657 = vrcp.f32 %v9020_v33  ;;  %v4199_v8 = vand.u32 2147483648, %v8999_v43 }
 0x2d5   : > { %v9032_v5 = vadd.f32 1.0, %v6654_v34  ;;  %v2246_v52 = vadd.f32 %v8963_v12, %v1957_v59  ;;  %v2316_v61 = vadd.f32 %v8930_v17, %v7971_v49  ;;  %vm3773_vm4 = vweird.f32 %v8969_v62  ;;  %2354 = vmatmul.bf16.gmra.mxu3 %v5580_v56  ;;  %v1961_v31 = vpop.f32.mrf.mxu1 }
 0x2d6   : > { %v6142_v47 = vpack.c.bf16 %v4573_v36, %v4572_v63  ;;  %v3770_v45 = vsub.f32 1.0, %v3769_v29  ;;  %v9034_v9 = vpop.eup %6655  ;;  %v9045_v19 = vor.u32 1.1754944e-38, %v3779_v37  ;;  %vm3774_vm5 = vweird.f32 %v9018_v2 }
 0x2d7   : > { %v4189_v58 = vmul.f32 %v9034_v9, %v8999_v43  ;;  %6659 = vrcp.f32 %v9032_v5  ;;  %vm4193_vm6 = vweird.f32 %v8999_v43  ;;  %v5743_v49 = vmul.f32 -1.442695, %v2246_v52  ;;  %v2250_v63 = vpop.f32.mrf.mxu2  ;;  %vm9094_vm13 = vmor %vm3773_vm4, %vm3774_vm5 }
 0x2d8   : > { %6294 = vst [vmem:[%s7165_s22 + $0xf8] sm:$0xff] %v6142_v47   ;;  %v3771_v26 = vmul.f32 %v9018_v2, %v3770_v45  ;;  %vm9053_vm7 = vcmp.eq.f32.partialorder %v4197_v24, 8.507059e+37  ;;  %v4212_v4 = vand.u32 2147483647, %v9020_v33  ;;  %v5771_v18 = vmul.f32 -1.442695, %v2316_v61 }
 0x2d9   : > { %v4190_v17 = vsub.f32 1.0, %v4189_v58  ;;  %v1670_v27 = vadd.f32 %v9061_v21, %v8991_v57  ;;  %vm9065_vm8 = vcmp.eq.f32.partialorder %v3777_v54, 8.507059e+37  ;;  %v4200_v15 = vor.u32 1.1754944e-38, %v4199_v8 }
 0x2da   : > { %v6658_v28 = vpop.eup %6657  ;;  %v4214_v22 = vand.u32 2147483648, %v9020_v33  ;;  %6661 = vpow2.f32 %v5743_v49  ;;  %v2318_v14 = vadd.f32 %v8993_v16, %v7998_v40  ;;  %vm4194_vm9 = vweird.f32 %v9034_v9  ;;  %v1674_v61 = vpop.f32.mrf.mxu0 }
 0x2db   : > { %v4191_v35 = vmul.f32 %v9034_v9, %v4190_v17  ;;  %v4204_v60 = vmul.f32 %v6658_v28, %v9020_v33  ;;  %vm4208_vm10 = vweird.f32 %v9020_v33  ;;  %v3772_v57 = vadd.f32 %v9018_v2, %v3771_v26  ;;  %vm9085_vm12 = vmor %vm4193_vm6, %vm4194_vm9 }
 0x2dc   : > { %6663 = vpow2.f32 %v5771_v18  ;;  %v1959_v59 = vadd.f32 %v1958_v25, %v1670_v27  ;;  %v5772_v38 = vmul.f32 -1.442695, %v2318_v14  ;;  %vm9078_vm11 = vcmp.eq.f32.partialorder %v4212_v4, 8.507059e+37 }
 0x2dd   : > { %v6660_v36 = vpop.eup %6659  ;;  %v4192_v29 = vadd.f32 %v9034_v9, %v4191_v35  ;;  %v4205_v37 = vsub.f32 1.0, %v4204_v60  ;;  %v1673_v16 = vadd.f32 %v9061_v21, %v1672_v30  ;;  %v4215_v24 = vor.u32 1.1754944e-38, %v4214_v22  ;;  %v9105_v30 = vpop.f32.mrf.mxu3 }
 0x2de   : > { %v3784_v25 = vmul.f32 %v6660_v36, %v9032_v5  ;;  %v2248_v47 = vadd.f32 %v2247_v51, %v1959_v59  ;;  %6665 = vpow2.f32 %v5772_v38  ;;  %vm3788_vm14 = vweird.f32 %v9032_v5 }
 0x2df   : > { %v4196_v43 = vsel %vm9085_vm12, %v9034_v9, %v4192_v29  ;;  %v4206_v56 = vmul.f32 %v6658_v28, %v4205_v37  ;;  %vm4209_vm15 = vweird.f32 %v6658_v28  ;;  %v3776_v51 = vsel %vm9094_vm13, %v9018_v2, %v3772_v57  ;;  %v2252_v59 = vpop.f32.mrf.mxu2 }
 0x2e0   : > { %v6662_v54 = vpop.eup %6661  ;;  %v3785_v8 = vsub.f32 1.0, %v3784_v25  ;;  %v5744_v52 = vmul.f32 -1.442695, %v2248_v47  ;;  %v1962_v62 = vadd.f32 %v1961_v31, %v1673_v16  ;;  %v3792_v58 = vand.u32 2147483647, %v9032_v5  ;;  %vm4210_vm1 = vmor %vm4208_vm10, %vm4209_vm15 }
 0x2e1   : > { %v3794_v26 = vand.u32 2147483648, %v9032_v5  ;;  %v4207_v9 = vadd.f32 %v6658_v28, %v4206_v56  ;;  %v9109_v49 = vadd.f32 1.0, %v6662_v54  ;;  %v4201_v4 = vsel %vm9053_vm7, %v4200_v15, %v4196_v43 }
 0x2e2   : > { %v6664_v17 = vpop.eup %6663  ;;  %v3786_v18 = vmul.f32 %v6660_v36, %v3785_v8  ;;  %vm3789_vm0 = vweird.f32 %v6660_v36  ;;  %6667 = vpow2.f32 %v5744_v52  ;;  %v3781_v2 = vsel %vm9065_vm8, %v9045_v19, %v3776_v51  ;;  %v1677_v56 = vpop.f32.mrf.mxu0 }
 0x2e3   : > { %v4211_v27 = vsel %vm4210_vm1, %v6658_v28, %v4207_v9  ;;  %6669 = vrcp.f32 %v9109_v49  ;;  %v2321_v22 = vadd.f32 %v9041_v11, %v8022_v41  ;;  %v9124_v35 = vadd.f32 1.0, %v6664_v17  ;;  %vm3790_vm2 = vmor %vm3788_vm14, %vm3789_vm0  ;;  %v1963_v11 = vpop.f32.mrf.mxu1 }
 0x2e4   : > { %v6666_v14 = vpop.eup %6665  ;;  %v3787_v12 = vadd.f32 %v6660_v36, %v3786_v18  ;;  %v4216_v15 = vsel %vm9078_vm11, %v4215_v24, %v4211_v27  ;;  %v2251_v33 = vadd.f32 %v2250_v63, %v1962_v62  ;;  %v4602_v60 = vsub.f32 %v4201_v4, %v7137_v46 }
 0x2e5   : > { %v3795_v19 = vor.u32 1.1754944e-38, %v3794_v26  ;;  %v4603_v28 = vsub.f32 %v4216_v15, %v7137_v46  ;;  %v9130_v6 = vadd.f32 1.0, %v6666_v14  ;;  %vm3793_vm3 = vcmp.eq.f32.partialorder %v3792_v58, 8.507059e+37  ;;  %v9148_v54 = vpop.f32.mrf.mxu3 }
 0x2e6   : > { %v3791_v57 = vsel %vm3790_vm2, %v6660_v36, %v3787_v12  ;;  %6671 = vrcp.f32 %v9124_v35  ;;  %v1675_v41 = vadd.f32 %v9061_v21, %v1674_v61  ;;  %v4574_v38 = vsub.f32 %v3781_v2, %v7137_v46 }
 0x2e7   : > { %v3796_v31 = vsel %vm3793_vm3, %v3795_v19, %v3791_v57  ;;  %v6217_v63 = vpack.c.bf16 %v4603_v28, %v4602_v60  ;;  %v3809_v5 = vand.u32 2147483648, %v9109_v49  ;;  %6673 = vrcp.f32 %v9130_v6 }
 0x2e8   : > { %v6668_v29 = vpop.eup %6667  ;;  %v4575_v37 = vsub.f32 %v3796_v31, %v7137_v46  ;;  %v5745_v36 = vmul.f32 -1.442695, %v2251_v33  ;;  %v5773_v40 = vmul.f32 -1.442695, %v2321_v22  ;;  %v4227_v34 = vand.u32 2147483647, %v9124_v35 }
 0x2e9   : > { %v9138_v16 = vpop.eup %6669  ;;  %6309 = vst [vmem:[%s7165_s22 + $0x170] sm:$0xff] %v6217_v63   ;;  %v4229_v25 = vand.u32 2147483648, %v9124_v35  ;;  %v9143_v24 = vadd.f32 1.0, %v6668_v29  ;;  %vm3803_vm4 = vweird.f32 %v9109_v49  ;;  %v1964_v43 = vadd.f32 %v1963_v11, %v1675_v41 }
 0x2ea   : > { %v6147_v47 = vpack.c.bf16 %v4575_v37, %v4574_v38  ;;  %v3799_v45 = vmul.f32 %v9138_v16, %v9109_v49  ;;  %v3807_v51 = vand.u32 2147483647, %v9109_v49  ;;  %v9151_v8 = vor.u32 1.1754944e-38, %v3809_v5 }
 0x2eb   : > { %6675 = vrcp.f32 %v9143_v24  ;;  %v4242_v52 = vand.u32 2147483647, %v9130_v6  ;;  %vm4223_vm5 = vweird.f32 %v9124_v35  ;;  %v2253_v58 = vadd.f32 %v2252_v59, %v1964_v43 }
 0x2ec   : > { %v6672_v62 = vpop.eup %6671  ;;  %6295 = vst [vmem:[%s7165_s22 + $0x100] sm:$0xff] %v6147_v47   ;;  %v3800_v61 = vsub.f32 1.0, %v3799_v45  ;;  %6677 = vpow2.f32 %v5745_v36  ;;  %vm9158_vm6 = vcmp.eq.f32.partialorder %v4227_v34, 8.507059e+37  ;;  %v4230_v17 = vor.u32 1.1754944e-38, %v4229_v25  ;;  %v1679_v45 = vpop.f32.mrf.mxu0 }
 0x2ed   : > { %v4219_v26 = vmul.f32 %v6672_v62, %v9124_v35  ;;  %vm4238_vm7 = vweird.f32 %v9130_v6  ;;  %v4244_v4 = vand.u32 2147483648, %v9130_v6  ;;  %v6674_v18 = vpop.eup %6673  ;;  %6679 = vpow2.f32 %v5773_v40  ;;  %v9199_v43 = vpop.f32.mrf.mxu3 }
 0x2ee   : > { %v3801_v2 = vmul.f32 %v9138_v16, %v3800_v61  ;;  %v5746_v27 = vmul.f32 -1.442695, %v2253_v58  ;;  %v2323_v22 = vadd.f32 %v9105_v30, %v8049_v44  ;;  %vm3804_vm8 = vweird.f32 %v9138_v16  ;;  %v1966_v44 = vpop.f32.mrf.mxu1  ;;  %v2255_v30 = vpop.f32.mrf.mxu2 }
 0x2ef   : > { %vm9168_vm9 = vcmp.eq.f32.partialorder %v3807_v51, 8.507059e+37  ;;  %v4220_v12 = vsub.f32 1.0, %v4219_v26  ;;  %v4234_v15 = vmul.f32 %v6674_v18, %v9130_v6  ;;  %vm9173_vm10 = vcmp.eq.f32.partialorder %v4242_v52, 8.507059e+37  ;;  %vm9187_vm13 = vmor %vm3803_vm4, %vm3804_vm8 }
 0x2f0   : > { %v3822_v60 = vand.u32 2147483647, %v9143_v24  ;;  %6681 = vpow2.f32 %v5746_v27  ;;  %v5774_v19 = vmul.f32 -1.442695, %v2323_v22  ;;  %v1678_v28 = vadd.f32 %v9061_v21, %v1677_v56 }
 0x2f1   : > { %v6676_v57 = vpop.eup %6675  ;;  %v3802_v41 = vadd.f32 %v9138_v16, %v3801_v2  ;;  %v4221_v11 = vmul.f32 %v6672_v62, %v4220_v12  ;;  %vm4224_vm11 = vweird.f32 %v6672_v62  ;;  %v4235_v59 = vsub.f32 1.0, %v4234_v15 }
 0x2f2   : > { %v6678_v38 = vpop.eup %6677  ;;  %v3814_v31 = vmul.f32 %v6676_v57, %v9143_v24  ;;  %vm3818_vm12 = vweird.f32 %v9143_v24  ;;  %v3824_v63 = vand.u32 2147483648, %v9143_v24  ;;  %v4245_v5 = vor.u32 1.1754944e-38, %v4244_v4  ;;  %vm4225_vm15 = vmor %vm4223_vm5, %vm4224_vm11 }
 0x2f3   : > { %v4222_v37 = vadd.f32 %v6672_v62, %v4221_v11  ;;  %v4236_v36 = vmul.f32 %v6674_v18, %v4235_v59  ;;  %vm4239_vm14 = vweird.f32 %v6674_v18  ;;  %v9191_v40 = vadd.f32 1.0, %v6678_v38  ;;  %v6680_v34 = vpop.eup %6679 }
 0x2f4   : > { %v3815_v25 = vsub.f32 1.0, %v3814_v31  ;;  %vm9195_vm0 = vcmp.eq.f32.partialorder %v3822_v60, 8.507059e+37  ;;  %6683 = vpow2.f32 %v5774_v19  ;;  %v1967_v49 = vadd.f32 %v1966_v44, %v1678_v28  ;;  %vm4240_vm2 = vmor %vm4238_vm7, %vm4239_vm14  ;;  %v1682_v29 = vpop.f32.mrf.mxu0 }
 0x2f5   : > { %v3806_v56 = vsel %vm9187_vm13, %v9138_v16, %v3802_v41  ;;  %v4226_v51 = vsel %vm4225_vm15, %v6672_v62, %v4222_v37  ;;  %v4237_v52 = vadd.f32 %v6674_v18, %v4236_v36  ;;  %6685 = vrcp.f32 %v9191_v40  ;;  %v2330_v37 = vpop.f32.mrf.mxu3 }
 0x2f6   : > { %v6682_v35 = vpop.eup %6681  ;;  %v4231_v61 = vsel %vm9158_vm6, %v4230_v17, %v4226_v51  ;;  %v3816_v58 = vmul.f32 %v6676_v57, %v3815_v25  ;;  %vm3819_vm1 = vweird.f32 %v6676_v57  ;;  %v2326_v26 = vadd.f32 %v9148_v54, %v8073_v0  ;;  %v1968_v15 = vpop.f32.mrf.mxu1 }
 0x2f7   : > { %v3825_v4 = vor.u32 1.1754944e-38, %v3824_v63  ;;  %v4241_v2 = vsel %vm4240_vm2, %v6674_v18, %v4237_v52  ;;  %v9212_v16 = vadd.f32 1.0, %v6680_v34  ;;  %v9214_v62 = vadd.f32 1.0, %v6682_v35  ;;  %vm3820_vm3 = vmor %vm3818_vm12, %vm3819_vm1  ;;  %v2257_v33 = vpop.f32.mrf.mxu2 }
 0x2f8   : > { %v3811_v9 = vsel %vm9168_vm9, %v9151_v8, %v3806_v56  ;;  %v3817_v17 = vadd.f32 %v6676_v57, %v3816_v58  ;;  %v4246_v27 = vsel %vm9173_vm10, %v4245_v5, %v4241_v2  ;;  %v2256_v22 = vadd.f32 %v2255_v30, %v1967_v49 }
 0x2f9   : > { %v4604_v6 = vsub.f32 %v4231_v61, %v7137_v46  ;;  %v4605_v0 = vsub.f32 %v4246_v27, %v7137_v46  ;;  %v3839_v54 = vand.u32 2147483648, %v9191_v40  ;;  %6687 = vrcp.f32 %v9212_v16 }
 0x2fa   : > { %v6684_v18 = vpop.eup %6683  ;;  %v3821_v14 = vsel %vm3820_vm3, %v6676_v57, %v3817_v17  ;;  %v3837_v8 = vand.u32 2147483647, %v9191_v40  ;;  %6689 = vrcp.f32 %v9214_v62  ;;  %v5775_v12 = vmul.f32 -1.442695, %v2326_v26 }
 0x2fb   : > { %v6686_v60 = vpop.eup %6685  ;;  %v3826_v24 = vsel %vm9195_vm0, %v3825_v4, %v3821_v14  ;;  %v6222_v19 = vpack.c.bf16 %v4605_v0, %v4604_v6  ;;  %v4576_v28 = vsub.f32 %v3811_v9, %v7137_v46  ;;  %v1680_v57 = vadd.f32 %v9061_v21, %v1679_v45 }
 0x2fc   : > { %v4577_v44 = vsub.f32 %v3826_v24, %v7137_v46  ;;  %v3829_v30 = vmul.f32 %v6686_v60, %v9191_v40  ;;  %vm3833_vm4 = vweird.f32 %v9191_v40  ;;  %v3840_v41 = vor.u32 1.1754944e-38, %v3839_v54 }
 0x2fd   : > { %6310 = vst [vmem:[%s7165_s22 + $0x178] sm:$0xff] %v6222_v19   ;;  %v9237_v11 = vadd.f32 1.0, %v6684_v18  ;;  %v5747_v59 = vmul.f32 -1.442695, %v2256_v22  ;;  %vm9239_vm5 = vcmp.eq.f32.partialorder %v3837_v8, 8.507059e+37  ;;  %6691 = vpow2.f32 %v5775_v12 }
 0x2fe   : > { %v6152_v38 = vpack.c.bf16 %v4577_v44, %v4576_v28  ;;  %v3830_v31 = vsub.f32 1.0, %v3829_v30  ;;  %v4257_v5 = vand.u32 2147483647, %v9212_v16  ;;  %v4259_v34 = vand.u32 2147483648, %v9212_v16  ;;  %v1971_v54 = vpop.f32.mrf.mxu1 }
 0x2ff   : > { %v9244_v36 = vpop.eup %6687  ;;  %v3852_v25 = vand.u32 2147483647, %v9214_v62  ;;  %v3854_v47 = vand.u32 2147483648, %v9214_v62  ;;  %6693 = vrcp.f32 %v9237_v11  ;;  %vm3834_vm6 = vweird.f32 %v6686_v60  ;;  %v2260_v18 = vpop.f32.mrf.mxu2 }
 0x300   : > { %v6690_v49 = vpop.eup %6689  ;;  %6296 = vst [vmem:[%s7165_s22 + $0x108] sm:$0xff] %v6152_v38   ;;  %v3831_v45 = vmul.f32 %v6686_v60, %v3830_v31  ;;  %v4249_v56 = vmul.f32 %v9244_v36, %v9212_v16  ;;  %v1969_v51 = vadd.f32 %v1968_v15, %v1680_v57  ;;  %vm4253_vm7 = vweird.f32 %v9212_v16  ;;  %vm9262_vm10 = vmor %vm3833_vm4, %vm3834_vm6  ;;  %v2332_v38 = vpop.f32.mrf.mxu3 }
 0x301   : > { %v3844_v52 = vmul.f32 %v6690_v49, %v9214_v62  ;;  %vm3848_vm8 = vweird.f32 %v9214_v62  ;;  %6695 = vpow2.f32 %v5747_v59  ;;  %vm9256_vm9 = vcmp.eq.f32.partialorder %v4257_v5, 8.507059e+37  ;;  %v1684_v59 = vpop.f32.mrf.mxu0 }
 0x302   : > { %v3832_v35 = vadd.f32 %v6686_v60, %v3831_v45  ;;  %v4250_v61 = vsub.f32 1.0, %v4249_v56  ;;  %v2258_v26 = vadd.f32 %v2257_v33, %v1969_v51  ;;  %v4260_v2 = vor.u32 1.1754944e-38, %v4259_v34 }
 0x303   : > { %v3845_v9 = vsub.f32 1.0, %v3844_v52  ;;  %vm9266_vm11 = vcmp.eq.f32.partialorder %v3852_v25, 8.507059e+37  ;;  %v3855_v27 = vor.u32 1.1754944e-38, %v3854_v47  ;;  %v6692_v22 = vpop.eup %6691  ;;  %vm4254_vm12 = vweird.f32 %v9244_v36 }
 0x304   : > { %v3836_v6 = vsel %vm9262_vm10, %v6686_v60, %v3832_v35  ;;  %v4251_v0 = vmul.f32 %v9244_v36, %v4250_v61  ;;  %v2328_v40 = vadd.f32 %v9199_v43, %v8100_v53  ;;  %vm3849_vm13 = vweird.f32 %v6690_v49  ;;  %vm9288_vm15 = vmor %vm4253_vm7, %vm4254_vm12 }
 0x305   : > { %v6694_v14 = vpop.eup %6693  ;;  %v3846_v8 = vmul.f32 %v6690_v49, %v3845_v9  ;;  %v9276_v12 = vadd.f32 1.0, %v6692_v22  ;;  %v5748_v15 = vmul.f32 -1.442695, %v2258_v26  ;;  %vm4268_vm14 = vweird.f32 %v9237_v11  ;;  %vm3850_vm0 = vmor %vm3848_vm8, %vm3849_vm13 }
 0x306   : > { %v4252_v33 = vadd.f32 %v9244_v36, %v4251_v0  ;;  %v4264_v24 = vmul.f32 %v6694_v14, %v9237_v11  ;;  %v4272_v60 = vand.u32 2147483647, %v9237_v11  ;;  %v3841_v53 = vsel %vm9239_vm5, %v3840_v41, %v3836_v6  ;;  %v1973_v4 = vpop.f32.mrf.mxu1 }
 0x307   : > { %v6696_v19 = vpop.eup %6695  ;;  %v3847_v28 = vadd.f32 %v6690_v49, %v3846_v8  ;;  %6697 = vrcp.f32 %v9276_v12  ;;  %v1683_v44 = vadd.f32 %v9061_v21, %v1682_v29  ;;  %v5776_v16 = vmul.f32 -1.442695, %v2328_v40 }
 0x308   : > { %v4256_v30 = vsel %vm9288_vm15, %v9244_v36, %v4252_v33  ;;  %v4265_v57 = vsub.f32 1.0, %v4264_v24  ;;  %v9299_v41 = vadd.f32 1.0, %v6696_v19  ;;  %v4274_v63 = vand.u32 2147483648, %v9237_v11  ;;  %v9339_v19 = vpop.f32.mrf.mxu3 }
 0x309   : > { %v3851_v31 = vsel %vm3850_vm0, %v6690_v49, %v3847_v28  ;;  %6699 = vpow2.f32 %v5748_v15  ;;  %v2331_v5 = vadd.f32 %v2330_v37, %v8129_v20  ;;  %vm4269_vm1 = vweird.f32 %v6694_v14 }
 0x30a   : > { %v3856_v29 = vsel %vm9266_vm11, %v3855_v27, %v3851_v31  ;;  %v4266_v34 = vmul.f32 %v6694_v14, %v4265_v57  ;;  %6701 = vrcp.f32 %v9299_v41  ;;  %v4578_v62 = vsub.f32 %v3841_v53, %v7137_v46  ;;  %vm4270_vm3 = vmor %vm4268_vm14, %vm4269_vm1 }
 0x30b   : > { %v4261_v36 = vsel %vm9256_vm9, %v4260_v2, %v4256_v30  ;;  %v4579_v25 = vsub.f32 %v3856_v29, %v7137_v46  ;;  %v1685_v47 = vadd.f32 %v9061_v21, %v1684_v59  ;;  %vm9311_vm2 = vcmp.eq.f32.partialorder %v4272_v60, 8.507059e+37  ;;  %v2262_v2 = vpop.f32.mrf.mxu2  ;;  %v1687_v60 = vpop.f32.mrf.mxu0 }
 0x30c   : > { %v4267_v49 = vadd.f32 %v6694_v14, %v4266_v34  ;;  %6703 = vpow2.f32 %v5776_v16  ;;  %v1972_v20 = vadd.f32 %v1971_v54, %v1683_v44  ;;  %v4275_v51 = vor.u32 1.1754944e-38, %v4274_v63 }
 0x30d   : > { %v9315_v37 = vpop.eup %6697  ;;  %v6157_v56 = vpack.c.bf16 %v4579_v25, %v4578_v62  ;;  %vm4283_vm4 = vweird.f32 %v9276_v12  ;;  %v5777_v52 = vmul.f32 -1.442695, %v2331_v5  ;;  %v4606_v35 = vsub.f32 %v4261_v36, %v7137_v46 }
 0x30e   : > { %v4271_v61 = vsel %vm4270_vm3, %v6694_v14, %v4267_v49  ;;  %v4279_v58 = vmul.f32 %v9315_v37, %v9276_v12  ;;  %v2261_v26 = vadd.f32 %v2260_v18, %v1972_v20  ;;  %v1974_v11 = vadd.f32 %v1973_v4, %v1685_v47 }
 0x30f   : > { %v6700_v9 = vpop.eup %6699  ;;  %6297 = vst [vmem:[%s7165_s22 + $0x110] sm:$0xff] %v6157_v56   ;;  %v4276_v17 = vsel %vm9311_vm2, %v4275_v51, %v4271_v61  ;;  %6705 = vpow2.f32 %v5777_v52  ;;  %v2333_v27 = vadd.f32 %v2332_v38, %v8156_v1  ;;  %v4287_v14 = vand.u32 2147483647, %v9276_v12 }
 0x310   : > { %v9327_v22 = vpop.eup %6701  ;;  %v4607_v6 = vsub.f32 %v4276_v17, %v7137_v46  ;;  %v4280_v0 = vsub.f32 1.0, %v4279_v58  ;;  %v9330_v40 = vadd.f32 1.0, %v6700_v9  ;;  %v5749_v54 = vmul.f32 -1.442695, %v2261_v26 }
 0x311   : > { %v3859_v18 = vmul.f32 %v9327_v22, %v9299_v41  ;;  %v4289_v8 = vand.u32 2147483648, %v9276_v12  ;;  %v2263_v15 = vadd.f32 %v2262_v2, %v1974_v11  ;;  %vm4284_vm5 = vweird.f32 %v9315_v37 }
 0x312   : > { %v6704_v33 = vpop.eup %6703  ;;  %v6227_v24 = vpack.c.bf16 %v4607_v6, %v4606_v35  ;;  %v4281_v1 = vmul.f32 %v9315_v37, %v4280_v0  ;;  %6707 = vrcp.f32 %v9330_v40  ;;  %v3867_v43 = vand.u32 2147483647, %v9299_v41  ;;  %vm9352_vm6 = vmor %vm4283_vm4, %vm4284_vm5  ;;  %v9402_v6 = vpop.f32.mrf.mxu3 }
 0x313   : > { %v3860_v53 = vsub.f32 1.0, %v3859_v18  ;;  %v3869_v28 = vand.u32 2147483648, %v9299_v41  ;;  %v9343_v44 = vadd.f32 1.0, %v6704_v33  ;;  %6709 = vpow2.f32 %v5749_v54  ;;  %v2265_v56 = vpop.f32.mrf.mxu2 }
 0x314   : > { %6311 = vst [vmem:[%s7165_s22 + $0x180] sm:$0xff] %v6227_v24   ;;  %v4282_v30 = vadd.f32 %v9315_v37, %v4281_v1  ;;  %v5750_v57 = vmul.f32 -1.442695, %v2263_v15  ;;  %v5778_v16 = vmul.f32 -1.442695, %v2333_v27  ;;  %vm9356_vm7 = vcmp.eq.f32.partialorder %v4287_v14, 8.507059e+37 }
 0x315   : > { %v6706_v59 = vpop.eup %6705  ;;  %v3861_v38 = vmul.f32 %v9327_v22, %v3860_v53  ;;  %6711 = vrcp.f32 %v9343_v44  ;;  %vm3864_vm8 = vweird.f32 %v9327_v22  ;;  %v4290_v29 = vor.u32 1.1754944e-38, %v4289_v8 }
 0x316   : > { %v4286_v5 = vsel %vm9352_vm6, %v9315_v37, %v4282_v30  ;;  %v3882_v34 = vand.u32 2147483647, %v9330_v40  ;;  %v3884_v62 = vand.u32 2147483648, %v9330_v40  ;;  %v9368_v36 = vadd.f32 1.0, %v6706_v59 }
 0x317   : > { %v3862_v12 = vadd.f32 %v9327_v22, %v3861_v38  ;;  %6713 = vpow2.f32 %v5750_v57  ;;  %vm3863_vm9 = vweird.f32 %v9299_v41  ;;  %vm9371_vm10 = vcmp.eq.f32.partialorder %v3867_v43, 8.507059e+37  ;;  %v1976_v41 = vpop.f32.mrf.mxu1 }
 0x318   : > { %v6708_v25 = vpop.eup %6707  ;;  %v3870_v49 = vor.u32 1.1754944e-38, %v3869_v28  ;;  %6715 = vpow2.f32 %v5778_v16  ;;  %vm9375_vm11 = vmor %vm3863_vm9, %vm3864_vm8  ;;  %v9381_v20 = vsel %vm9356_vm7, %v4290_v29, %v4286_v5  ;;  %vm3878_vm12 = vweird.f32 %v9330_v40 }
 0x319   : > { %v3874_v37 = vmul.f32 %v6708_v25, %v9330_v40  ;;  %6717 = vrcp.f32 %v9368_v36  ;;  %v6710_v51 = vpop.eup %6709  ;;  %v3866_v52 = vsel %vm9375_vm11, %v9327_v22, %v3862_v12  ;;  %v4302_v35 = vand.u32 2147483647, %v9343_v44  ;;  %v1689_v22 = vpop.f32.mrf.mxu0 }
 0x31a   : > { %v4304_v61 = vand.u32 2147483648, %v9343_v44  ;;  %v1688_v58 = vadd.f32 %v9061_v21, %v1687_v60  ;;  %vm9392_vm13 = vcmp.eq.f32.partialorder %v3882_v34, 8.507059e+37  ;;  %v3885_v9 = vor.u32 1.1754944e-38, %v3884_v62 }
 0x31b   : > { %v6712_v26 = vpop.eup %6711  ;;  %v3875_v4 = vsub.f32 1.0, %v3874_v37  ;;  %v9396_v17 = vadd.f32 1.0, %v6710_v51  ;;  %v4608_v11 = vsub.f32 %v9381_v20, %v7137_v46  ;;  %vm3879_vm14 = vweird.f32 %v6708_v25  ;;  %v2267_v45 = vpop.f32.mrf.mxu2 }
 0x31c   : > { %v4294_v27 = vmul.f32 %v6712_v26, %v9343_v44  ;;  %vm4298_vm15 = vweird.f32 %v9343_v44  ;;  %v3871_v54 = vsel %vm9371_vm10, %v3870_v49, %v3866_v52  ;;  %v4319_v14 = vand.u32 2147483648, %v9368_v36  ;;  %vm3880_vm1 = vmor %vm3878_vm12, %vm3879_vm14 }
 0x31d   : > { %v6714_v0 = vpop.eup %6713  ;;  %v3876_v18 = vmul.f32 %v6708_v25, %v3875_v4  ;;  %6719 = vrcp.f32 %v9396_v17  ;;  %vm9408_vm0 = vcmp.eq.f32.partialorder %v4302_v35, 8.507059e+37  ;;  %v4305_v24 = vor.u32 1.1754944e-38, %v4304_v61 }
 0x31e   : > { %v6716_v8 = vpop.eup %6715  ;;  %v4295_v15 = vsub.f32 1.0, %v4294_v27  ;;  %v9412_v1 = vadd.f32 1.0, %v6714_v0  ;;  %v4317_v43 = vand.u32 2147483647, %v9368_v36  ;;  %v1977_v30 = vadd.f32 %v1976_v41, %v1688_v58 }
 0x31f   : > { %v9414_v60 = vpop.eup %6717  ;;  %v3877_v53 = vadd.f32 %v6708_v25, %v3876_v18  ;;  %v9417_v28 = vadd.f32 1.0, %v6716_v8  ;;  %v4580_v57 = vsub.f32 %v3871_v54, %v7137_v46  ;;  %vm4299_vm2 = vweird.f32 %v6712_v26  ;;  %v1978_v49 = vpop.f32.mrf.mxu1 }
 0x320   : > { %v4296_v16 = vmul.f32 %v6712_v26, %v4295_v15  ;;  %v4309_v59 = vmul.f32 %v9414_v60, %v9368_v36  ;;  %vm4313_vm3 = vweird.f32 %v9368_v36  ;;  %v3899_v31 = vand.u32 2147483648, %v9396_v17  ;;  %vm4300_vm5 = vmor %vm4298_vm15, %vm4299_vm2 }
 0x321   : > { %v3881_v38 = vsel %vm3880_vm1, %v6708_v25, %v3877_v53  ;;  %v9427_v63 = vor.u32 1.1754944e-38, %v4319_v14  ;;  %6721 = vrcp.f32 %v9412_v1  ;;  %vm3893_vm4 = vweird.f32 %v9396_v17  ;;  %v1692_v2 = vpop.f32.mrf.mxu0 }
 0x322   : > { %v3886_v5 = vsel %vm9392_vm13, %v3885_v9, %v3881_v38  ;;  %v4297_v29 = vadd.f32 %v6712_v26, %v4296_v16  ;;  %v3897_v40 = vand.u32 2147483647, %v9396_v17  ;;  %v4310_v34 = vsub.f32 1.0, %v4309_v59  ;;  %v2340_v9 = vpop.f32.mrf.mxu3 }
 0x323   : > { %v9434_v12 = vpop.eup %6719  ;;  %v4581_v62 = vsub.f32 %v3886_v5, %v7137_v46  ;;  %6723 = vrcp.f32 %v9417_v28  ;;  %v2266_v25 = vadd.f32 %v2265_v56, %v1977_v30  ;;  %v2336_v47 = vadd.f32 %v9339_v19, %v8180_v23 }
 0x324   : > { %v4301_v37 = vsel %vm4300_vm5, %v6712_v26, %v4297_v29  ;;  %v3889_v41 = vmul.f32 %v9434_v12, %v9396_v17  ;;  %v4311_v51 = vmul.f32 %v9414_v60, %v4310_v34  ;;  %vm9445_vm6 = vcmp.eq.f32.partialorder %v4317_v43, 8.507059e+37 }
 0x325   : > { %v3912_v44 = vand.u32 2147483647, %v9412_v1  ;;  %v6162_v35 = vpack.c.bf16 %v4581_v62, %v4580_v57  ;;  %v4306_v56 = vsel %vm9408_vm0, %v4305_v24, %v4301_v37  ;;  %v3900_v23 = vor.u32 1.1754944e-38, %v3899_v31 }
 0x326   : > { %v3914_v19 = vand.u32 2147483648, %v9412_v1  ;;  %v4609_v61 = vsub.f32 %v4306_v56, %v7137_v46  ;;  %v3890_v58 = vsub.f32 1.0, %v3889_v41  ;;  %vm9454_vm7 = vcmp.eq.f32.partialorder %v3897_v40, 8.507059e+37 }
 0x327   : > { %v4312_v4 = vadd.f32 %v9414_v60, %v4311_v51  ;;  %vm4314_vm8 = vweird.f32 %v9414_v60  ;;  %v6722_v27 = vpop.eup %6721  ;;  %6298 = vst [vmem:[%s7165_s22 + $0x118] sm:$0xff] %v6162_v35   ;;  %vm3908_vm9 = vweird.f32 %v9412_v1  ;;  %v5751_v0 = vmul.f32 -1.442695, %v2266_v25  ;;  %v1981_v62 = vpop.f32.mrf.mxu1 }
 0x328   : > { %v5779_v54 = vmul.f32 -1.442695, %v2336_v47  ;;  %v1690_v18 = vadd.f32 %v9061_v21, %v1689_v22  ;;  %v6232_v14 = vpack.c.bf16 %v4609_v61, %v4608_v11  ;;  %v3891_v8 = vmul.f32 %v9434_v12, %v3890_v58  ;;  %vm9478_vm13 = vmor %vm4313_vm3, %vm4314_vm8  ;;  %v2270_v25 = vpop.f32.mrf.mxu2 }
 0x329   : > { %vm3894_vm10 = vweird.f32 %v9434_v12  ;;  %v3904_v15 = vmul.f32 %v6722_v27, %v9412_v1  ;;  %vm9469_vm11 = vcmp.eq.f32.partialorder %v3912_v44, 8.507059e+37  ;;  %vm4328_vm12 = vweird.f32 %v9417_v28  ;;  %v6724_v24 = vpop.eup %6723  ;;  %v1694_v44 = vpop.f32.mrf.mxu0 }
 0x32a   : > { %v3915_v11 = vor.u32 1.1754944e-38, %v3914_v19  ;;  %v4332_v22 = vand.u32 2147483647, %v9417_v28  ;;  %v4334_v53 = vand.u32 2147483648, %v9417_v28  ;;  %6725 = vpow2.f32 %v5751_v0  ;;  %6312 = vst [vmem:[%s7165_s22 + $0x188] sm:$0xff] %v6232_v14   ;;  %vm9494_vm14 = vmor %vm3893_vm4, %vm3894_vm10  ;;  %v2342_v35 = vpop.f32.mrf.mxu3 }
 0x32b   : > { %v3892_v43 = vadd.f32 %v9434_v12, %v3891_v8  ;;  %v4316_v30 = vsel %vm9478_vm13, %v9414_v60, %v4312_v4  ;;  %v3905_v57 = vsub.f32 1.0, %v3904_v15  ;;  %v4324_v36 = vmul.f32 %v6724_v24, %v9417_v28 }
 0x32c   : > { %vm3909_vm15 = vweird.f32 %v6722_v27  ;;  %6727 = vpow2.f32 %v5779_v54  ;;  %v1979_v59 = vadd.f32 %v1978_v49, %v1690_v18  ;;  %v2338_v38 = vadd.f32 %v9402_v6, %v8207_v3 }
 0x32d   : > { %v3896_v60 = vsel %vm9494_vm14, %v9434_v12, %v3892_v43  ;;  %v3906_v31 = vmul.f32 %v6722_v27, %v3905_v57  ;;  %v4325_v5 = vsub.f32 1.0, %v4324_v36  ;;  %v1693_v29 = vadd.f32 %v9061_v21, %v1692_v2  ;;  %vm3910_vm1 = vmor %vm3908_vm9, %vm3909_vm15 }
 0x32e   : > { %v4321_v17 = vsel %vm9445_vm6, %v9427_v63, %v4316_v30  ;;  %v2268_v40 = vadd.f32 %v2267_v45, %v1979_v59  ;;  %v5780_v34 = vmul.f32 -1.442695, %v2338_v38  ;;  %v2341_v47 = vadd.f32 %v2340_v9, %v8231_v7 }
 0x32f   : > { %v3907_v49 = vadd.f32 %v6722_v27, %v3906_v31  ;;  %v4326_v3 = vmul.f32 %v6724_v24, %v4325_v5  ;;  %vm4329_vm0 = vweird.f32 %v6724_v24  ;;  %v1982_v6 = vadd.f32 %v1981_v62, %v1693_v29 }
 0x330   : > { %v6726_v37 = vpop.eup %6725  ;;  %v3901_v12 = vsel %vm9454_vm7, %v3900_v23, %v3896_v60  ;;  %v5752_v41 = vmul.f32 -1.442695, %v2268_v40  ;;  %6729 = vpow2.f32 %v5780_v34  ;;  %v5781_v63 = vmul.f32 -1.442695, %v2341_v47  ;;  %vm4330_vm2 = vmor %vm4328_vm12, %vm4329_vm0  ;;  %v2272_v20 = vpop.f32.mrf.mxu2 }
 0x331   : > { %v3911_v45 = vsel %vm3910_vm1, %v6722_v27, %v3907_v49  ;;  %v4327_v51 = vadd.f32 %v6724_v24, %v4326_v3  ;;  %v9513_v52 = vadd.f32 1.0, %v6726_v37  ;;  %v2271_v7 = vadd.f32 %v2270_v25, %v1982_v6  ;;  %v1697_v60 = vpop.f32.mrf.mxu0 }
 0x332   : > { %v6728_v56 = vpop.eup %6727  ;;  %v3916_v19 = vsel %vm9469_vm11, %v3915_v11, %v3911_v45  ;;  %vm4333_vm3 = vcmp.eq.f32.partialorder %v4332_v22, 8.507059e+37  ;;  %v4335_v1 = vor.u32 1.1754944e-38, %v4334_v53  ;;  %6731 = vpow2.f32 %v5752_v41  ;;  %v9549_v31 = vpop.f32.mrf.mxu3 }
 0x333   : > { %v4582_v23 = vsub.f32 %v3901_v12, %v7137_v46  ;;  %v4583_v61 = vsub.f32 %v3916_v19, %v7137_v46  ;;  %v4331_v58 = vsel %vm4330_vm2, %v6724_v24, %v4327_v51  ;;  %6733 = vrcp.f32 %v9513_v52  ;;  %v1983_v24 = vpop.f32.mrf.mxu1 }
 0x334   : > { %v4610_v26 = vsub.f32 %v4321_v17, %v7137_v46  ;;  %v4336_v4 = vsel %vm4333_vm3, %v4335_v1, %v4331_v58  ;;  %v9524_v2 = vadd.f32 1.0, %v6728_v56  ;;  %v1695_v9 = vadd.f32 %v9061_v21, %v1694_v44 }
 0x335   : > { %v6167_v28 = vpack.c.bf16 %v4583_v61, %v4582_v23  ;;  %v4611_v27 = vsub.f32 %v4336_v4, %v7137_v46  ;;  %v5753_v0 = vmul.f32 -1.442695, %v2271_v7  ;;  %6735 = vpow2.f32 %v5781_v63 }
 0x336   : > { %v6730_v54 = vpop.eup %6729  ;;  %v3929_v18 = vand.u32 2147483648, %v9513_v52  ;;  %6737 = vrcp.f32 %v9524_v2  ;;  %v3927_v8 = vand.u32 2147483647, %v9513_v52  ;;  %v2343_v11 = vadd.f32 %v2342_v35, %v8258_v13 }
 0x337   : > { %6299 = vst [vmem:[%s7165_s22 + $0x120] sm:$0xff] %v6167_v28   ;;  %v6237_v14 = vpack.c.bf16 %v4611_v27, %v4610_v26  ;;  %v9532_v15 = vadd.f32 1.0, %v6730_v54  ;;  %6739 = vpow2.f32 %v5753_v0  ;;  %v4347_v53 = vand.u32 2147483647, %v9524_v2 }
 0x338   : > { %v6732_v33 = vpop.eup %6731  ;;  %v1984_v30 = vadd.f32 %v1983_v24, %v1695_v9  ;;  %vm3923_vm4 = vweird.f32 %v9513_v52  ;;  %v3930_v36 = vor.u32 1.1754944e-38, %v3929_v18  ;;  %vm9542_vm5 = vcmp.eq.f32.partialorder %v3927_v8, 8.507059e+37  ;;  %v2275_v4 = vpop.f32.mrf.mxu2 }
 0x339   : > { %v6734_v22 = vpop.eup %6733  ;;  %6313 = vst [vmem:[%s7165_s22 + $0x190] sm:$0xff] %v6237_v14   ;;  %v9537_v43 = vadd.f32 1.0, %v6732_v33  ;;  %6741 = vrcp.f32 %v9532_v15  ;;  %vm4343_vm6 = vweird.f32 %v9524_v2  ;;  %v4349_v13 = vand.u32 2147483648, %v9524_v2 }
 0x33a   : > { %v3919_v57 = vmul.f32 %v6734_v22, %v9513_v52  ;;  %v2273_v38 = vadd.f32 %v2272_v20, %v1984_v30  ;;  %v9553_v40 = vmul.f32 -1.442695, %v2343_v11  ;;  %v1698_v34 = vadd.f32 %v9061_v21, %v1697_v60 }
 0x33b   : > { %v6736_v16 = vpop.eup %6735  ;;  %6743 = vrcp.f32 %v9537_v43  ;;  %vm3924_vm7 = vweird.f32 %v6734_v22  ;;  %vm9557_vm8 = vcmp.eq.f32.partialorder %v4347_v53, 8.507059e+37  ;;  %v4362_v47 = vand.u32 2147483647, %v9532_v15  ;;  %v1986_v26 = vpop.f32.mrf.mxu1 }
 0x33c   : > { %v6738_v5 = vpop.eup %6737  ;;  %v3920_v29 = vsub.f32 1.0, %v3919_v57  ;;  %v9551_v17 = vadd.f32 1.0, %v6736_v16  ;;  %v3942_v6 = vand.u32 2147483647, %v9537_v43  ;;  %v3944_v37 = vand.u32 2147483648, %v9537_v43  ;;  %vm9574_vm11 = vmor %vm3923_vm4, %vm3924_vm7  ;;  %v2347_v53 = vpop.f32.mrf.mxu3 }
 0x33d   : > { %v4339_v62 = vmul.f32 %v6738_v5, %v9524_v2  ;;  %v6740_v49 = vpop.eup %6739  ;;  %v4350_v21 = vor.u32 1.1754944e-38, %v4349_v13  ;;  %v4364_v63 = vand.u32 2147483648, %v9532_v15  ;;  %vm3938_vm9 = vweird.f32 %v9537_v43 }
 0x33e   : > { %v3921_v3 = vmul.f32 %v6734_v22, %v3920_v29  ;;  %6745 = vrcp.f32 %v9551_v17  ;;  %v9566_v45 = vadd.f32 1.0, %v6740_v49  ;;  %vm4358_vm10 = vweird.f32 %v9532_v15 }
 0x33f   : > { %v6742_v12 = vpop.eup %6741  ;;  %v4340_v41 = vsub.f32 1.0, %v4339_v62  ;;  %vm4344_vm12 = vweird.f32 %v6738_v5  ;;  %vm9578_vm13 = vcmp.eq.f32.partialorder %v4362_v47, 8.507059e+37  ;;  %vm9586_vm14 = vcmp.eq.f32.partialorder %v3942_v6, 8.507059e+37 }
 0x340   : > { %v3922_v51 = vadd.f32 %v6734_v22, %v3921_v3  ;;  %v4354_v7 = vmul.f32 %v6742_v12, %v9532_v15  ;;  %6747 = vrcp.f32 %v9566_v45  ;;  %v3945_v52 = vor.u32 1.1754944e-38, %v3944_v37  ;;  %vm4345_vm15 = vmor %vm4343_vm6, %vm4344_vm12  ;;  %v9628_v37 = vld [vmem:[%s9952_s2] ss:$0 sm:$0xff] }
 0x341   : > { %v6744_v44 = vpop.eup %6743  ;;  %v4341_v56 = vmul.f32 %v6738_v5, %v4340_v41  ;;  %v4365_v28 = vor.u32 1.1754944e-38, %v4364_v63  ;;  %v4377_v27 = vand.u32 2147483647, %v9551_v17  ;;  %v5754_v0 = vmul.f32 -1.442695, %v2273_v38  ;;  %v2277_v63 = vpop.f32.mrf.mxu2 }
 0x342   : > { %v3926_v1 = vsel %vm9574_vm11, %v6734_v22, %v3922_v51  ;;  %v3934_v23 = vmul.f32 %v6744_v44, %v9537_v43  ;;  %v4355_v58 = vsub.f32 1.0, %v4354_v7  ;;  %vm4359_vm0 = vweird.f32 %v6742_v12  ;;  %v1699_v22 = vpop.f32.mrf.mxu0 }
 0x343   : > { %v4342_v9 = vadd.f32 %v6738_v5, %v4341_v56  ;;  %v3931_v18 = vsel %vm9542_vm5, %v3930_v36, %v3926_v1  ;;  %v3957_v24 = vand.u32 2147483647, %v9566_v45  ;;  %v4379_v11 = vand.u32 2147483648, %v9551_v17  ;;  %vm4360_vm2 = vmor %vm4358_vm10, %vm4359_vm0 }
 0x344   : > { %v9591_v54 = vpop.eup %6745  ;;  %v3935_v14 = vsub.f32 1.0, %v3934_v23  ;;  %v4356_v8 = vmul.f32 %v6742_v12, %v4355_v58  ;;  %vm3939_vm1 = vweird.f32 %v6744_v44  ;;  %v4584_v16 = vsub.f32 %v3931_v18, %v7137_v46 }
 0x345   : > { %v4346_v33 = vsel %vm4345_vm15, %v6738_v5, %v4342_v9  ;;  %v4369_v20 = vmul.f32 %v9591_v54, %v9551_v17  ;;  %vm4373_vm3 = vweird.f32 %v9551_v17  ;;  %6749 = vpow2.f32 %v5754_v0  ;;  %vm3940_vm4 = vmor %vm3938_vm9, %vm3939_vm1 }
 0x346   : > { %v4351_v30 = vsel %vm9557_vm8, %v4350_v21, %v4346_v33  ;;  %v3936_v57 = vmul.f32 %v6744_v44, %v3935_v14  ;;  %v4357_v2 = vadd.f32 %v6742_v12, %v4356_v8  ;;  %v9604_v36 = vpop.eup %6747  ;;  %v1987_v13 = vadd.f32 %v1986_v26, %v1698_v34 }
 0x347   : > { %v4370_v59 = vsub.f32 1.0, %v4369_v20  ;;  %v4612_v38 = vsub.f32 %v4351_v30, %v7137_v46  ;;  %v3949_v29 = vmul.f32 %v9604_v36, %v9566_v45  ;;  %6751 = vpow2.f32 %v9553_v40 }
 0x348   : > { %v3937_v60 = vadd.f32 %v6744_v44, %v3936_v57  ;;  %v4361_v5 = vsel %vm4360_vm2, %v6742_v12, %v4357_v2  ;;  %v2276_v25 = vadd.f32 %v2275_v4, %v1987_v13  ;;  %v2346_v3 = vadd.f32 %v9549_v31, %v8282_v50  ;;  %v1988_v31 = vpop.f32.mrf.mxu1  ;;  %v2350_v4 = vpop.f32.mrf.mxu3 }
 0x349   : > { %v4366_v62 = vsel %vm9578_vm13, %v4365_v28, %v4361_v5  ;;  %v4371_v15 = vmul.f32 %v9591_v54, %v4370_v59  ;;  %v3950_v49 = vsub.f32 1.0, %v3949_v29  ;;  %vm4374_vm5 = vweird.f32 %v9591_v54 }
 0x34a   : > { %v3941_v47 = vsel %vm3940_vm4, %v6744_v44, %v3937_v60  ;;  %v4613_v34 = vsub.f32 %v4366_v62, %v7137_v46  ;;  %v5755_v43 = vmul.f32 -1.442695, %v2276_v25  ;;  %v1700_v40 = vadd.f32 %v9628_v37, %v1699_v22  ;;  %v1702_v26 = vpop.f32.mrf.mxu0  ;;  %vm9647_vm8 = vmor %vm4373_vm3, %vm4374_vm5  ;;  %v2280_v60 = vpop.f32.mrf.mxu2 }
 0x34b   : > { %v3946_v6 = vsel %vm9586_vm14, %v3945_v52, %v3941_v47  ;;  %v3951_v21 = vmul.f32 %v9604_v36, %v3950_v49  ;;  %v5783_v50 = vmul.f32 -1.442695, %v2346_v3  ;;  %v6750_v51 = vpop.eup %6749  ;;  %v4372_v7 = vadd.f32 %v9591_v54, %v4371_v15 }
 0x34c   : > { %v4585_v12 = vsub.f32 %v3946_v6, %v7137_v46  ;;  %v6242_v41 = vpack.c.bf16 %v4613_v34, %v4612_v38  ;;  %6753 = vpow2.f32 %v5755_v43  ;;  %v1989_v44 = vadd.f32 %v1988_v31, %v1700_v40 }
 0x34d   : > { %v2348_v35 = vadd.f32 %v2347_v53, %v8309_v42  ;;  %v3952_v19 = vadd.f32 %v9604_v36, %v3951_v21  ;;  %vm3954_vm6 = vweird.f32 %v9604_v36  ;;  %v9638_v1 = vadd.f32 1.0, %v6750_v51  ;;  %v6752_v23 = vpop.eup %6751 }
 0x34e   : > { %v6172_v56 = vpack.c.bf16 %v4585_v12, %v4584_v16  ;;  %6314 = vst [vmem:[%s7165_s22 + $0x198] sm:$0xff] %v6242_v41   ;;  %v3959_v61 = vand.u32 2147483648, %v9566_v45  ;;  %6755 = vpow2.f32 %v5783_v50  ;;  %v2278_v52 = vadd.f32 %v2277_v63, %v1989_v44 }
 0x34f   : > { %v5784_v58 = vmul.f32 -1.442695, %v2348_v35  ;;  %vm3953_vm7 = vweird.f32 %v9566_v45  ;;  %6757 = vrcp.f32 %v9638_v1  ;;  %v1780_v9 = vadd.f32 %v9628_v37, %v7687_v55 }
 0x350   : > { %6300 = vst [vmem:[%s7165_s22 + $0x128] sm:$0xff] %v6172_v56   ;;  %vm9654_vm9 = vmor %vm3953_vm7, %vm3954_vm6  ;;  %v4376_v0 = vsel %vm9647_vm8, %v9591_v54, %v4372_v7  ;;  %v9661_v18 = vadd.f32 1.0, %v6752_v23  ;;  %v5756_v14 = vmul.f32 -1.442695, %v2278_v52  ;;  %vm3958_vm10 = vcmp.eq.f32.partialorder %v3957_v24, 8.507059e+37  ;;  %v2352_v34 = vpop.f32.mrf.mxu3 }
 0x351   : > { %v3956_v8 = vsel %vm9654_vm9, %v9604_v36, %v3952_v19  ;;  %v4380_v55 = vor.u32 1.1754944e-38, %v4379_v11  ;;  %6759 = vpow2.f32 %v5784_v58  ;;  %v3960_v20 = vor.u32 1.1754944e-38, %v3959_v61  ;;  %v1991_v36 = vpop.f32.mrf.mxu1 }
 0x352   : > { %v6754_v33 = vpop.eup %6753  ;;  %vm4378_vm11 = vcmp.eq.f32.partialorder %v4377_v27, 8.507059e+37  ;;  %6761 = vrcp.f32 %v9661_v18  ;;  %v1703_v54 = vadd.f32 %v9628_v37, %v1702_v26  ;;  %v3972_v53 = vand.u32 2147483647, %v9638_v1  ;;  %v1704_v47 = vpop.f32.mrf.mxu0 }
 0x353   : > { %v9674_v22 = vsel %vm4378_vm11, %v4380_v55, %v4376_v0  ;;  %v9677_v30 = vadd.f32 1.0, %v6754_v33  ;;  %6763 = vpow2.f32 %v5756_v14  ;;  %v9679_v24 = vsel %vm3958_vm10, %v3960_v20, %v3956_v8  ;;  %v2282_v55 = vpop.f32.mrf.mxu2 }
 0x354   : > { %v6756_v45 = vpop.eup %6755  ;;  %v3974_v11 = vand.u32 2147483648, %v9638_v1  ;;  %v2351_v57 = vadd.f32 %v2350_v4, %v8333_v39  ;;  %v9684_v27 = vadd.f32 %v8409_v48, %v1780_v9  ;;  %v4392_v2 = vand.u32 2147483647, %v9661_v18 }
 0x355   : > { %v6758_v17 = vpop.eup %6757  ;;  %6765 = vrcp.f32 %v9677_v30  ;;  %v4614_v16 = vsub.f32 %v9674_v22, %v7137_v46  ;;  %v9691_v13 = vadd.f32 1.0, %v6756_v45  ;;  %v1992_v38 = vadd.f32 %v1991_v36, %v1703_v54 }
 0x356   : > { %v3964_v59 = vmul.f32 %v6758_v17, %v9638_v1  ;;  %v4586_v39 = vsub.f32 %v9679_v24, %v7137_v46  ;;  %vm3968_vm12 = vweird.f32 %v9638_v1  ;;  %vm9696_vm13 = vcmp.eq.f32.partialorder %v3972_v53, 8.507059e+37 }
 0x357   : > { %v6760_v5 = vpop.eup %6759  ;;  %v5785_v29 = vmul.f32 -1.442695, %v2351_v57  ;;  %v3975_v25 = vor.u32 1.1754944e-38, %v3974_v11  ;;  %vm4388_vm14 = vweird.f32 %v9661_v18  ;;  %6767 = vrcp.f32 %v9691_v13 }
 0x358   : > { %v6762_v62 = vpop.eup %6761  ;;  %v3965_v15 = vsub.f32 1.0, %v3964_v59  ;;  %vm3969_vm15 = vweird.f32 %v6758_v17  ;;  %vm9703_vm0 = vcmp.eq.f32.partialorder %v4392_v2, 8.507059e+37  ;;  %v4394_v43 = vand.u32 2147483648, %v9661_v18  ;;  %v2355_v48 = vpop.f32.mrf.mxu3 }
 0x359   : > { %v6764_v49 = vpop.eup %6763  ;;  %v4384_v3 = vmul.f32 %v6762_v62, %v9661_v18  ;;  %v9710_v41 = vadd.f32 1.0, %v6760_v5  ;;  %v2281_v21 = vadd.f32 %v2280_v60, %v1992_v38  ;;  %6769 = vpow2.f32 %v5785_v29  ;;  %vm3970_vm1 = vmor %vm3968_vm12, %vm3969_vm15  ;;  %v1993_v42 = vpop.f32.mrf.mxu1 }
 0x35a   : > { %v3966_v40 = vmul.f32 %v6758_v17, %v3965_v15  ;;  %v9708_v12 = vadd.f32 1.0, %v6764_v49  ;;  %v1705_v63 = vadd.f32 %v9628_v37, %v1704_v47  ;;  %v9716_v51 = vadd.f32 %v2352_v34, %v8360_v32 }
 0x35b   : > { %v9712_v50 = vpop.eup %6765  ;;  %v4385_v31 = vsub.f32 1.0, %v4384_v3  ;;  %v3987_v35 = vand.u32 2147483647, %v9677_v30  ;;  %vm4389_vm2 = vweird.f32 %v6762_v62  ;;  %v4395_v19 = vor.u32 1.1754944e-38, %v4394_v43 }
 0x35c   : > { %v3967_v7 = vadd.f32 %v6758_v17, %v3966_v40  ;;  %v3979_v44 = vmul.f32 %v9712_v50, %v9677_v30  ;;  %6771 = vrcp.f32 %v9708_v12  ;;  %v3989_v23 = vand.u32 2147483648, %v9677_v30  ;;  %vm4390_vm4 = vmor %vm4388_vm14, %vm4389_vm2 }
 0x35d   : > { %v4386_v56 = vmul.f32 %v6762_v62, %v4385_v31  ;;  %v9726_v61 = vpop.eup %6767  ;;  %6773 = vrcp.f32 %v9710_v41  ;;  %v5757_v58 = vmul.f32 -1.442695, %v2281_v21  ;;  %vm3983_vm3 = vweird.f32 %v9677_v30 }
 0x35e   : > { %v3971_v32 = vsel %vm3970_vm1, %v6758_v17, %v3967_v7  ;;  %v3980_v52 = vsub.f32 1.0, %v3979_v44  ;;  %v4399_v1 = vmul.f32 %v9726_v61, %v9691_v13  ;;  %vm9738_vm5 = vcmp.eq.f32.partialorder %v3987_v35, 8.507059e+37 }
 0x35f   : > { %v3976_v26 = vsel %vm9696_vm13, %v3975_v25, %v3971_v32  ;;  %v4387_v4 = vadd.f32 %v6762_v62, %v4386_v56  ;;  %v4407_v14 = vand.u32 2147483647, %v9691_v13  ;;  %v1994_v8 = vadd.f32 %v1993_v42, %v1705_v63  ;;  %v6770_v33 = vpop.eup %6769 }
 0x360   : > { %v4587_v9 = vsub.f32 %v3976_v26, %v7137_v46  ;;  %v3981_v28 = vmul.f32 %v9712_v50, %v3980_v52  ;;  %vm3984_vm6 = vweird.f32 %v9712_v50  ;;  %v3990_v54 = vor.u32 1.1754944e-38, %v3989_v23 }
 0x361   : > { %v4391_v20 = vsel %vm4390_vm4, %v6762_v62, %v4387_v4  ;;  %v4400_v53 = vsub.f32 1.0, %v4399_v1  ;;  %6775 = vpow2.f32 %v5757_v58  ;;  %v4004_v36 = vand.u32 2147483648, %v9708_v12  ;;  %vm9767_vm9 = vmor %vm3983_vm3, %vm3984_vm6 }
 0x362   : > { %v6772_v45 = vpop.eup %6771  ;;  %v6177_v18 = vpack.c.bf16 %v4587_v9, %v4586_v39  ;;  %v4396_v24 = vsel %vm9703_vm0, %v4395_v19, %v4391_v20  ;;  %v3982_v11 = vadd.f32 %v9712_v50, %v3981_v28  ;;  %vm4403_vm7 = vweird.f32 %v9691_v13  ;;  %v1707_v39 = vpop.f32.mrf.mxu0 }
 0x363   : > { %v4615_v57 = vsub.f32 %v4396_v24, %v7137_v46  ;;  %v4401_v17 = vmul.f32 %v9726_v61, %v4400_v53  ;;  %v3994_v2 = vmul.f32 %v6772_v45, %v9708_v12  ;;  %v6774_v59 = vpop.eup %6773  ;;  %vm9753_vm8 = vcmp.eq.f32.partialorder %v4407_v14, 8.507059e+37  ;;  %v2285_v19 = vpop.f32.mrf.mxu2 }
 0x364   : > { %6301 = vst [vmem:[%s7165_s22 + $0x130] sm:$0xff] %v6177_v18   ;;  %v4409_v60 = vand.u32 2147483648, %v9691_v13  ;;  %v9758_v5 = vadd.f32 1.0, %v6770_v33  ;;  %vm4404_vm10 = vweird.f32 %v9726_v61  ;;  %vm3998_vm11 = vweird.f32 %v9708_v12  ;;  %v1996_v13 = vpop.f32.mrf.mxu1  ;;  %v2357_v28 = vpop.f32.mrf.mxu3 }
 0x365   : > { %v6247_v29 = vpack.c.bf16 %v4615_v57, %v4614_v16  ;;  %v3995_v15 = vsub.f32 1.0, %v3994_v2  ;;  %v3986_v25 = vsel %vm9767_vm9, %v9712_v50, %v3982_v11  ;;  %v4402_v22 = vadd.f32 %v9726_v61, %v4401_v17  ;;  %vm9789_vm13 = vmor %vm4403_vm7, %vm4404_vm10 }
 0x366   : > { %v4414_v16 = vmul.f32 %v6774_v59, %v9710_v41  ;;  %6777 = vrcp.f32 %v9758_v5  ;;  %vm3999_vm12 = vweird.f32 %v6772_v45  ;;  %v4002_v47 = vand.u32 2147483647, %v9708_v12 }
 0x367   : > { %6315 = vst [vmem:[%s7165_s22 + $0x1a0] sm:$0xff] %v6247_v29   ;;  %v3996_v30 = vmul.f32 %v6772_v45, %v3995_v15  ;;  %v4005_v34 = vor.u32 1.1754944e-38, %v4004_v36  ;;  %v6776_v49 = vpop.eup %6775  ;;  %v4422_v6 = vand.u32 2147483647, %v9710_v41  ;;  %v4424_v43 = vand.u32 2147483648, %v9710_v41  ;;  %vm4000_vm15 = vmor %vm3998_vm11, %vm3999_vm12 }
 0x368   : > { %v4415_v3 = vsub.f32 1.0, %v4414_v16  ;;  %v2283_v40 = vadd.f32 %v2282_v55, %v1994_v8  ;;  %v3991_v21 = vsel %vm9738_vm5, %v3990_v54, %v3986_v25  ;;  %vm4419_vm14 = vweird.f32 %v6774_v59 }
 0x369   : > { %v3997_v31 = vadd.f32 %v6772_v45, %v3996_v30  ;;  %v9793_v63 = vadd.f32 1.0, %v6776_v49  ;;  %v4406_v7 = vsel %vm9789_vm13, %v9726_v61, %v4402_v22  ;;  %v5786_v56 = vmul.f32 -1.442695, %v9716_v51 }
 0x36a   : > { %v4416_v44 = vmul.f32 %v6774_v59, %v4415_v3  ;;  %v5758_v35 = vmul.f32 -1.442695, %v2283_v40  ;;  %v4410_v23 = vor.u32 1.1754944e-38, %v4409_v60  ;;  %vm4003_vm0 = vcmp.eq.f32.partialorder %v4002_v47, 8.507059e+37  ;;  %v1709_v9 = vpop.f32.mrf.mxu0 }
 0x36b   : > { %v4001_v32 = vsel %vm4000_vm15, %v6772_v45, %v3997_v31  ;;  %6779 = vrcp.f32 %v9793_v63  ;;  %vm4418_vm1 = vweird.f32 %v9710_v41  ;;  %v4588_v12 = vsub.f32 %v3991_v21, %v7137_v46 }
 0x36c   : > { %v9802_v52 = vpop.eup %6777  ;;  %v4006_v58 = vsel %vm4003_vm0, %v4005_v34, %v4001_v32  ;;  %v4417_v26 = vadd.f32 %v6774_v59, %v4416_v44  ;;  %6781 = vpow2.f32 %v5758_v35  ;;  %v4411_v61 = vsel %vm9753_vm8, %v4410_v23, %v4406_v7  ;;  %vm4420_vm2 = vmor %vm4418_vm1, %vm4419_vm14  ;;  %v1998_v60 = vpop.f32.mrf.mxu1 }
 0x36d   : > { %v4589_v51 = vsub.f32 %v4006_v58, %v7137_v46  ;;  %v4425_v4 = vor.u32 1.1754944e-38, %v4424_v43  ;;  %vm4423_vm3 = vcmp.eq.f32.partialorder %v4422_v6, 8.507059e+37  ;;  %6783 = vpow2.f32 %v5786_v56 }
 0x36e   : > { %v4421_v1 = vsel %vm4420_vm2, %v6774_v59, %v4417_v26  ;;  %v1708_v42 = vadd.f32 %v9628_v37, %v1707_v39  ;;  %v4429_v14 = vmul.f32 %v9802_v52, %v9758_v5  ;;  %v2356_v8 = vadd.f32 %v2355_v48, %v8384_v10  ;;  %v2287_v39 = vpop.f32.mrf.mxu2 }
 0x36f   : > { %v6182_v41 = vpack.c.bf16 %v4589_v51, %v4588_v12  ;;  %v4426_v0 = vsel %vm4423_vm3, %v4425_v4, %v4421_v1  ;;  %v4616_v55 = vsub.f32 %v4411_v61, %v7137_v46  ;;  %v1710_v45 = vadd.f32 %v9628_v37, %v1709_v9 }
 0x370   : > { %v4617_v33 = vsub.f32 %v4426_v0, %v7137_v46  ;;  %v1997_v20 = vadd.f32 %v1996_v13, %v1708_v42  ;;  %v5787_v53 = vmul.f32 -1.442695, %v2356_v8  ;;  %v2358_v18 = vadd.f32 %v2357_v28, %v9684_v27 }
 0x371   : > { %v9816_v54 = vpop.eup %6779  ;;  %6302 = vst [vmem:[%s7165_s22 + $0x138] sm:$0xff] %v6182_v41   ;;  %v4430_v17 = vsub.f32 1.0, %v4429_v14  ;;  %v1999_v37 = vadd.f32 %v1998_v60, %v1710_v45  ;;  %v4437_v22 = vand.u32 2147483647, %v9758_v5  ;;  %v4439_v16 = vand.u32 2147483648, %v9758_v5 }
 0x372   : > { %v6782_v24 = vpop.eup %6781  ;;  %v6252_v11 = vpack.c.bf16 %v4617_v33, %v4616_v55  ;;  %v4009_v57 = vmul.f32 %v9816_v54, %v9793_v63  ;;  %v2286_v10 = vadd.f32 %v2285_v19, %v1997_v20  ;;  %6785 = vpow2.f32 %v5787_v53 }
 0x373   : > { %v9823_v2 = vadd.f32 1.0, %v6782_v24  ;;  %v6784_v36 = vpop.eup %6783  ;;  %v5788_v27 = vmul.f32 -1.442695, %v2358_v18  ;;  %v4431_v29 = vmul.f32 %v9802_v52, %v4430_v17  ;;  %v2288_v62 = vadd.f32 %v2287_v39, %v1999_v37 }
 0x374   : > { %6316 = vst [vmem:[%s7165_s22 + $0x1a8] sm:$0xff] %v6252_v11   ;;  %v4010_v59 = vsub.f32 1.0, %v4009_v57  ;;  %v5759_v38 = vmul.f32 -1.442695, %v2286_v10  ;;  %v9827_v48 = vadd.f32 1.0, %v6784_v36  ;;  %v4019_v3 = vand.u32 2147483648, %v9793_v63 }
 0x375   : > { %6787 = vrcp.f32 %v9823_v2  ;;  %v5760_v30 = vmul.f32 -1.442695, %v2288_v62  ;;  %v4017_v47 = vand.u32 2147483647, %v9793_v63  ;;  %v4432_v6 = vadd.f32 %v9802_v52, %v4431_v29 }
 0x376   : > { %6789 = vpow2.f32 %v5759_v38  ;;  %v4011_v15 = vmul.f32 %v9816_v54, %v4010_v59  ;;  %vm4434_vm4 = vweird.f32 %v9802_v52  ;;  %vm4014_vm5 = vweird.f32 %v9816_v54 }
 0x377   : > { %6791 = vrcp.f32 %v9827_v48  ;;  %vm4433_vm6 = vweird.f32 %v9758_v5  ;;  %vm9845_vm7 = vcmp.eq.f32.partialorder %v4437_v22, 8.507059e+37  ;;  %v4440_v31 = vor.u32 1.1754944e-38, %v4439_v16 }
 0x378   : > { %v6786_v25 = vpop.eup %6785  ;;  %6793 = vpow2.f32 %v5788_v27  ;;  %v4012_v43 = vadd.f32 %v9816_v54, %v4011_v15  ;;  %v4034_v7 = vand.u32 2147483648, %v9823_v2  ;;  %vm4013_vm8 = vweird.f32 %v9793_v63  ;;  %vm9855_vm10 = vmor %vm4433_vm6, %vm4434_vm4 }
 0x379   : > { %v9835_v34 = vadd.f32 1.0, %v6786_v25  ;;  %6795 = vpow2.f32 %v5760_v30  ;;  %vm9851_vm9 = vcmp.eq.f32.partialorder %v4017_v47, 8.507059e+37  ;;  %vm9863_vm11 = vmor %vm4013_vm8, %vm4014_vm5  ;;  %v4020_v32 = vor.u32 1.1754944e-38, %v4019_v3 }
 0x37a   : > { %v4436_v63 = vsel %vm9855_vm10, %v9802_v52, %v4432_v6  ;;  %v4032_v58 = vand.u32 2147483647, %v9823_v2  ;;  %v4016_v12 = vsel %vm9863_vm11, %v9816_v54, %v4012_v43  ;;  %vm4028_vm13 = vweird.f32 %v9823_v2 }
 0x37b   : > { %v6788_v49 = vpop.eup %6787  ;;  %6797 = vrcp.f32 %v9835_v34  ;;  %v4035_v4 = vor.u32 1.1754944e-38, %v4034_v7  ;;  %v4452_v42 = vand.u32 2147483647, %v9827_v48  ;;  %v4454_v28 = vand.u32 2147483648, %v9827_v48 }
 0x37c   : > { %v4024_v40 = vmul.f32 %v6788_v49, %v9823_v2  ;;  %v6790_v21 = vpop.eup %6789  ;;  %vm4029_vm12 = vweird.f32 %v6788_v49  ;;  %v4021_v14 = vsel %vm9851_vm9, %v4020_v32, %v4016_v12  ;;  %v4441_v33 = vsel %vm9845_vm7, %v4440_v31, %v4436_v63 }
 0x37d   : > { %v6792_v44 = vpop.eup %6791  ;;  %v9859_v5 = vadd.f32 1.0, %v6790_v21  ;;  %vm4030_vm14 = vmor %vm4028_vm13, %vm4029_vm12  ;;  %vm4033_vm0 = vcmp.eq.f32.partialorder %v4032_v58, 8.507059e+37  ;;  %vm4448_vm1 = vweird.f32 %v9827_v48  ;;  %v4590_v24 = vsub.f32 %v4021_v14, %v7137_v46 }
 0x37e   : > { %v4025_v13 = vsub.f32 1.0, %v4024_v40  ;;  %v6794_v19 = vpop.eup %6793  ;;  %v4444_v26 = vmul.f32 %v6792_v44, %v9827_v48  ;;  %vm4449_vm15 = vweird.f32 %v6792_v44  ;;  %v4455_v57 = vor.u32 1.1754944e-38, %v4454_v28 }
 0x37f   : > { %6799 = vrcp.f32 %v9859_v5  ;;  %v6796_v51 = vpop.eup %6795  ;;  %v9883_v0 = vadd.f32 1.0, %v6794_v19  ;;  %vm4450_vm2 = vmor %vm4448_vm1, %vm4449_vm15  ;;  %vm4453_vm3 = vcmp.eq.f32.partialorder %v4452_v42, 8.507059e+37  ;;  %v4618_v59 = vsub.f32 %v4441_v33, %v7137_v46 }
 0x380   : > { %v4026_v61 = vmul.f32 %v6788_v49, %v4025_v13  ;;  %v4445_v1 = vsub.f32 1.0, %v4444_v26  ;;  %v9881_v41 = vadd.f32 1.0, %v6796_v51  ;;  %v4047_v27 = vand.u32 2147483647, %v9859_v5 }
 0x381   : > { %v9878_v52 = vpop.eup %6797  ;;  %vm4463_vm4 = vweird.f32 %v9835_v34  ;;  %vm4043_vm6 = vweird.f32 %v9859_v5  ;;  %v4049_v25 = vand.u32 2147483648, %v9859_v5  ;;  %v4467_v22 = vand.u32 2147483647, %v9835_v34 }
 0x382   : > { %v4027_v9 = vadd.f32 %v6788_v49, %v4026_v61  ;;  %v4446_v8 = vmul.f32 %v6792_v44, %v4445_v1  ;;  %v4459_v55 = vmul.f32 %v9878_v52, %v9835_v34  ;;  %6801 = vrcp.f32 %v9881_v41 }
 0x383   : > { %6803 = vrcp.f32 %v9883_v0  ;;  %vm4464_vm7 = vweird.f32 %v9878_v52  ;;  %vm9915_vm9 = vcmp.eq.f32.partialorder %v4047_v27, 8.507059e+37  ;;  %v4469_v43 = vand.u32 2147483648, %v9835_v34 }
 0x384   : > { %v4031_v20 = vsel %vm4030_vm14, %v6788_v49, %v4027_v9  ;;  %v4447_v53 = vadd.f32 %v6792_v44, %v4446_v8  ;;  %v4460_v45 = vsub.f32 1.0, %v4459_v55  ;;  %v4062_v40 = vand.u32 2147483647, %v9881_v41  ;;  %vm9928_vm11 = vmor %vm4463_vm4, %vm4464_vm7 }
 0x385   : > { %v4036_v54 = vsel %vm4033_vm0, %v4035_v4, %v4031_v20  ;;  %v6800_v18 = vpop.eup %6799  ;;  %v4064_v21 = vand.u32 2147483648, %v9881_v41  ;;  %vm4058_vm12 = vweird.f32 %v9881_v41  ;;  %v4482_v56 = vand.u32 2147483647, %v9883_v0 }
 0x386   : > { %v4591_v11 = vsub.f32 %v4036_v54, %v7137_v46  ;;  %v4451_v10 = vsel %vm4450_vm2, %v6792_v44, %v4447_v53  ;;  %v4039_v17 = vmul.f32 %v6800_v18, %v9859_v5  ;;  %v4461_v39 = vmul.f32 %v9878_v52, %v4460_v45 }
 0x387   : > { %v4456_v36 = vsel %vm4453_vm3, %v4455_v57, %v4451_v10  ;;  %vm4044_vm5 = vweird.f32 %v6800_v18  ;;  %v4050_v44 = vor.u32 1.1754944e-38, %v4049_v25  ;;  %v4484_v13 = vand.u32 2147483648, %v9883_v0 }
 0x388   : > { %v6187_v2 = vpack.c.bf16 %v4591_v11, %v4590_v24  ;;  %v4619_v38 = vsub.f32 %v4456_v36, %v7137_v46  ;;  %v4040_v60 = vsub.f32 1.0, %v4039_v17  ;;  %v6802_v37 = vpop.eup %6801  ;;  %v4462_v30 = vadd.f32 %v9878_v52, %v4461_v39  ;;  %vm9911_vm8 = vmor %vm4043_vm6, %vm4044_vm5 }
 0x389   : > { %v4054_v62 = vmul.f32 %v6802_v37, %v9881_v41  ;;  %v6804_v15 = vpop.eup %6803  ;;  %vm4059_vm10 = vweird.f32 %v6802_v37  ;;  %vm4468_vm14 = vcmp.eq.f32.partialorder %v4467_v22, 8.507059e+37  ;;  %v4470_v32 = vor.u32 1.1754944e-38, %v4469_v43 }
 0x38a   : > { %6303 = vst [vmem:[%s7165_s22 + $0x140] sm:$0xff] %v6187_v2   ;;  %v6257_v48 = vpack.c.bf16 %v4619_v38, %v4618_v59  ;;  %v4041_v29 = vmul.f32 %v6800_v18, %v4040_v60  ;;  %v4474_v49 = vmul.f32 %v6804_v15, %v9883_v0  ;;  %v4466_v5 = vsel %vm9928_vm11, %v9878_v52, %v4462_v30  ;;  %vm4060_vm15 = vmor %vm4058_vm12, %vm4059_vm10 }
 0x38b   : > { %v4055_v47 = vsub.f32 1.0, %v4054_v62  ;;  %vm4479_vm13 = vweird.f32 %v6804_v15  ;;  %v4065_v63 = vor.u32 1.1754944e-38, %v4064_v21  ;;  %vm4063_vm0 = vcmp.eq.f32.partialorder %v4062_v40, 8.507059e+37 }
 0x38c   : > { %6317 = vst [vmem:[%s7165_s22 + $0x1b0] sm:$0xff] %v6257_v48   ;;  %v4042_v16 = vadd.f32 %v6800_v18, %v4041_v29  ;;  %v4475_v7 = vsub.f32 1.0, %v4474_v49  ;;  %vm4478_vm1 = vweird.f32 %v9883_v0  ;;  %v4471_v12 = vsel %vm4468_vm14, %v4470_v32, %v4466_v5 }
 0x38d   : > { %v4056_v31 = vmul.f32 %v6802_v37, %v4055_v47  ;;  %vm4480_vm2 = vmor %vm4478_vm1, %vm4479_vm13  ;;  %v4485_v51 = vor.u32 1.1754944e-38, %v4484_v13  ;;  %vm4483_vm3 = vcmp.eq.f32.partialorder %v4482_v56, 8.507059e+37  ;;  %v4620_v9 = vsub.f32 %v4471_v12, %v7137_v46 }
 0x38e   : > { %v4046_v50 = vsel %vm9911_vm8, %v6800_v18, %v4042_v16  ;;  %v4476_v23 = vmul.f32 %v6804_v15, %v4475_v7 }
 0x38f   : > { %v4057_v19 = vadd.f32 %v6802_v37, %v4056_v31  ;;  %v4051_v34 = vsel %vm9915_vm9, %v4050_v44, %v4046_v50 }
 0x390   : > { %v4477_v26 = vadd.f32 %v6804_v15, %v4476_v23  ;;  %v4592_v4 = vsub.f32 %v4051_v34, %v7137_v46 }
 0x391   : > { %v4061_v58 = vsel %vm4060_vm15, %v6802_v37, %v4057_v19 }
 0x392   : > { %v4066_v61 = vsel %vm4063_vm0, %v4065_v63, %v4061_v58  ;;  %v4481_v42 = vsel %vm4480_vm2, %v6804_v15, %v4477_v26 }
 0x393   : > { %v4593_v1 = vsub.f32 %v4066_v61, %v7137_v46  ;;  %v4486_v52 = vsel %vm4483_vm3, %v4485_v51, %v4481_v42 }
 0x394   : > { %v4621_v41 = vsub.f32 %v4486_v52, %v7137_v46 }
 0x395   : > { %v6192_v28 = vpack.c.bf16 %v4593_v1, %v4592_v4 }
 0x396   : > { %v6262_v14 = vpack.c.bf16 %v4621_v41, %v4620_v9 }
 0x397   : > { %6304 = vst [vmem:[%s7165_s22 + $0x148] sm:$0xff] %v6192_v28  }
 0x398   : > { %6318 = vst [vmem:[%s7165_s22 + $0x1b8] sm:$0xff] %v6262_v14  }
 0x399 PF: > { %s13_s12 = sadd.s32 1, %s6817_s12  }
 0x39a   : > { %p10_p4 = scmp.ge.s32.totalorder %s13_s12, 6  }
 0x39c   :  { %12 = sbr.rel (!%p10_p4) target bundleno = 1 (0x1), region = 62 }

</bundles_post_ra>
